<compile_context>
chip_gen: v7x
topology: tpu7x:2x2x1
jax: 0.10.0
libtpu: 0.0.40
codegen_flags: <defaults>
</compile_context>

<pallas_src>
import functools

import jax
import jax.numpy as jnp
from jax import lax
from jax.experimental import pallas as pl
from jax.experimental.pallas import tpu as pltpu

KSIZE = 4
BN_EPS = 1e-5
LANES = 128


# ---------------------------------------------------------------------------
# Pallas kernels
# ---------------------------------------------------------------------------
def _matmul_kernel(x_ref, w_ref, o_ref):
    # bf16 x bf16 -> f32 accumulate on the MXU; output block is lane-dense.
    o_ref[...] = jnp.dot(x_ref[...], w_ref[...], preferred_element_type=jnp.float32)


def _bn_relu_kernel(x_ref, gamma_ref, beta_ref, o_ref, *, channels, m_total):
    """Fused train-mode BatchNorm + ReLU on a lane-packed (Mp, 128) slab.

    Lane j of every row holds channel (j % channels).  Per-channel batch
    statistics = sublane reduce followed by a circular lane fold (rolls by
    multiples of `channels`, channels | 128).  All math in f32; store bf16.
    """
    x = x_ref[...]
    groups = LANES // channels

    def fold(v):  # (1, 128) per-lane partials -> per-channel totals on every lane
        total = v
        for t in range(1, groups):
            total = total + pltpu.roll(v, t * channels, 1)
        return total

    inv_m = 1.0 / m_total
    lane_sum = jnp.sum(x, axis=0, keepdims=True)
    mean = fold(lane_sum) * inv_m
    cent = x - mean
    lane_sq = jnp.sum(cent * cent, axis=0, keepdims=True)
    var = fold(lane_sq) * inv_m                    # biased variance (train-mode BN)
    inv = jax.lax.rsqrt(var + BN_EPS)
    y = cent * (inv * gamma_ref[...]) + beta_ref[...]
    o_ref[...] = jnp.maximum(y, 0.0).astype(o_ref.dtype)


def _bias_tanh_kernel(x_ref, b_ref, o_ref):
    # lane-dense (rows, 128) slab; bias pre-tiled to 128 lanes.
    o_ref[...] = jnp.tanh(x_ref[...] + b_ref[...])


# ---------------------------------------------------------------------------
# Pallas wrappers
# ---------------------------------------------------------------------------
def matmul_lane_dense(x_bf16, w_bf16):
    """x: (M, K) bf16, w: (K, Nout) bf16 -> (M, Nout) f32. Nout = k*k*Cout."""
    M, K = x_bf16.shape
    Nout = w_bf16.shape[1]
    # One VMEM-resident block when comfortably under budget (no per-step
    # overhead); otherwise tile M so the grid can also split across cores.
    slab_bytes = 2 * M * K + 2 * K * Nout + 4 * M * Nout
    if 2 * slab_bytes <= 8 * 1024 * 1024 or M % 256 != 0:
        tm = M
    else:
        tm = 256
    cost = pl.CostEstimate(
        flops=2 * M * K * Nout,
        transcendentals=0,
        bytes_accessed=2 * (M * K + K * Nout) + 4 * M * Nout,
    )
    return pl.pallas_call(
        _matmul_kernel,
        out_shape=jax.ShapeDtypeStruct((M, Nout), jnp.float32),
        grid=(M // tm,),
        in_specs=[
            pl.BlockSpec((tm, K), lambda i: (i, 0)),
            pl.BlockSpec((K, Nout), lambda i: (0, 0)),
        ],
        out_specs=pl.BlockSpec((tm, Nout), lambda i: (i, 0)),
        compiler_params=pltpu.CompilerParams(dimension_semantics=("parallel",)),
        cost_estimate=cost,
    )(x_bf16, w_bf16)


def bn_relu_fused(out_nhwc, gamma, beta):
    """Fused batch-stat BN + ReLU on the whole layer output (single VMEM block)."""
    n, h, w, c = out_nhwc.shape
    m_total = n * h * w
    assert LANES % c == 0 and (m_total * c) % LANES == 0
    reps = LANES // c
    packed = out_nhwc.reshape(m_total * c // LANES, LANES)   # contiguous, lane-dense
    gamma_t = jnp.tile(gamma, reps).reshape(1, LANES)
    beta_t = jnp.tile(beta, reps).reshape(1, LANES)
    kern = functools.partial(_bn_relu_kernel, channels=c, m_total=float(m_total))
    y = pl.pallas_call(
        kern,
        out_shape=jax.ShapeDtypeStruct(packed.shape, jnp.bfloat16),
    )(packed, gamma_t, beta_t)
    return y.reshape(n, h, w, c)                              # bf16, feeds next matmul


def bias_tanh_fused(out_nhwc, bias):
    n, h, w, c = out_nhwc.shape
    assert (n * h * w * c) % LANES == 0
    packed = out_nhwc.reshape(n * h * w * c // LANES, LANES)  # lane-dense
    bias_t = jnp.tile(bias, LANES // c).reshape(1, LANES)
    y = pl.pallas_call(
        _bias_tanh_kernel,
        out_shape=jax.ShapeDtypeStruct(packed.shape, jnp.float32),
    )(packed, bias_t)
    return y.reshape(n, h, w, c)


# ---------------------------------------------------------------------------
# col2im overlap-add (XLA glue, tiny tensors) for ConvTranspose2d(k=4, s=2, p=1)
# ---------------------------------------------------------------------------
def col2im_stride2_pad1(y, n, hi, wi, cout, k=KSIZE):
    """y: (n*hi*wi, k*k*cout), columns ordered [(ki*k + kj)*cout + c].

    Output row ho = 2*hi - 1 + ki (clipped); even rows take ki={1,3}, odd rows
    ki={2,0}; same for columns.  Returns NHWC (n, 2*hi, 2*wi, cout).
    """
    y6 = y.reshape(n, hi, wi, k, k, cout)
    up = jnp.pad(y6[:, :, :, 3], ((0, 0), (1, 0), (0, 0), (0, 0), (0, 0)))[:, :hi]
    dn = jnp.pad(y6[:, :, :, 0], ((0, 0), (0, 1), (0, 0), (0, 0), (0, 0)))[:, 1:]
    rows = jnp.stack([y6[:, :, :, 1] + up, y6[:, :, :, 2] + dn], axis=2)
    # rows: (n, hi, 2, wi, kj, cout)
    lf = jnp.pad(rows[:, :, :, :, 3], ((0, 0), (0, 0), (0, 0), (1, 0), (0, 0)))[:, :, :, :wi]
    rt = jnp.pad(rows[:, :, :, :, 0], ((0, 0), (0, 0), (0, 0), (0, 1), (0, 0)))[:, :, :, 1:]
    cols = jnp.stack([rows[:, :, :, :, 1] + lf, rows[:, :, :, :, 2] + rt], axis=4)
    # cols: (n, hi, 2, wi, 2, cout) -> contiguous interleave to (n, 2hi, 2wi, cout)
    return cols.reshape(n, 2 * hi, 2 * wi, cout)


# ---------------------------------------------------------------------------
# Parameters (PyTorch ConvTranspose2d weights converted to matmul layout)
# ---------------------------------------------------------------------------
def convert_weight(w_pt):
    """PyTorch weight (Cin, Cout, k, k) -> (Cin, k*k*Cout) bf16,
    column order [(ki*k + kj)*Cout + c] matching col2im above."""
    cin, cout, k, _ = w_pt.shape
    return jnp.transpose(w_pt, (0, 2, 3, 1)).reshape(cin, k * k * cout).astype(jnp.bfloat16)


def init_params(key, z_dim=8, image_size=16):
    chans = [z_dim, image_size * 8, image_size * 4, image_size * 2, image_size, 1]
    names = ["l1", "l2", "l3", "l4", "last"]
    kparams, rparams = {}, {}
    for li, name in enumerate(names):
        cin, cout = chans[li], chans[li + 1]
        key, kw, kg, kb = jax.random.split(key, 4)
        w_pt = 0.02 * jax.random.normal(kw, (cin, cout, KSIZE, KSIZE), jnp.float32)
        layer = {"wmat": convert_weight(w_pt)}
        ref = {"w": w_pt}
        if name == "last":
            bias = 0.1 * jax.random.normal(kb, (cout,), jnp.float32)
            layer["bias"] = bias
            ref["bias"] = bias
        else:
            # ConvTranspose2d bias is exactly absorbed by train-mode BatchNorm
            # (the per-channel mean shift cancels), so it is dropped here.
            gamma = 1.0 + 0.1 * jax.random.normal(kg, (cout,), jnp.float32)
            beta = 0.05 * jax.random.normal(kb, (cout,), jnp.float32)
            layer["gamma"], layer["beta"] = gamma, beta
            ref["gamma"], ref["beta"] = gamma, beta
        kparams[name] = layer
        rparams[name] = ref
    return kparams, rparams


# ---------------------------------------------------------------------------
# Generator forward (Pallas pipeline)
# ---------------------------------------------------------------------------
@jax.jit
def generator_forward(z_nchw, params):
    n = z_nchw.shape[0]
    x = z_nchw.astype(jnp.bfloat16).reshape(n, -1)               # (N, z_dim); 1x1 spatial

    # layer1: ConvT(k=4, s=1, p=0) on a 1x1 input == a single matmul + reshape
    c1 = params["l1"]["gamma"].shape[0]
    y = matmul_lane_dense(x, params["l1"]["wmat"])               # (N, 16*C1)
    out = y.reshape(n, KSIZE, KSIZE, c1)                         # (N, 4, 4, C1)
    x_nhwc = bn_relu_fused(out, params["l1"]["gamma"], params["l1"]["beta"])

    # layers 2-4: ConvT(k=4, s=2, p=1) -> BN -> ReLU
    for name in ("l2", "l3", "l4"):
        gamma, beta = params[name]["gamma"], params[name]["beta"]
        nb, hi, wi, cin = x_nhwc.shape
        cout = gamma.shape[0]
        y = matmul_lane_dense(x_nhwc.reshape(nb * hi * wi, cin), params[name]["wmat"])
        out = col2im_stride2_pad1(y, nb, hi, wi, cout)
        x_nhwc = bn_relu_fused(out, gamma, beta)

    # last: ConvT(k=4, s=2, p=1) -> +bias -> tanh
    nb, hi, wi, cin = x_nhwc.shape
    y = matmul_lane_dense(x_nhwc.reshape(nb * hi * wi, cin), params["last"]["wmat"])
    out = col2im_stride2_pad1(y, nb, hi, wi, 1)
    out = bias_tanh_fused(out, params["last"]["bias"])           # (N, 64, 64, 1) f32
    return jnp.transpose(out, (0, 3, 1, 2))                      # NCHW (N, 1, 64, 64)


# ---------------------------------------------------------------------------
# Pure-JAX reference (same bf16 rounding of matmul operands, f32 math otherwise)
# ---------------------------------------------------------------------------
def conv_transpose_ref(x_nchw, w_pt, stride, pad):
    k = w_pt.shape[-1]
    return lax.conv_general_dilated(
        x_nchw, w_pt[:, :, ::-1, ::-1],
        window_strides=(1, 1),
        padding=[(k - 1 - pad, k - 1 - pad)] * 2,
        lhs_dilation=(stride, stride),
        dimension_numbers=("NCHW", "IOHW", "NCHW"),
        precision=lax.Precision.HIGHEST,
    )


def bn_relu_ref(x_nchw, gamma, beta):
    mean = jnp.mean(x_nchw, axis=(0, 2, 3), keepdims=True)
    var = jnp.mean((x_nchw - mean) ** 2, axis=(0, 2, 3), keepdims=True)
    y = (x_nchw - mean) * jax.lax.rsqrt(var + BN_EPS)
    return jnp.maximum(y * gamma.reshape(1, -1, 1, 1) + beta.reshape(1, -1, 1, 1), 0.0)


def generator_ref(z_nchw, rparams):
    q = lambda a: a.astype(jnp.bfloat16).astype(jnp.float32)
    x = z_nchw.astype(jnp.float32)
    for name, stride, pad in (("l1", 1, 0), ("l2", 2, 1), ("l3", 2, 1), ("l4", 2, 1)):
        p = rparams[name]
        y = conv_transpose_ref(q(x), q(p["w"]), stride, pad)
        x = bn_relu_ref(y, p["gamma"], p["beta"])
    p = rparams["last"]
    y = conv_transpose_ref(q(x), q(p["w"]), 2, 1) + p["bias"].reshape(1, -1, 1, 1)
    return jnp.tanh(y)


if __name__ == "__main__":
    key = jax.random.PRNGKey(0)
    k_param, k_z = jax.random.split(key)

    Z_DIM, IMAGE_SIZE, BATCH = 8, 16, 2   # spatial 1 -> 4 -> 8 -> 16 -> 32 -> 64
    params, ref_params = init_params(k_param, z_dim=Z_DIM, image_size=IMAGE_SIZE)
    z = jax.random.normal(k_z, (BATCH, Z_DIM, 1, 1), jnp.float32)

    out = generator_forward(z, params)
    out = jax.block_until_ready(out)

    assert out.shape == (BATCH, 1, 64, 64), out.shape
    assert out.dtype == jnp.float32
    assert bool(jnp.all(jnp.isfinite(out)))
    assert bool(jnp.all(jnp.abs(out) <= 1.0 + 1e-6))  # tanh range

    ref = jax.block_until_ready(jax.jit(generator_ref)(z, ref_params))
    max_err = float(jnp.max(jnp.abs(out - ref)))
    assert max_err < 2e-2, f"mismatch vs reference: max abs err {max_err}"

    print("KERNEL_OK")
</pallas_src>

<mosaic_0001>
module attributes {stable_mosaic.version = 11 : i64} {
  func.func @_matmul_kernel(%arg0: i32, %arg1: memref<2x8xbf16, #tpu.memory_space<vmem>>, %arg2: memref<8x2048xbf16, #tpu.memory_space<vmem>>, %arg3: memref<2x2048xf32, #tpu.memory_space<vmem>>) attributes {dimension_semantics = [#tpu.dimension_semantics<parallel>], iteration_bounds = array<i64: 1>, scalar_prefetch = 0 : i64, scratch_operands = 0 : i64, tpu.core_type = #tpu.core_type<tc>, window_params = [{transform_indices = @transform_0, window_bounds = array<i64: 2, 8>}, {pipeline_mode = #tpu.pipeline_mode<synchronous>, transform_indices = @transform_1, window_bounds = array<i64: 8, 2048>}, {transform_indices = @transform_2, window_bounds = array<i64: 2, 2048>}]} {
    %c0 = arith.constant 0 : index
    %c0_0 = arith.constant 0 : index
    %0 = vector.load %arg1[%c0, %c0_0] : memref<2x8xbf16, #tpu.memory_space<vmem>>, vector<2x8xbf16>
    %c0_1 = arith.constant 0 : index
    %c0_2 = arith.constant 0 : index
    %1 = vector.load %arg2[%c0_1, %c0_2] : memref<8x2048xbf16, #tpu.memory_space<vmem>>, vector<8x2048xbf16>
    %cst = arith.constant dense<0.000000e+00> : vector<2x2048xf32>
    %2 = tpu.matmul %0, %1, %cst {dimension_numbers = #tpu.dot_dimension_numbers<[1], [0], [0], [1], [0, 0, 1, 1], [], []>} : vector<2x8xbf16>, vector<8x2048xbf16>, vector<2x2048xf32> -> vector<2x2048xf32>
    %c0_3 = arith.constant 0 : index
    %c0_4 = arith.constant 0 : index
    %3 = vector.load %arg3[%c0_3, %c0_4] : memref<2x2048xf32, #tpu.memory_space<vmem>>, vector<2x2048xf32>
    tpu.vector_store %arg3[%c0_3, %c0_4], %2 {strides = array<i32>} : memref<2x2048xf32, #tpu.memory_space<vmem>>, vector<2x2048xf32>,
    return
  }
  func.func @transform_0(%arg0: i32) -> (i32, i32) {
    %c0_i32 = arith.constant 0 : i32
    %c0_i32_0 = arith.constant 0 : i32
    return %arg0, %c0_i32 : i32, i32
  }
  func.func @transform_1(%arg0: i32) -> (i32, i32) {
    %c0_i32 = arith.constant 0 : i32
    %c0_i32_0 = arith.constant 0 : i32
    %c0_i32_1 = arith.constant 0 : i32
    return %c0_i32, %c0_i32_0 : i32, i32
  }
  func.func @transform_2(%arg0: i32) -> (i32, i32) {
    %c0_i32 = arith.constant 0 : i32
    %c0_i32_0 = arith.constant 0 : i32
    return %arg0, %c0_i32 : i32, i32
  }
}

module attributes {stable_mosaic.version = 11 : i64} {
  func.func @_bn_relu_kernel(%arg0: memref<32x128xf32, #tpu.memory_space<vmem>>, %arg1: memref<1x128xf32, #tpu.memory_space<vmem>>, %arg2: memref<1x128xf32, #tpu.memory_space<vmem>>, %arg3: memref<32x128xbf16, #tpu.memory_space<vmem>>) attributes {dimension_semantics = [], scalar_prefetch = 0 : i64, scratch_operands = 0 : i64, tpu.core_type = #tpu.core_type<tc>} {
    %c0 = arith.constant 0 : index
    %c0_0 = arith.constant 0 : index
    %0 = vector.load %arg0[%c0, %c0_0] : memref<32x128xf32, #tpu.memory_space<vmem>>, vector<32x128xf32>
    %cst = arith.constant dense<0.000000e+00> : vector<128xf32>
    %1 = vector.multi_reduction <add>, %0, %cst [0] : vector<32x128xf32> to vector<128xf32>
    %2 = vector.shape_cast %1 : vector<128xf32> to vector<1x128xf32>
    %cst_1 = arith.constant 3.125000e-02 : f32
    %3 = vector.broadcast %cst_1 : f32 to vector<1x128xf32>
    %4 = arith.mulf %2, %3 : vector<1x128xf32>
    %5 = vector.broadcast %4 : vector<1x128xf32> to vector<32x128xf32>
    %6 = arith.subf %0, %5 : vector<32x128xf32>
    %7 = arith.mulf %6, %6 : vector<32x128xf32>
    %cst_2 = arith.constant dense<0.000000e+00> : vector<128xf32>
    %8 = vector.multi_reduction <add>, %7, %cst_2 [0] : vector<32x128xf32> to vector<128xf32>
    %9 = vector.shape_cast %8 : vector<128xf32> to vector<1x128xf32>
    %cst_3 = arith.constant 3.125000e-02 : f32
    %10 = vector.broadcast %cst_3 : f32 to vector<1x128xf32>
    %11 = arith.mulf %9, %10 : vector<1x128xf32>
    %cst_4 = arith.constant 9.99999974E-6 : f32
    %12 = vector.broadcast %cst_4 : f32 to vector<1x128xf32>
    %13 = arith.addf %11, %12 : vector<1x128xf32>
    %14 = math.rsqrt %13 : vector<1x128xf32>
    %c0_5 = arith.constant 0 : index
    %c0_6 = arith.constant 0 : index
    %15 = vector.load %arg1[%c0_5, %c0_6] : memref<1x128xf32, #tpu.memory_space<vmem>>, vector<1x128xf32>
    %16 = arith.mulf %14, %15 : vector<1x128xf32>
    %17 = vector.broadcast %16 : vector<1x128xf32> to vector<32x128xf32>
    %18 = arith.mulf %6, %17 : vector<32x128xf32>
    %c0_7 = arith.constant 0 : index
    %c0_8 = arith.constant 0 : index
    %19 = vector.load %arg2[%c0_7, %c0_8] : memref<1x128xf32, #tpu.memory_space<vmem>>, vector<1x128xf32>
    %20 = vector.broadcast %19 : vector<1x128xf32> to vector<32x128xf32>
    %21 = arith.addf %18, %20 : vector<32x128xf32>
    %cst_9 = arith.constant 0.000000e+00 : f32
    %22 = vector.broadcast %cst_9 : f32 to vector<32x128xf32>
    %23 = arith.maximumf %21, %22 : vector<32x128xf32>
    %24 = arith.truncf %23 : vector<32x128xf32> to vector<32x128xbf16>
    %c0_10 = arith.constant 0 : index
    %c0_11 = arith.constant 0 : index
    %25 = vector.load %arg3[%c0_10, %c0_11] : memref<32x128xbf16, #tpu.memory_space<vmem>>, vector<32x128xbf16>
    tpu.vector_store %arg3[%c0_10, %c0_11], %24 {strides = array<i32>} : memref<32x128xbf16, #tpu.memory_space<vmem>>, vector<32x128xbf16>,
    return
  }
}

module attributes {stable_mosaic.version = 11 : i64} {
  func.func @_matmul_kernel(%arg0: i32, %arg1: memref<32x128xbf16, #tpu.memory_space<vmem>>, %arg2: memref<128x1024xbf16, #tpu.memory_space<vmem>>, %arg3: memref<32x1024xf32, #tpu.memory_space<vmem>>) attributes {dimension_semantics = [#tpu.dimension_semantics<parallel>], iteration_bounds = array<i64: 1>, scalar_prefetch = 0 : i64, scratch_operands = 0 : i64, tpu.core_type = #tpu.core_type<tc>, window_params = [{transform_indices = @transform_0, window_bounds = array<i64: 32, 128>}, {pipeline_mode = #tpu.pipeline_mode<synchronous>, transform_indices = @transform_1, window_bounds = array<i64: 128, 1024>}, {transform_indices = @transform_2, window_bounds = array<i64: 32, 1024>}]} {
    %c0 = arith.constant 0 : index
    %c0_0 = arith.constant 0 : index
    %0 = vector.load %arg1[%c0, %c0_0] : memref<32x128xbf16, #tpu.memory_space<vmem>>, vector<32x128xbf16>
    %c0_1 = arith.constant 0 : index
    %c0_2 = arith.constant 0 : index
    %1 = vector.load %arg2[%c0_1, %c0_2] : memref<128x1024xbf16, #tpu.memory_space<vmem>>, vector<128x1024xbf16>
    %cst = arith.constant dense<0.000000e+00> : vector<32x1024xf32>
    %2 = tpu.matmul %0, %1, %cst {dimension_numbers = #tpu.dot_dimension_numbers<[1], [0], [0], [1], [0, 0, 1, 1], [], []>} : vector<32x128xbf16>, vector<128x1024xbf16>, vector<32x1024xf32> -> vector<32x1024xf32>
    %c0_3 = arith.constant 0 : index
    %c0_4 = arith.constant 0 : index
    %3 = vector.load %arg3[%c0_3, %c0_4] : memref<32x1024xf32, #tpu.memory_space<vmem>>, vector<32x1024xf32>
    tpu.vector_store %arg3[%c0_3, %c0_4], %2 {strides = array<i32>} : memref<32x1024xf32, #tpu.memory_space<vmem>>, vector<32x1024xf32>,
    return
  }
  func.func @transform_0(%arg0: i32) -> (i32, i32) {
    %c0_i32 = arith.constant 0 : i32
    %c0_i32_0 = arith.constant 0 : i32
    return %arg0, %c0_i32 : i32, i32
  }
  func.func @transform_1(%arg0: i32) -> (i32, i32) {
    %c0_i32 = arith.constant 0 : i32
    %c0_i32_0 = arith.constant 0 : i32
    %c0_i32_1 = arith.constant 0 : i32
    return %c0_i32, %c0_i32_0 : i32, i32
  }
  func.func @transform_2(%arg0: i32) -> (i32, i32) {
    %c0_i32 = arith.constant 0 : i32
    %c0_i32_0 = arith.constant 0 : i32
    return %arg0, %c0_i32 : i32, i32
  }
}

module attributes {stable_mosaic.version = 11 : i64} {
  func.func @_bn_relu_kernel(%arg0: memref<64x128xf32, #tpu.memory_space<vmem>>, %arg1: memref<1x128xf32, #tpu.memory_space<vmem>>, %arg2: memref<1x128xf32, #tpu.memory_space<vmem>>, %arg3: memref<64x128xbf16, #tpu.memory_space<vmem>>) attributes {dimension_semantics = [], scalar_prefetch = 0 : i64, scratch_operands = 0 : i64, tpu.core_type = #tpu.core_type<tc>} {
    %c0 = arith.constant 0 : index
    %c0_0 = arith.constant 0 : index
    %0 = vector.load %arg0[%c0, %c0_0] : memref<64x128xf32, #tpu.memory_space<vmem>>, vector<64x128xf32>
    %cst = arith.constant dense<0.000000e+00> : vector<128xf32>
    %1 = vector.multi_reduction <add>, %0, %cst [0] : vector<64x128xf32> to vector<128xf32>
    %2 = vector.shape_cast %1 : vector<128xf32> to vector<1x128xf32>
    %c64_i32 = arith.constant 64 : i32
    %3 = tpu.dynamic_rotate %2 by %c64_i32 dim 1 : vector<1x128xf32>, i32 -> vector<1x128xf32>
    %4 = arith.addf %2, %3 : vector<1x128xf32>
    %cst_1 = arith.constant 7.812500e-03 : f32
    %5 = vector.broadcast %cst_1 : f32 to vector<1x128xf32>
    %6 = arith.mulf %4, %5 : vector<1x128xf32>
    %7 = vector.broadcast %6 : vector<1x128xf32> to vector<64x128xf32>
    %8 = arith.subf %0, %7 : vector<64x128xf32>
    %9 = arith.mulf %8, %8 : vector<64x128xf32>
    %cst_2 = arith.constant dense<0.000000e+00> : vector<128xf32>
    %10 = vector.multi_reduction <add>, %9, %cst_2 [0] : vector<64x128xf32> to vector<128xf32>
    %11 = vector.shape_cast %10 : vector<128xf32> to vector<1x128xf32>
    %c64_i32_3 = arith.constant 64 : i32
    %12 = tpu.dynamic_rotate %11 by %c64_i32_3 dim 1 : vector<1x128xf32>, i32 -> vector<1x128xf32>
    %13 = arith.addf %11, %12 : vector<1x128xf32>
    %cst_4 = arith.constant 7.812500e-03 : f32
    %14 = vector.broadcast %cst_4 : f32 to vector<1x128xf32>
    %15 = arith.mulf %13, %14 : vector<1x128xf32>
    %cst_5 = arith.constant 9.99999974E-6 : f32
    %16 = vector.broadcast %cst_5 : f32 to vector<1x128xf32>
    %17 = arith.addf %15, %16 : vector<1x128xf32>
    %18 = math.rsqrt %17 : vector<1x128xf32>
    %c0_6 = arith.constant 0 : index
    %c0_7 = arith.constant 0 : index
    %19 = vector.load %arg1[%c0_6, %c0_7] : memref<1x128xf32, #tpu.memory_space<vmem>>, vector<1x128xf32>
    %20 = arith.mulf %18, %19 : vector<1x128xf32>
    %21 = vector.broadcast %20 : vector<1x128xf32> to vector<64x128xf32>
    %22 = arith.mulf %8, %21 : vector<64x128xf32>
    %c0_8 = arith.constant 0 : index
    %c0_9 = arith.constant 0 : index
    %23 = vector.load %arg2[%c0_8, %c0_9] : memref<1x128xf32, #tpu.memory_space<vmem>>, vector<1x128xf32>
    %24 = vector.broadcast %23 : vector<1x128xf32> to vector<64x128xf32>
    %25 = arith.addf %22, %24 : vector<64x128xf32>
    %cst_10 = arith.constant 0.000000e+00 : f32
    %26 = vector.broadcast %cst_10 : f32 to vector<64x128xf32>
    %27 = arith.maximumf %25, %26 : vector<64x128xf32>
    %28 = arith.truncf %27 : vector<64x128xf32> to vector<64x128xbf16>
    %c0_11 = arith.constant 0 : index
    %c0_12 = arith.constant 0 : index
    %29 = vector.load %arg3[%c0_11, %c0_12] : memref<64x128xbf16, #tpu.memory_space<vmem>>, vector<64x128xbf16>
    tpu.vector_store %arg3[%c0_11, %c0_12], %28 {strides = array<i32>} : memref<64x128xbf16, #tpu.memory_space<vmem>>, vector<64x128xbf16>,
    return
  }
}

module attributes {stable_mosaic.version = 11 : i64} {
  func.func @_matmul_kernel(%arg0: i32, %arg1: memref<128x64xbf16, #tpu.memory_space<vmem>>, %arg2: memref<64x512xbf16, #tpu.memory_space<vmem>>, %arg3: memref<128x512xf32, #tpu.memory_space<vmem>>) attributes {dimension_semantics = [#tpu.dimension_semantics<parallel>], iteration_bounds = array<i64: 1>, scalar_prefetch = 0 : i64, scratch_operands = 0 : i64, tpu.core_type = #tpu.core_type<tc>, window_params = [{transform_indices = @transform_0, window_bounds = array<i64: 128, 64>}, {pipeline_mode = #tpu.pipeline_mode<synchronous>, transform_indices = @transform_1, window_bounds = array<i64: 64, 512>}, {transform_indices = @transform_2, window_bounds = array<i64: 128, 512>}]} {
    %c0 = arith.constant 0 : index
    %c0_0 = arith.constant 0 : index
    %0 = vector.load %arg1[%c0, %c0_0] : memref<128x64xbf16, #tpu.memory_space<vmem>>, vector<128x64xbf16>
    %c0_1 = arith.constant 0 : index
    %c0_2 = arith.constant 0 : index
    %1 = vector.load %arg2[%c0_1, %c0_2] : memref<64x512xbf16, #tpu.memory_space<vmem>>, vector<64x512xbf16>
    %cst = arith.constant dense<0.000000e+00> : vector<128x512xf32>
    %2 = tpu.matmul %0, %1, %cst {dimension_numbers = #tpu.dot_dimension_numbers<[1], [0], [0], [1], [0, 0, 1, 1], [], []>} : vector<128x64xbf16>, vector<64x512xbf16>, vector<128x512xf32> -> vector<128x512xf32>
    %c0_3 = arith.constant 0 : index
    %c0_4 = arith.constant 0 : index
    %3 = vector.load %arg3[%c0_3, %c0_4] : memref<128x512xf32, #tpu.memory_space<vmem>>, vector<128x512xf32>
    tpu.vector_store %arg3[%c0_3, %c0_4], %2 {strides = array<i32>} : memref<128x512xf32, #tpu.memory_space<vmem>>, vector<128x512xf32>,
    return
  }
  func.func @transform_0(%arg0: i32) -> (i32, i32) {
    %c0_i32 = arith.constant 0 : i32
    %c0_i32_0 = arith.constant 0 : i32
    return %arg0, %c0_i32 : i32, i32
  }
  func.func @transform_1(%arg0: i32) -> (i32, i32) {
    %c0_i32 = arith.constant 0 : i32
    %c0_i32_0 = arith.constant 0 : i32
    %c0_i32_1 = arith.constant 0 : i32
    return %c0_i32, %c0_i32_0 : i32, i32
  }
  func.func @transform_2(%arg0: i32) -> (i32, i32) {
    %c0_i32 = arith.constant 0 : i32
    %c0_i32_0 = arith.constant 0 : i32
    return %arg0, %c0_i32 : i32, i32
  }
}

module attributes {stable_mosaic.version = 11 : i64} {
  func.func @_bn_relu_kernel(%arg0: memref<128x128xf32, #tpu.memory_space<vmem>>, %arg1: memref<1x128xf32, #tpu.memory_space<vmem>>, %arg2: memref<1x128xf32, #tpu.memory_space<vmem>>, %arg3: memref<128x128xbf16, #tpu.memory_space<vmem>>) attributes {dimension_semantics = [], scalar_prefetch = 0 : i64, scratch_operands = 0 : i64, tpu.core_type = #tpu.core_type<tc>} {
    %c0 = arith.constant 0 : index
    %c0_0 = arith.constant 0 : index
    %0 = vector.load %arg0[%c0, %c0_0] : memref<128x128xf32, #tpu.memory_space<vmem>>, vector<128x128xf32>
    %cst = arith.constant dense<0.000000e+00> : vector<128xf32>
    %1 = vector.multi_reduction <add>, %0, %cst [0] : vector<128x128xf32> to vector<128xf32>
    %2 = vector.shape_cast %1 : vector<128xf32> to vector<1x128xf32>
    %c32_i32 = arith.constant 32 : i32
    %3 = tpu.dynamic_rotate %2 by %c32_i32 dim 1 : vector<1x128xf32>, i32 -> vector<1x128xf32>
    %4 = arith.addf %2, %3 : vector<1x128xf32>
    %c64_i32 = arith.constant 64 : i32
    %5 = tpu.dynamic_rotate %2 by %c64_i32 dim 1 : vector<1x128xf32>, i32 -> vector<1x128xf32>
    %6 = arith.addf %4, %5 : vector<1x128xf32>
    %c96_i32 = arith.constant 96 : i32
    %7 = tpu.dynamic_rotate %2 by %c96_i32 dim 1 : vector<1x128xf32>, i32 -> vector<1x128xf32>
    %8 = arith.addf %6, %7 : vector<1x128xf32>
    %cst_1 = arith.constant 0.001953125 : f32
    %9 = vector.broadcast %cst_1 : f32 to vector<1x128xf32>
    %10 = arith.mulf %8, %9 : vector<1x128xf32>
    %11 = vector.broadcast %10 : vector<1x128xf32> to vector<128x128xf32>
    %12 = arith.subf %0, %11 : vector<128x128xf32>
    %13 = arith.mulf %12, %12 : vector<128x128xf32>
    %cst_2 = arith.constant dense<0.000000e+00> : vector<128xf32>
    %14 = vector.multi_reduction <add>, %13, %cst_2 [0] : vector<128x128xf32> to vector<128xf32>
    %15 = vector.shape_cast %14 : vector<128xf32> to vector<1x128xf32>
    %c32_i32_3 = arith.constant 32 : i32
    %16 = tpu.dynamic_rotate %15 by %c32_i32_3 dim 1 : vector<1x128xf32>, i32 -> vector<1x128xf32>
    %17 = arith.addf %15, %16 : vector<1x128xf32>
    %c64_i32_4 = arith.constant 64 : i32
    %18 = tpu.dynamic_rotate %15 by %c64_i32_4 dim 1 : vector<1x128xf32>, i32 -> vector<1x128xf32>
    %19 = arith.addf %17, %18 : vector<1x128xf32>
    %c96_i32_5 = arith.constant 96 : i32
    %20 = tpu.dynamic_rotate %15 by %c96_i32_5 dim 1 : vector<1x128xf32>, i32 -> vector<1x128xf32>
    %21 = arith.addf %19, %20 : vector<1x128xf32>
    %cst_6 = arith.constant 0.001953125 : f32
    %22 = vector.broadcast %cst_6 : f32 to vector<1x128xf32>
    %23 = arith.mulf %21, %22 : vector<1x128xf32>
    %cst_7 = arith.constant 9.99999974E-6 : f32
    %24 = vector.broadcast %cst_7 : f32 to vector<1x128xf32>
    %25 = arith.addf %23, %24 : vector<1x128xf32>
    %26 = math.rsqrt %25 : vector<1x128xf32>
    %c0_8 = arith.constant 0 : index
    %c0_9 = arith.constant 0 : index
    %27 = vector.load %arg1[%c0_8, %c0_9] : memref<1x128xf32, #tpu.memory_space<vmem>>, vector<1x128xf32>
    %28 = arith.mulf %26, %27 : vector<1x128xf32>
    %29 = vector.broadcast %28 : vector<1x128xf32> to vector<128x128xf32>
    %30 = arith.mulf %12, %29 : vector<128x128xf32>
    %c0_10 = arith.constant 0 : index
    %c0_11 = arith.constant 0 : index
    %31 = vector.load %arg2[%c0_10, %c0_11] : memref<1x128xf32, #tpu.memory_space<vmem>>, vector<1x128xf32>
    %32 = vector.broadcast %31 : vector<1x128xf32> to vector<128x128xf32>
    %33 = arith.addf %30, %32 : vector<128x128xf32>
    %cst_12 = arith.constant 0.000000e+00 : f32
    %34 = vector.broadcast %cst_12 : f32 to vector<128x128xf32>
    %35 = arith.maximumf %33, %34 : vector<128x128xf32>
    %36 = arith.truncf %35 : vector<128x128xf32> to vector<128x128xbf16>
    %c0_13 = arith.constant 0 : index
    %c0_14 = arith.constant 0 : index
    %37 = vector.load %arg3[%c0_13, %c0_14] : memref<128x128xbf16, #tpu.memory_space<vmem>>, vector<128x128xbf16>
    tpu.vector_store %arg3[%c0_13, %c0_14], %36 {strides = array<i32>} : memref<128x128xbf16, #tpu.memory_space<vmem>>, vector<128x128xbf16>,
    return
  }
}

module attributes {stable_mosaic.version = 11 : i64} {
  func.func @_matmul_kernel(%arg0: i32, %arg1: memref<512x32xbf16, #tpu.memory_space<vmem>>, %arg2: memref<32x256xbf16, #tpu.memory_space<vmem>>, %arg3: memref<512x256xf32, #tpu.memory_space<vmem>>) attributes {dimension_semantics = [#tpu.dimension_semantics<parallel>], iteration_bounds = array<i64: 1>, scalar_prefetch = 0 : i64, scratch_operands = 0 : i64, tpu.core_type = #tpu.core_type<tc>, window_params = [{transform_indices = @transform_0, window_bounds = array<i64: 512, 32>}, {pipeline_mode = #tpu.pipeline_mode<synchronous>, transform_indices = @transform_1, window_bounds = array<i64: 32, 256>}, {transform_indices = @transform_2, window_bounds = array<i64: 512, 256>}]} {
    %c0 = arith.constant 0 : index
    %c0_0 = arith.constant 0 : index
    %0 = vector.load %arg1[%c0, %c0_0] : memref<512x32xbf16, #tpu.memory_space<vmem>>, vector<512x32xbf16>
    %c0_1 = arith.constant 0 : index
    %c0_2 = arith.constant 0 : index
    %1 = vector.load %arg2[%c0_1, %c0_2] : memref<32x256xbf16, #tpu.memory_space<vmem>>, vector<32x256xbf16>
    %cst = arith.constant dense<0.000000e+00> : vector<512x256xf32>
    %2 = tpu.matmul %0, %1, %cst {dimension_numbers = #tpu.dot_dimension_numbers<[1], [0], [0], [1], [0, 0, 1, 1], [], []>} : vector<512x32xbf16>, vector<32x256xbf16>, vector<512x256xf32> -> vector<512x256xf32>
    %c0_3 = arith.constant 0 : index
    %c0_4 = arith.constant 0 : index
    %3 = vector.load %arg3[%c0_3, %c0_4] : memref<512x256xf32, #tpu.memory_space<vmem>>, vector<512x256xf32>
    tpu.vector_store %arg3[%c0_3, %c0_4], %2 {strides = array<i32>} : memref<512x256xf32, #tpu.memory_space<vmem>>, vector<512x256xf32>,
    return
  }
  func.func @transform_0(%arg0: i32) -> (i32, i32) {
    %c0_i32 = arith.constant 0 : i32
    %c0_i32_0 = arith.constant 0 : i32
    return %arg0, %c0_i32 : i32, i32
  }
  func.func @transform_1(%arg0: i32) -> (i32, i32) {
    %c0_i32 = arith.constant 0 : i32
    %c0_i32_0 = arith.constant 0 : i32
    %c0_i32_1 = arith.constant 0 : i32
    return %c0_i32, %c0_i32_0 : i32, i32
  }
  func.func @transform_2(%arg0: i32) -> (i32, i32) {
    %c0_i32 = arith.constant 0 : i32
    %c0_i32_0 = arith.constant 0 : i32
    return %arg0, %c0_i32 : i32, i32
  }
}

module attributes {stable_mosaic.version = 11 : i64} {
  func.func @_bn_relu_kernel(%arg0: memref<256x128xf32, #tpu.memory_space<vmem>>, %arg1: memref<1x128xf32, #tpu.memory_space<vmem>>, %arg2: memref<1x128xf32, #tpu.memory_space<vmem>>, %arg3: memref<256x128xbf16, #tpu.memory_space<vmem>>) attributes {dimension_semantics = [], scalar_prefetch = 0 : i64, scratch_operands = 0 : i64, tpu.core_type = #tpu.core_type<tc>} {
    %c0 = arith.constant 0 : index
    %c0_0 = arith.constant 0 : index
    %0 = vector.load %arg0[%c0, %c0_0] : memref<256x128xf32, #tpu.memory_space<vmem>>, vector<256x128xf32>
    %cst = arith.constant dense<0.000000e+00> : vector<128xf32>
    %1 = vector.multi_reduction <add>, %0, %cst [0] : vector<256x128xf32> to vector<128xf32>
    %2 = vector.shape_cast %1 : vector<128xf32> to vector<1x128xf32>
    %c16_i32 = arith.constant 16 : i32
    %3 = tpu.dynamic_rotate %2 by %c16_i32 dim 1 : vector<1x128xf32>, i32 -> vector<1x128xf32>
    %4 = arith.addf %2, %3 : vector<1x128xf32>
    %c32_i32 = arith.constant 32 : i32
    %5 = tpu.dynamic_rotate %2 by %c32_i32 dim 1 : vector<1x128xf32>, i32 -> vector<1x128xf32>
    %6 = arith.addf %4, %5 : vector<1x128xf32>
    %c48_i32 = arith.constant 48 : i32
    %7 = tpu.dynamic_rotate %2 by %c48_i32 dim 1 : vector<1x128xf32>, i32 -> vector<1x128xf32>
    %8 = arith.addf %6, %7 : vector<1x128xf32>
    %c64_i32 = arith.constant 64 : i32
    %9 = tpu.dynamic_rotate %2 by %c64_i32 dim 1 : vector<1x128xf32>, i32 -> vector<1x128xf32>
    %10 = arith.addf %8, %9 : vector<1x128xf32>
    %c80_i32 = arith.constant 80 : i32
    %11 = tpu.dynamic_rotate %2 by %c80_i32 dim 1 : vector<1x128xf32>, i32 -> vector<1x128xf32>
    %12 = arith.addf %10, %11 : vector<1x128xf32>
    %c96_i32 = arith.constant 96 : i32
    %13 = tpu.dynamic_rotate %2 by %c96_i32 dim 1 : vector<1x128xf32>, i32 -> vector<1x128xf32>
    %14 = arith.addf %12, %13 : vector<1x128xf32>
    %c112_i32 = arith.constant 112 : i32
    %15 = tpu.dynamic_rotate %2 by %c112_i32 dim 1 : vector<1x128xf32>, i32 -> vector<1x128xf32>
    %16 = arith.addf %14, %15 : vector<1x128xf32>
    %cst_1 = arith.constant 4.8828125E-4 : f32
    %17 = vector.broadcast %cst_1 : f32 to vector<1x128xf32>
    %18 = arith.mulf %16, %17 : vector<1x128xf32>
    %19 = vector.broadcast %18 : vector<1x128xf32> to vector<256x128xf32>
    %20 = arith.subf %0, %19 : vector<256x128xf32>
    %21 = arith.mulf %20, %20 : vector<256x128xf32>
    %cst_2 = arith.constant dense<0.000000e+00> : vector<128xf32>
    %22 = vector.multi_reduction <add>, %21, %cst_2 [0] : vector<256x128xf32> to vector<128xf32>
    %23 = vector.shape_cast %22 : vector<128xf32> to vector<1x128xf32>
    %c16_i32_3 = arith.constant 16 : i32
    %24 = tpu.dynamic_rotate %23 by %c16_i32_3 dim 1 : vector<1x128xf32>, i32 -> vector<1x128xf32>
    %25 = arith.addf %23, %24 : vector<1x128xf32>
    %c32_i32_4 = arith.constant 32 : i32
    %26 = tpu.dynamic_rotate %23 by %c32_i32_4 dim 1 : vector<1x128xf32>, i32 -> vector<1x128xf32>
    %27 = arith.addf %25, %26 : vector<1x128xf32>
    %c48_i32_5 = arith.constant 48 : i32
    %28 = tpu.dynamic_rotate %23 by %c48_i32_5 dim 1 : vector<1x128xf32>, i32 -> vector<1x128xf32>
    %29 = arith.addf %27, %28 : vector<1x128xf32>
    %c64_i32_6 = arith.constant 64 : i32
    %30 = tpu.dynamic_rotate %23 by %c64_i32_6 dim 1 : vector<1x128xf32>, i32 -> vector<1x128xf32>
    %31 = arith.addf %29, %30 : vector<1x128xf32>
    %c80_i32_7 = arith.constant 80 : i32
    %32 = tpu.dynamic_rotate %23 by %c80_i32_7 dim 1 : vector<1x128xf32>, i32 -> vector<1x128xf32>
    %33 = arith.addf %31, %32 : vector<1x128xf32>
    %c96_i32_8 = arith.constant 96 : i32
    %34 = tpu.dynamic_rotate %23 by %c96_i32_8 dim 1 : vector<1x128xf32>, i32 -> vector<1x128xf32>
    %35 = arith.addf %33, %34 : vector<1x128xf32>
    %c112_i32_9 = arith.constant 112 : i32
    %36 = tpu.dynamic_rotate %23 by %c112_i32_9 dim 1 : vector<1x128xf32>, i32 -> vector<1x128xf32>
    %37 = arith.addf %35, %36 : vector<1x128xf32>
    %cst_10 = arith.constant 4.8828125E-4 : f32
    %38 = vector.broadcast %cst_10 : f32 to vector<1x128xf32>
    %39 = arith.mulf %37, %38 : vector<1x128xf32>
    %cst_11 = arith.constant 9.99999974E-6 : f32
    %40 = vector.broadcast %cst_11 : f32 to vector<1x128xf32>
    %41 = arith.addf %39, %40 : vector<1x128xf32>
    %42 = math.rsqrt %41 : vector<1x128xf32>
    %c0_12 = arith.constant 0 : index
    %c0_13 = arith.constant 0 : index
    %43 = vector.load %arg1[%c0_12, %c0_13] : memref<1x128xf32, #tpu.memory_space<vmem>>, vector<1x128xf32>
    %44 = arith.mulf %42, %43 : vector<1x128xf32>
    %45 = vector.broadcast %44 : vector<1x128xf32> to vector<256x128xf32>
    %46 = arith.mulf %20, %45 : vector<256x128xf32>
    %c0_14 = arith.constant 0 : index
    %c0_15 = arith.constant 0 : index
    %47 = vector.load %arg2[%c0_14, %c0_15] : memref<1x128xf32, #tpu.memory_space<vmem>>, vector<1x128xf32>
    %48 = vector.broadcast %47 : vector<1x128xf32> to vector<256x128xf32>
    %49 = arith.addf %46, %48 : vector<256x128xf32>
    %cst_16 = arith.constant 0.000000e+00 : f32
    %50 = vector.broadcast %cst_16 : f32 to vector<256x128xf32>
    %51 = arith.maximumf %49, %50 : vector<256x128xf32>
    %52 = arith.truncf %51 : vector<256x128xf32> to vector<256x128xbf16>
    %c0_17 = arith.constant 0 : index
    %c0_18 = arith.constant 0 : index
    %53 = vector.load %arg3[%c0_17, %c0_18] : memref<256x128xbf16, #tpu.memory_space<vmem>>, vector<256x128xbf16>
    tpu.vector_store %arg3[%c0_17, %c0_18], %52 {strides = array<i32>} : memref<256x128xbf16, #tpu.memory_space<vmem>>, vector<256x128xbf16>,
    return
  }
}

module attributes {stable_mosaic.version = 11 : i64} {
  func.func @_matmul_kernel(%arg0: i32, %arg1: memref<2048x16xbf16, #tpu.memory_space<vmem>>, %arg2: memref<16x16xbf16, #tpu.memory_space<vmem>>, %arg3: memref<2048x16xf32, #tpu.memory_space<vmem>>) attributes {dimension_semantics = [#tpu.dimension_semantics<parallel>], iteration_bounds = array<i64: 1>, scalar_prefetch = 0 : i64, scratch_operands = 0 : i64, tpu.core_type = #tpu.core_type<tc>, window_params = [{transform_indices = @transform_0, window_bounds = array<i64: 2048, 16>}, {pipeline_mode = #tpu.pipeline_mode<synchronous>, transform_indices = @transform_1, window_bounds = array<i64: 16, 16>}, {transform_indices = @transform_2, window_bounds = array<i64: 2048, 16>}]} {
    %c0 = arith.constant 0 : index
    %c0_0 = arith.constant 0 : index
    %0 = vector.load %arg1[%c0, %c0_0] : memref<2048x16xbf16, #tpu.memory_space<vmem>>, vector<2048x16xbf16>
    %c0_1 = arith.constant 0 : index
    %c0_2 = arith.constant 0 : index
    %1 = vector.load %arg2[%c0_1, %c0_2] : memref<16x16xbf16, #tpu.memory_space<vmem>>, vector<16x16xbf16>
    %cst = arith.constant dense<0.000000e+00> : vector<2048x16xf32>
    %2 = tpu.matmul %0, %1, %cst {dimension_numbers = #tpu.dot_dimension_numbers<[1], [0], [0], [1], [0, 0, 1, 1], [], []>} : vector<2048x16xbf16>, vector<16x16xbf16>, vector<2048x16xf32> -> vector<2048x16xf32>
    %c0_3 = arith.constant 0 : index
    %c0_4 = arith.constant 0 : index
    %3 = vector.load %arg3[%c0_3, %c0_4] : memref<2048x16xf32, #tpu.memory_space<vmem>>, vector<2048x16xf32>
    tpu.vector_store %arg3[%c0_3, %c0_4], %2 {strides = array<i32>} : memref<2048x16xf32, #tpu.memory_space<vmem>>, vector<2048x16xf32>,
    return
  }
  func.func @transform_0(%arg0: i32) -> (i32, i32) {
    %c0_i32 = arith.constant 0 : i32
    %c0_i32_0 = arith.constant 0 : i32
    return %arg0, %c0_i32 : i32, i32
  }
  func.func @transform_1(%arg0: i32) -> (i32, i32) {
    %c0_i32 = arith.constant 0 : i32
    %c0_i32_0 = arith.constant 0 : i32
    %c0_i32_1 = arith.constant 0 : i32
    return %c0_i32, %c0_i32_0 : i32, i32
  }
  func.func @transform_2(%arg0: i32) -> (i32, i32) {
    %c0_i32 = arith.constant 0 : i32
    %c0_i32_0 = arith.constant 0 : i32
    return %arg0, %c0_i32 : i32, i32
  }
}

module attributes {stable_mosaic.version = 11 : i64} {
  func.func @_bias_tanh_kernel(%arg0: memref<64x128xf32, #tpu.memory_space<vmem>>, %arg1: memref<1x128xf32, #tpu.memory_space<vmem>>, %arg2: memref<64x128xf32, #tpu.memory_space<vmem>>) attributes {dimension_semantics = [], scalar_prefetch = 0 : i64, scratch_operands = 0 : i64, tpu.core_type = #tpu.core_type<tc>} {
    %c0 = arith.constant 0 : index
    %c0_0 = arith.constant 0 : index
    %0 = vector.load %arg0[%c0, %c0_0] : memref<64x128xf32, #tpu.memory_space<vmem>>, vector<64x128xf32>
    %c0_1 = arith.constant 0 : index
    %c0_2 = arith.constant 0 : index
    %1 = vector.load %arg1[%c0_1, %c0_2] : memref<1x128xf32, #tpu.memory_space<vmem>>, vector<1x128xf32>
    %2 = vector.broadcast %1 : vector<1x128xf32> to vector<64x128xf32>
    %3 = arith.addf %0, %2 : vector<64x128xf32>
    %4 = math.tanh %3 : vector<64x128xf32>
    %c0_3 = arith.constant 0 : index
    %c0_4 = arith.constant 0 : index
    %5 = vector.load %arg2[%c0_3, %c0_4] : memref<64x128xf32, #tpu.memory_space<vmem>>, vector<64x128xf32>
    tpu.vector_store %arg2[%c0_3, %c0_4], %4 {strides = array<i32>} : memref<64x128xf32, #tpu.memory_space<vmem>>, vector<64x128xf32>,
    return
  }
}

</mosaic_0001>

<bundles_post_ra>
// kernel: generator_forward.10
= control target key start
LH: loop header
LB: loop body
LE: loop exit
PB: predicated region body
PF: predicated region fallthrough
CT: control target
= control target key end

     0   :  { %7 = vsyncpa [#allocation3], 0  ;;  %s626_s9 = smov [#allocation2]   ;;  %s703_s0 = inlined_call_operand.vmem [shape: bf16[2,8], index: 0, kind: input, shape index: {}]   ;;  %s704_s1 = inlined_call_operand.hbm [shape: bf16[8,2048], index: 1, kind: input, shape index: {}]   ;;  %s705_s2 = inlined_call_operand.vmem [shape: f32[2,2048], index: 2, kind: output, shape index: {}]  }
   0x1   :  { %s16_s10 = sshll.u32 %s626_s9, 4  ;;  %s602_s13 = scalar_lea.hbm %s704_s1, 1024  ;;  %s17_s10 = int_to_ptr.vmem [resolvable:$true] %s16_s10 }
   0x2   :  { %p603_p0 = scmp.ne.s32.totalorder %s704_s1, %s602_s13  ;;  %p606_p1 = scmp.lt.u32.totalorder %s602_s13, %s704_s1 }
   0x4   :  { %p608_p2 = pnand %p606_p1, %p603_p0 }
   0x6   :  { %611 = shalt.err (!%p608_p2)
}
   0x7   :  { %s612_s18 = scalar_lea.vmem %s17_s10, 1024  ;;  %p617_p4 = scmp.lt.s32.totalorder %s17_s10, %s17_s10 }
   0x8   :  { %p613_p3 = scmp.ne.s32.totalorder %s17_s10, %s612_s18  ;;  %p618_p5 = scmp.lt.s32.totalorder %s612_s18, %s612_s18 }
   0xa   :  { %p619_p6 = por %p618_p5, %p617_p4 }
   0xc   :  { %p620_p7 = pnand %p619_p6, %p613_p3 }
   0xe   :  { %623 = shalt.err (!%p620_p7)
}
   0xf   :  { %19 = dma.hbm_to_vmem [thread:$0]  %s704_s1, 1024, %s17_s10, [#allocation3]  }
  0x10   :  { %624 = dma.done.wait [#allocation3], 1024  }
  0x11   :  { %625 = vsyncadd [#allocation3], 4294966272  ;;  %v627_v0 = vmov 0   ;;  %v25_v1 = vld [vmem:[#allocation2] sm:$0xff]  ;;  %vm77_vm0 = vcmask 1043456   ;;  %v26_v2 = vld [vmem:[#allocation2 + $0x8] sm:$0xff]  ;;  %v475_v36 = vlaneseq }
  0x12   :  { %158 = vmatprep.mubr.bf16.mxu0 %v627_v0  ;;  %199 = vmatprep.mubr.bf16.mxu1 %v627_v0  ;;  %v552_v3 = vcombine.high %v25_v1, %v25_v1  ;;  %v554_v4 = vcombine.high %v26_v2, %v26_v2  ;;  %v551_v5 = vcombine.low %v25_v1, %v25_v1  ;;  %v27_v7 = vld [vmem:[#allocation2 + $0x10] sm:$0xff]  ;;  %v28_v8 = vld [vmem:[#allocation2 + $0x18] sm:$0xff]  ;;  %v29_v15 = vld [vmem:[#allocation2 + $0x20] sm:$0xff]  ;;  %vm73_vm1 = vcmask 64512  }
  0x13   :  { %v553_v6 = vcombine.low %v26_v2, %v26_v2  ;;  %v556_v9 = vcombine.high %v27_v7, %v27_v7  ;;  %v558_v10 = vcombine.high %v28_v8, %v28_v8  ;;  %v555_v11 = vcombine.low %v27_v7, %v27_v7  ;;  %v30_v16 = vld [vmem:[#allocation2 + $0x28] sm:$0xff]  ;;  %v24_v17 = vld [vmem:[%s703_s0] sm:$0x1]  ;;  %v31_v24 = vld [vmem:[#allocation2 + $0x30] sm:$0xff] }
  0x14   :  { %v557_v12 = vcombine.low %v28_v8, %v28_v8  ;;  %567 = vmatprep.subr.msk.bf16.mxu0 %vm77_vm0, %v552_v3  ;;  %569 = vmatprep.subr.msk.bf16.mxu1 %vm77_vm0, %v554_v4  ;;  %v79_v13 = vsel %vm77_vm0, %v551_v5, 0  ;;  %v560_v20 = vcombine.high %v29_v15, %v29_v15  ;;  %v562_v21 = vcombine.high %v30_v16, %v30_v16  ;;  %v32_v25 = vld [vmem:[#allocation2 + $0x38] sm:$0xff] }
  0x15   :  { %v85_v14 = vsel %vm77_vm0, %v553_v6, 0  ;;  %127 = vmatpush1.bf16.msra.mxu0 %v79_v13  ;;  %v91_v18 = vsel %vm77_vm0, %v555_v11, 0  ;;  %v559_v22 = vcombine.low %v29_v15, %v29_v15  ;;  %v561_v23 = vcombine.low %v30_v16, %v30_v16 }
  0x16   :  { %168 = vmatpush1.bf16.msra.mxu1 %v85_v14  ;;  %571 = vmatprep.subr.msk.bf16.mxu0 %vm77_vm0, %v556_v9  ;;  %v97_v19 = vsel %vm77_vm0, %v557_v12, 0  ;;  %v564_v28 = vcombine.high %v31_v24, %v31_v24  ;;  %v566_v29 = vcombine.high %v32_v25, %v32_v25  ;;  %v563_v30 = vcombine.low %v31_v24, %v31_v24 }
  0x17   :  { %573 = vmatprep.subr.msk.bf16.mxu1 %vm77_vm0, %v558_v10  ;;  %v103_v26 = vsel %vm77_vm0, %v559_v22, 0  ;;  %v109_v27 = vsel %vm77_vm0, %v561_v23, 0  ;;  %v565_v31 = vcombine.low %v32_v25, %v32_v25  ;;  %v628_v34 = vmov 1983009808  }
  0x18   :  { %568 = vmatmul.mubr.msk.bf16.vlgmr.msra.gmra.mrb[0].mxu0 %vm73_vm1, %v24_v17  ;;  %v115_v32 = vsel %vm77_vm0, %v563_v30, 0  ;;  %v473_v35 = vunpack.c.l.s4 %v628_v34  ;;  %v476_v38 = vshrl.u32 %v475_v36, 7 }
  0x19   :  { %570 = vmatmul.mubr.msk.bf16.vlgmr.msra.gmra.mrb[0].mxu1 %vm73_vm1, %v24_v17  ;;  %209 = vmatpush1.bf16.msra.mxu0 %v91_v18  ;;  %v121_v33 = vsel %vm77_vm0, %v565_v31, 0 }
  0x1a   :  { %250 = vmatpush1.bf16.msra.mxu1 %v97_v19  ;;  %240 = vmatprep.mubr.bf16.mxu0 %v627_v0  ;;  %v474_v37 = vunpack.c.0.s8 %v473_v35 }
  0x1b   :  { %281 = vmatprep.mubr.bf16.mxu1 %v627_v0  ;;  %575 = vmatprep.subr.msk.bf16.mxu0 %vm77_vm0, %v560_v20 }
  0x1c   :  { %577 = vmatprep.subr.msk.bf16.mxu1 %vm77_vm0, %v562_v21  ;;  %v477_v41 = vsub.s32 %v474_v37, %v476_v38 }
  0x20   :  { %572 = vmatmul.mubr.msk.bf16.vlgmr.msra.gmra.mrb[4].mxu0 %vm73_vm1, %v24_v17 }
  0x21   :  { %574 = vmatmul.mubr.msk.bf16.vlgmr.msra.gmra.mrb[4].mxu1 %vm73_vm1, %v24_v17  ;;  %291 = vmatpush1.bf16.msra.mxu0 %v103_v26 }
  0x22   :  { %332 = vmatpush1.bf16.msra.mxu1 %v109_v27  ;;  %322 = vmatprep.mubr.bf16.mxu0 %v627_v0 }
  0x23   :  { %363 = vmatprep.mubr.bf16.mxu1 %v627_v0  ;;  %579 = vmatprep.subr.msk.bf16.mxu0 %vm77_vm0, %v564_v28 }
  0x24   :  { %581 = vmatprep.subr.msk.bf16.mxu1 %vm77_vm0, %v566_v29 }
  0x28   :  { %576 = vmatmul.mubr.msk.bf16.vlgmr.msra.gmra.mrb[8].mxu0 %vm73_vm1, %v24_v17 }
  0x29   :  { %578 = vmatmul.mubr.msk.bf16.vlgmr.msra.gmra.mrb[8].mxu1 %vm73_vm1, %v24_v17  ;;  %373 = vmatpush1.bf16.msra.mxu0 %v115_v32 }
  0x2a   :  { %414 = vmatpush1.bf16.msra.mxu1 %v121_v33  ;;  %404 = vmatprep.mubr.bf16.mxu0 %v627_v0 }
  0x2b   :  { %445 = vmatprep.mubr.bf16.mxu1 %v627_v0 }
  0x30   :  { %580 = vmatmul.mubr.msk.bf16.vlgmr.msra.gmra.mrb[12].mxu0 %vm73_vm1, %v24_v17 }
  0x31   :  { %582 = vmatmul.mubr.msk.bf16.vlgmr.msra.gmra.mrb[12].mxu1 %vm73_vm1, %v24_v17 }
  0xeb   :  { %v160_v39 = vpop.f32.mrb[0].mxu0 }
  0xec   :  { %v201_v40 = vpop.f32.mrb[0].mxu1  ;;  %v162_v42 = vpop.f32.mrb[1].mxu0 }
  0xed   :  { %v203_v43 = vpop.f32.mrb[1].mxu1  ;;  %v470_v44 = vcombine.low %v160_v39, %v162_v42  ;;  %v164_v46 = vpop.f32.mrb[2].mxu0 }
  0xee   :  { %v471_v45 = vcombine.low %v201_v40, %v203_v43  ;;  %v205_v47 = vpop.f32.mrb[2].mxu1  ;;  %v165_v48 = vpop.f32.mrb[3].mxu0 }
  0xef   :  { %v206_v49 = vpop.f32.mrb[3].mxu1  ;;  %v478_v50 = vrot.slane %v470_v44, %v477_v41 }
  0xf0   :  { %v485_v51 = vrot.slane %v471_v45, %v477_v41 }
  0xf2   :  { %v486_v52 = vcombine.low %v478_v50, %v485_v51 }
  0xf3   :  { %v242_v53 = vpop.f32.mrb[4].mxu0 }
  0xf4   :  { %542 = vst [vmem:[%s705_s2] sm:$0xff] %v486_v52  ;;  %v283_v54 = vpop.f32.mrb[4].mxu1  ;;  %v244_v55 = vpop.f32.mrb[5].mxu0 }
  0xf5   :  { %v285_v56 = vpop.f32.mrb[5].mxu1  ;;  %v487_v57 = vcombine.low %v242_v53, %v244_v55  ;;  %v246_v59 = vpop.f32.mrb[6].mxu0 }
  0xf6   :  { %v488_v58 = vcombine.low %v283_v54, %v285_v56  ;;  %v287_v60 = vpop.f32.mrb[6].mxu1  ;;  %v247_v61 = vpop.f32.mrb[7].mxu0 }
  0xf7   :  { %v288_v62 = vpop.f32.mrb[7].mxu1  ;;  %v495_v63 = vrot.slane %v487_v57, %v477_v41 }
  0xf8   :  { %v502_v0 = vrot.slane %v488_v58, %v477_v41 }
  0xfa   :  { %v503_v1 = vcombine.low %v495_v63, %v502_v0 }
  0xfb   :  { %v324_v2 = vpop.f32.mrb[8].mxu0 }
  0xfc   :  { %543 = vst [vmem:[%s705_s2 + $0x8] sm:$0xff] %v503_v1  ;;  %v365_v3 = vpop.f32.mrb[8].mxu1  ;;  %v326_v4 = vpop.f32.mrb[9].mxu0 }
  0xfd   :  { %v367_v5 = vpop.f32.mrb[9].mxu1  ;;  %v504_v6 = vcombine.low %v324_v2, %v326_v4  ;;  %v328_v8 = vpop.f32.mrb[10].mxu0 }
  0xfe   :  { %v505_v7 = vcombine.low %v365_v3, %v367_v5  ;;  %v369_v9 = vpop.f32.mrb[10].mxu1  ;;  %v329_v10 = vpop.f32.mrb[11].mxu0 }
  0xff   :  { %v370_v11 = vpop.f32.mrb[11].mxu1  ;;  %v512_v12 = vrot.slane %v504_v6, %v477_v41 }
 0x100   :  { %v519_v13 = vrot.slane %v505_v7, %v477_v41 }
 0x102   :  { %v520_v14 = vcombine.low %v512_v12, %v519_v13 }
 0x103   :  { %v406_v15 = vpop.f32.mrb[12].mxu0 }
 0x104   :  { %544 = vst [vmem:[%s705_s2 + $0x10] sm:$0xff] %v520_v14  ;;  %v447_v16 = vpop.f32.mrb[12].mxu1  ;;  %v408_v17 = vpop.f32.mrb[13].mxu0 }
 0x105   :  { %v449_v18 = vpop.f32.mrb[13].mxu1  ;;  %v521_v19 = vcombine.low %v406_v15, %v408_v17  ;;  %v410_v21 = vpop.f32.mrb[14].mxu0 }
 0x106   :  { %v522_v20 = vcombine.low %v447_v16, %v449_v18  ;;  %v451_v22 = vpop.f32.mrb[14].mxu1  ;;  %v411_v23 = vpop.f32.mrb[15].mxu0 }
 0x107   :  { %v452_v24 = vpop.f32.mrb[15].mxu1  ;;  %v529_v25 = vrot.slane %v521_v19, %v477_v41 }
 0x108   :  { %v536_v26 = vrot.slane %v522_v20, %v477_v41 }
 0x10a   :  { %v537_v27 = vcombine.low %v529_v25, %v536_v26 }
 0x10c   :  { %545 = vst [vmem:[%s705_s2 + $0x18] sm:$0xff] %v537_v27 }
 0x10d   :  { %550 = vsyncpa [#allocation3], 1 }

// kernel: generator_forward.11
= control target key start
LH: loop header
LB: loop body
LE: loop exit
PB: predicated region body
PF: predicated region fallthrough
CT: control target
= control target key end

     0   :  { %8 = vsyncpa [#allocation3], 0  ;;  %s259_s0 = inlined_call_operand.vmem [shape: f32[32,128], index: 0, kind: input, shape index: {}]   ;;  %s260_s1 = inlined_call_operand.hbm [shape: f32[1,128], index: 1, kind: input, shape index: {}]   ;;  %s261_s2 = inlined_call_operand.hbm [shape: f32[1,128], index: 2, kind: input, shape index: {}]   ;;  %s262_s3 = inlined_call_operand.vmem [shape: bf16[32,128], index: 3, kind: output, shape index: {}]  }
   0x1   :  { %9 = vsyncpa [#allocation5], 0  ;;  %s195_s12 = smov [#allocation2]   ;;  %s196_s14 = smov [#allocation4]  }
   0x2   :  { %s18_s13 = sshll.u32 %s195_s12, 4  ;;  %s28_s15 = sshll.u32 %s196_s14, 4  ;;  %s19_s13 = int_to_ptr.vmem [resolvable:$true] %s18_s13  ;;  %s29_s15 = int_to_ptr.vmem [resolvable:$true] %s28_s15 }
   0x3   :  { %s147_s18 = scalar_lea.hbm %s260_s1, 16 }
   0x4   :  { %p148_p0 = scmp.ne.s32.totalorder %s260_s1, %s147_s18  ;;  %p151_p1 = scmp.lt.u32.totalorder %s147_s18, %s260_s1 }
   0x6   :  { %p153_p2 = pnand %p151_p1, %p148_p0 }
   0x8   :  { %156 = shalt.err (!%p153_p2)
}
   0x9   :  { %s157_s23 = scalar_lea.vmem %s19_s13, 16  ;;  %s161_s24 = scalar_lea.vmem %s19_s13, 32 }
   0xa   :  { %p158_p3 = scmp.ne.s32.totalorder %s19_s13, %s157_s23  ;;  %p162_p4 = scmp.lt.s32.totalorder %s19_s13, %s19_s13 }
   0xb   :  { %p163_p5 = scmp.lt.s32.totalorder %s161_s24, %s157_s23 }
   0xd   :  { %p164_p6 = por %p163_p5, %p162_p4 }
   0xf   :  { %p165_p7 = pnand %p164_p6, %p158_p3 }
  0x11   :  { %168 = shalt.err (!%p165_p7)
}
  0x12   :  { %21 = dma.hbm_to_vmem [thread:$0]  %s260_s1, 16, %s19_s13, [#allocation3]  }
  0x13   :  { %s169_s29 = scalar_lea.hbm %s261_s2, 16 }
  0x14   :  { %p170_p8 = scmp.ne.s32.totalorder %s261_s2, %s169_s29  ;;  %p173_p9 = scmp.lt.u32.totalorder %s169_s29, %s261_s2 }
  0x16   :  { %p175_p10 = pnand %p173_p9, %p170_p8 }
  0x18   :  { %178 = shalt.err (!%p175_p10)
}
  0x19   :  { %s179_s7 = scalar_lea.vmem %s29_s15, 16  ;;  %s183_s8 = scalar_lea.vmem %s29_s15, 32 }
  0x1a   :  { %p180_p11 = scmp.ne.s32.totalorder %s29_s15, %s179_s7  ;;  %p184_p12 = scmp.lt.s32.totalorder %s29_s15, %s29_s15 }
  0x1b   :  { %p185_p13 = scmp.lt.s32.totalorder %s183_s8, %s179_s7 }
  0x1d   :  { %p186_p0 = por %p185_p13, %p184_p12 }
  0x1f   :  { %p187_p1 = pnand %p186_p0, %p180_p11 }
  0x21   :  { %190 = shalt.err (!%p187_p1)
}
  0x22   :  { %31 = dma.hbm_to_vmem [thread:$0]  %s261_s2, 16, %s29_s15, [#allocation5]  }
  0x23   :  { %191 = dma.done.wait [#allocation3], 16  }
  0x24   :  { %192 = vsyncadd [#allocation3], 4294967280 }
  0x25   :  { %193 = dma.done.wait [#allocation5], 16  }
  0x26   :  { %194 = vsyncadd [#allocation5], 4294967280  ;;  %v38_v0 = vld [vmem:[%s259_s0] sm:$0xff]  ;;  %v39_v1 = vld [vmem:[%s259_s0 + $0x8] sm:$0xff]  ;;  %v74_v33 = vlaneseq }
  0x27   :  { %v40_v2 = vld [vmem:[%s259_s0 + $0x10] sm:$0xff]  ;;  %v42_v3 = vadd.f32 %v39_v1, %v38_v0  ;;  %v41_v4 = vld [vmem:[%s259_s0 + $0x18] sm:$0xff]  ;;  %v72_v35 = vld [vmem:[#allocation2] sm:$0x1] }
  0x28   :  { %v75_v34 = vshrl.u32 %v74_v33, 7  ;;  %v123_v40 = vld [vmem:[#allocation4] ss:$0 sm:$0xff] }
  0x29   :  { %v43_v5 = vadd.f32 %v42_v3, %v40_v2 }
  0x2a   :  { %v76_v36 = vsub.s32 0, %v75_v34 }
  0x2b   :  { %v44_v6 = vadd.f32 %v43_v5, %v41_v4 }
  0x2d   :  { %v45_v7 = vrot.slane %v44_v6, 4 }
  0x2f   :  { %v46_v8 = vadd.f32 %v45_v7, %v44_v6 }
  0x31   :  { %v47_v9 = vrot.slane %v46_v8, 2 }
  0x33   :  { %v48_v10 = vadd.f32 %v47_v9, %v46_v8 }
  0x35   :  { %v49_v11 = vrot.slane %v48_v10, 1 }
  0x37   :  { %v50_v12 = vadd.f32 %v49_v11, %v48_v10 }
  0x39   :  { %v51_v13 = vmul.f32 0.03125, %v50_v12 }
  0x3b   :  { %v52_v14 = vsub.f32 %v38_v0, %v51_v13  ;;  %v53_v15 = vsub.f32 %v39_v1, %v51_v13  ;;  %v54_v16 = vsub.f32 %v40_v2, %v51_v13  ;;  %v55_v17 = vsub.f32 %v41_v4, %v51_v13 }
  0x3d   :  { %v56_v18 = vmul.f32 %v52_v14, %v52_v14  ;;  %v57_v19 = vmul.f32 %v53_v15, %v53_v15  ;;  %v58_v20 = vmul.f32 %v54_v16, %v54_v16  ;;  %v59_v21 = vmul.f32 %v55_v17, %v55_v17 }
  0x3f   :  { %v60_v22 = vadd.f32 %v57_v19, %v56_v18 }
  0x41   :  { %v61_v23 = vadd.f32 %v60_v22, %v58_v20 }
  0x43   :  { %v62_v24 = vadd.f32 %v61_v23, %v59_v21 }
  0x45   :  { %v63_v25 = vrot.slane %v62_v24, 4 }
  0x47   :  { %v64_v26 = vadd.f32 %v63_v25, %v62_v24 }
  0x49   :  { %v65_v27 = vrot.slane %v64_v26, 2 }
  0x4b   :  { %v66_v28 = vadd.f32 %v65_v27, %v64_v26 }
  0x4d   :  { %v67_v29 = vrot.slane %v66_v28, 1 }
  0x4f   :  { %v68_v30 = vadd.f32 %v67_v29, %v66_v28 }
  0x51   :  { %v69_v31 = vmul.f32 0.03125, %v68_v30 }
  0x53   :  { %v70_v32 = vadd.f32 1e-05, %v69_v31 }
  0x55   :  { %145 = vrsqrt.f32 %v70_v32 }
  0x5f   :  { %v146_v37 = vpop.eup %145 }
  0x60   :  { %v73_v38 = vmul.f32 %v146_v37, %v72_v35 }
  0x62   :  { %v77_v39 = vrot.slane %v73_v38, %v76_v36 }
  0x64   :  { %v78_v41 = vmul.f32 %v77_v39, %v52_v14  ;;  %v79_v42 = vmul.f32 %v77_v39, %v53_v15  ;;  %v80_v43 = vmul.f32 %v77_v39, %v54_v16  ;;  %v81_v44 = vmul.f32 %v77_v39, %v55_v17 }
  0x66   :  { %v89_v45 = vadd.f32 %v123_v40, %v78_v41  ;;  %v90_v46 = vadd.f32 %v123_v40, %v79_v42  ;;  %v91_v47 = vadd.f32 %v123_v40, %v80_v43  ;;  %v92_v48 = vadd.f32 %v123_v40, %v81_v44 }
  0x68   :  { %v93_v49 = vmax.f32 %v89_v45, 0.0  ;;  %v94_v50 = vmax.f32 %v90_v46, 0.0  ;;  %v95_v51 = vmax.f32 %v91_v47, 0.0  ;;  %v96_v52 = vmax.f32 %v92_v48, 0.0 }
  0x6a   :  { %v135_v53 = vpack.c.bf16 %v94_v50, %v93_v49  ;;  %v140_v54 = vpack.c.bf16 %v96_v52, %v95_v51 }
  0x6c   :  { %136 = vst [vmem:[%s262_s3] sm:$0xff] %v135_v53   ;;  %142 = vst [vmem:[%s262_s3 + $0x8] sm:$0xff] %v140_v54  }
  0x6d   :  { %121 = vsyncpa [#allocation3], 1 }
  0x6e   :  { %122 = vsyncpa [#allocation5], 1 }

// kernel: tile.42
= control target key start
LH: loop header
LB: loop body
LE: loop exit
PB: predicated region body
PF: predicated region fallthrough
CT: control target
= control target key end

     0   :  { %s22_s0 = inlined_call_operand.vmem [shape: f32[64], index: 0, kind: input, shape index: {}]   ;;  %s23_s1 = inlined_call_operand.vmem [shape: f32[2,64], index: 1, kind: output, shape index: {}]  }
   0x1   :  { %v4_v0 = vld [vmem:[%s22_s0] ss:$0 sm:$0xff] }
   0x2   :  { %5 = vst [vmem:[%s23_s1] sm:$0x3] %v4_v0 }

// kernel: tile.43
= control target key start
LH: loop header
LB: loop body
LE: loop exit
PB: predicated region body
PF: predicated region fallthrough
CT: control target
= control target key end

     0   :  { %vm7_vm0 = vcmask 523264   ;;  %vm13_vm1 = vcmask 1048064   ;;  %s39_s0 = inlined_call_operand.vmem [shape: f32[2,64], index: 0, kind: input, shape index: {}]   ;;  %s40_s1 = inlined_call_operand.vmem [shape: f32[1,128], index: 1, kind: output, shape index: {}]  }
   0x1   :  { %v4_v0 = vld [vmem:[%s39_s0] sm:$0x3]  ;;  %s22_s0 = smov 64  }
   0x2   :  { %5 = vst [vmem:[#allocation1] sm:$0x3] %v4_v0 }
   0x9   :  { %v10_v1 = vld [vmem:[#allocation1 + $0x1] sm:$0x1]   ;;  %v6_v2 = vld [vmem:[#allocation1] sm:$0x1]  }
   0xa   :  { %11 = vrot.lane.b32.xlu0 %v10_v1, %s22_s0  ;;  %8 = vst.msk [vmem:[#allocation0] sm:$0x1] %vm7_vm0, %v6_v2  }
  0x7c   :  { %v12_v3 = vpop.permute.xlu0 %11  }
  0x7d   :  { %14 = vst.msk [vmem:[#allocation0] sm:$0x1] %vm13_vm1, %v12_v3  }
  0x84   :  { %v18_v4 = vld [vmem:[#allocation0] sm:$0x1] }
  0x85   :  { %20 = vst [vmem:[%s40_s1] sm:$0x1] %v18_v4 }

// kernel: generator_forward.12
= control target key start
LH: loop header
LB: loop body
LE: loop exit
PB: predicated region body
PF: predicated region fallthrough
CT: control target
= control target key end

     0   :  { %7 = vsyncpa [#allocation3], 0  ;;  %s771_s9 = smov [#allocation2]   ;;  %s924_s0 = inlined_call_operand.vmem [shape: bf16[32,128], index: 0, kind: input, shape index: {}]   ;;  %s925_s1 = inlined_call_operand.hbm [shape: bf16[128,1024], index: 1, kind: input, shape index: {}]   ;;  %s926_s2 = inlined_call_operand.vmem [shape: f32[32,1024], index: 2, kind: output, shape index: {}]  }
   0x1   :  { %s15_s10 = sshll.u32 %s771_s9, 4  ;;  %s747_s13 = scalar_lea.hbm %s925_s1, 8192  ;;  %s16_s10 = int_to_ptr.vmem [resolvable:$true] %s15_s10 }
   0x2   :  { %p748_p0 = scmp.ne.s32.totalorder %s925_s1, %s747_s13  ;;  %p751_p1 = scmp.lt.u32.totalorder %s747_s13, %s925_s1 }
   0x4   :  { %p753_p2 = pnand %p751_p1, %p748_p0 }
   0x6   :  { %756 = shalt.err (!%p753_p2)
}
   0x7   :  { %s757_s18 = scalar_lea.vmem %s16_s10, 8192  ;;  %p762_p4 = scmp.lt.s32.totalorder %s16_s10, %s16_s10 }
   0x8   :  { %p758_p3 = scmp.ne.s32.totalorder %s16_s10, %s757_s18  ;;  %p763_p5 = scmp.lt.s32.totalorder %s757_s18, %s757_s18 }
   0xa   :  { %p764_p6 = por %p763_p5, %p762_p4 }
   0xc   :  { %p765_p7 = pnand %p764_p6, %p758_p3 }
   0xe   :  { %768 = shalt.err (!%p765_p7)
}
   0xf   :  { %s772_s19 = smov 512   ;;  %s773_s20 = smov 32  }
  0x10   :  { %21 = dma.hbm_to_vmem [thread:$0]  %s925_s1, 8192, %s16_s10, [#allocation3], %s772_s19, %s772_s19, %s773_s20  }
  0x11   :  { %769 = dma.done.wait [#allocation3], 8192  }
  0x12   :  { %770 = vsyncadd [#allocation3], 4294959104  ;;  %v774_v0 = vmov 0   ;;  %v30_v1 = vld [vmem:[#allocation2] sm:$0xff]  ;;  %v31_v3 = vld [vmem:[#allocation2 + $0x8] sm:$0xff] }
  0x13   :  { %458 = vmatprep.mubr.bf16.mxu0 %v774_v0  ;;  %511 = vmatprep.mubr.bf16.mxu1 %v774_v0  ;;  %v34_v2 = vld [vmem:[#allocation2 + $0x20] sm:$0xff]  ;;  %v35_v5 = vld [vmem:[#allocation2 + $0x28] sm:$0xff]  ;;  %v32_v63 = vld [vmem:[#allocation2 + $0x10] sm:$0xff] }
  0x14   :  { %v678_v4 = vcombine.high %v30_v1, %v34_v2  ;;  %v677_v6 = vcombine.low %v30_v1, %v34_v2  ;;  %v38_v7 = vld [vmem:[#allocation2 + $0x40] sm:$0xff]  ;;  %v680_v9 = vcombine.high %v31_v3, %v35_v5  ;;  %v679_v10 = vcombine.low %v31_v3, %v35_v5  ;;  %v39_v12 = vld [vmem:[#allocation2 + $0x48] sm:$0xff]  ;;  %v36_v1 = vld [vmem:[#allocation2 + $0x30] sm:$0xff] }
  0x15   :  { %v42_v8 = vld [vmem:[#allocation2 + $0x60] sm:$0xff]  ;;  %v43_v13 = vld [vmem:[#allocation2 + $0x68] sm:$0xff]  ;;  %v33_v2 = vld [vmem:[#allocation2 + $0x18] sm:$0xff] }
  0x16   :  { %v686_v11 = vcombine.high %v38_v7, %v42_v8  ;;  %v46_v14 = vld [vmem:[#allocation2 + $0x80] sm:$0xff]  ;;  %426 = vmatprep.subr.bf16.mxu0 %v678_v4  ;;  %v688_v15 = vcombine.high %v39_v12, %v43_v13  ;;  %v47_v17 = vld [vmem:[#allocation2 + $0x88] sm:$0xff]  ;;  %479 = vmatprep.subr.bf16.mxu1 %v680_v9  ;;  %v685_v19 = vcombine.low %v38_v7, %v42_v8  ;;  %v37_v3 = vld [vmem:[#allocation2 + $0x38] sm:$0xff] }
  0x17   :  { %v50_v16 = vld [vmem:[#allocation2 + $0xa0] sm:$0xff]  ;;  %v51_v18 = vld [vmem:[#allocation2 + $0xa8] sm:$0xff]  ;;  %427 = vmatpush1.bf16.msra.mxu0 %v677_v6  ;;  %480 = vmatpush1.bf16.msra.mxu1 %v679_v10  ;;  %v687_v20 = vcombine.low %v39_v12, %v43_v13  ;;  %v682_v6 = vcombine.high %v32_v63, %v36_v1  ;;  %v684_v7 = vcombine.high %v33_v2, %v37_v3  ;;  %v40_v8 = vld [vmem:[#allocation2 + $0x50] sm:$0xff] }
  0x18   :  { %428 = vmatprep.subr.bf16.mxu0 %v686_v11  ;;  %v694_v21 = vcombine.high %v46_v14, %v50_v16  ;;  %481 = vmatprep.subr.bf16.mxu1 %v688_v15  ;;  %v696_v22 = vcombine.high %v47_v17, %v51_v18  ;;  %v54_v23 = vld [vmem:[#allocation2 + $0xc0] sm:$0xff]  ;;  %v55_v25 = vld [vmem:[#allocation2 + $0xc8] sm:$0xff]  ;;  %v693_v27 = vcombine.low %v46_v14, %v50_v16  ;;  %v44_v9 = vld [vmem:[#allocation2 + $0x70] sm:$0xff] }
  0x19   :  { %v58_v24 = vld [vmem:[#allocation2 + $0xe0] sm:$0xff]  ;;  %v59_v26 = vld [vmem:[#allocation2 + $0xe8] sm:$0xff]  ;;  %v695_v28 = vcombine.low %v47_v17, %v51_v18  ;;  %v41_v11 = vld [vmem:[#allocation2 + $0x58] sm:$0xff]  ;;  %v681_v13 = vcombine.low %v32_v63, %v36_v1  ;;  %v683_v14 = vcombine.low %v33_v2, %v37_v3  ;;  %v690_v15 = vcombine.high %v40_v8, %v44_v9 }
  0x1a   :  { %v702_v29 = vcombine.high %v54_v23, %v58_v24  ;;  %v704_v30 = vcombine.high %v55_v25, %v59_v26  ;;  %v62_v31 = vld [vmem:[#allocation2 + $0x100] sm:$0xff]  ;;  %v63_v33 = vld [vmem:[#allocation2 + $0x108] sm:$0xff]  ;;  %v701_v35 = vcombine.low %v54_v23, %v58_v24  ;;  %v703_v36 = vcombine.low %v55_v25, %v59_v26  ;;  %v45_v12 = vld [vmem:[#allocation2 + $0x78] sm:$0xff] }
  0x1b   :  { %429 = vmatpush1.bf16.msra.mxu0 %v685_v19  ;;  %482 = vmatpush1.bf16.msra.mxu1 %v687_v20  ;;  %v66_v32 = vld [vmem:[#allocation2 + $0x120] sm:$0xff]  ;;  %v67_v34 = vld [vmem:[#allocation2 + $0x128] sm:$0xff]  ;;  %v692_v16 = vcombine.high %v41_v11, %v45_v12  ;;  %v48_v17 = vld [vmem:[#allocation2 + $0x90] sm:$0xff] }
  0x1c   :  { %430 = vmatprep.subr.bf16.mxu0 %v694_v21  ;;  %483 = vmatprep.subr.bf16.mxu1 %v696_v22  ;;  %v710_v37 = vcombine.high %v62_v31, %v66_v32  ;;  %v712_v38 = vcombine.high %v63_v33, %v67_v34  ;;  %v70_v39 = vld [vmem:[#allocation2 + $0x140] sm:$0xff]  ;;  %v71_v41 = vld [vmem:[#allocation2 + $0x148] sm:$0xff]  ;;  %v709_v43 = vcombine.low %v62_v31, %v66_v32  ;;  %v52_v18 = vld [vmem:[#allocation2 + $0xb0] sm:$0xff] }
  0x1d   :  { %v74_v40 = vld [vmem:[#allocation2 + $0x160] sm:$0xff]  ;;  %v75_v42 = vld [vmem:[#allocation2 + $0x168] sm:$0xff]  ;;  %v711_v44 = vcombine.low %v63_v33, %v67_v34  ;;  %v49_v19 = vld [vmem:[#allocation2 + $0x98] sm:$0xff]  ;;  %v689_v21 = vcombine.low %v40_v8, %v44_v9  ;;  %v691_v22 = vcombine.low %v41_v11, %v45_v12  ;;  %v698_v23 = vcombine.high %v48_v17, %v52_v18 }
  0x1e   :  { %v718_v45 = vcombine.high %v70_v39, %v74_v40  ;;  %v720_v46 = vcombine.high %v71_v41, %v75_v42  ;;  %v78_v47 = vld [vmem:[#allocation2 + $0x180] sm:$0xff]  ;;  %v79_v49 = vld [vmem:[#allocation2 + $0x188] sm:$0xff]  ;;  %v717_v51 = vcombine.low %v70_v39, %v74_v40  ;;  %v719_v52 = vcombine.low %v71_v41, %v75_v42  ;;  %v53_v20 = vld [vmem:[#allocation2 + $0xb8] sm:$0xff] }
  0x1f   :  { %431 = vmatpush1.bf16.msra.mxu0 %v693_v27  ;;  %484 = vmatpush1.bf16.msra.mxu1 %v695_v28  ;;  %v82_v48 = vld [vmem:[#allocation2 + $0x1a0] sm:$0xff]  ;;  %v83_v50 = vld [vmem:[#allocation2 + $0x1a8] sm:$0xff]  ;;  %v700_v24 = vcombine.high %v49_v19, %v53_v20  ;;  %v56_v25 = vld [vmem:[#allocation2 + $0xd0] sm:$0xff]  ;;  %v699_v31 = vcombine.low %v49_v19, %v53_v20 }
  0x20   :  { %432 = vmatprep.subr.bf16.mxu0 %v702_v29  ;;  %485 = vmatprep.subr.bf16.mxu1 %v704_v30  ;;  %v726_v53 = vcombine.high %v78_v47, %v82_v48  ;;  %v728_v54 = vcombine.high %v79_v49, %v83_v50  ;;  %v86_v55 = vld [vmem:[#allocation2 + $0x1c0] sm:$0xff]  ;;  %v87_v57 = vld [vmem:[#allocation2 + $0x1c8] sm:$0xff]  ;;  %v725_v59 = vcombine.low %v78_v47, %v82_v48  ;;  %v60_v26 = vld [vmem:[#allocation2 + $0xf0] sm:$0xff] }
  0x21   :  { %v90_v56 = vld [vmem:[#allocation2 + $0x1e0] sm:$0xff]  ;;  %v91_v58 = vld [vmem:[#allocation2 + $0x1e8] sm:$0xff]  ;;  %v727_v60 = vcombine.low %v79_v49, %v83_v50  ;;  %v57_v27 = vld [vmem:[#allocation2 + $0xd8] sm:$0xff]  ;;  %v697_v30 = vcombine.low %v48_v17, %v52_v18  ;;  %v706_v32 = vcombine.high %v56_v25, %v60_v26 }
  0x22   :  { %v734_v61 = vcombine.high %v86_v55, %v90_v56  ;;  %v736_v62 = vcombine.high %v87_v57, %v91_v58  ;;  %v733_v4 = vcombine.low %v86_v55, %v90_v56  ;;  %v735_v5 = vcombine.low %v87_v57, %v91_v58  ;;  %v807_v10 = vld [vmem:[%s924_s0] sm:$0xff]   ;;  %v61_v28 = vld [vmem:[#allocation2 + $0xf8] sm:$0xff]  ;;  %v816_v29 = vld [vmem:[%s924_s0 + $0x8] sm:$0xff]  }
  0x23   :  { %433 = vmatpush1.bf16.msra.mxu0 %v701_v35  ;;  %486 = vmatpush1.bf16.msra.mxu1 %v703_v36  ;;  %v708_v33 = vcombine.high %v57_v27, %v61_v28  ;;  %v64_v34 = vld [vmem:[#allocation2 + $0x110] sm:$0xff]  ;;  %v65_v36 = vld [vmem:[#allocation2 + $0x118] sm:$0xff]  ;;  %v707_v39 = vcombine.low %v57_v27, %v61_v28 }
  0x24   :  { %434 = vmatprep.subr.bf16.mxu0 %v710_v37  ;;  %487 = vmatprep.subr.bf16.mxu1 %v712_v38  ;;  %v68_v35 = vld [vmem:[#allocation2 + $0x130] sm:$0xff]  ;;  %v69_v37 = vld [vmem:[#allocation2 + $0x138] sm:$0xff]  ;;  %v705_v38 = vcombine.low %v56_v25, %v60_v26 }
  0x25   :  { %v714_v40 = vcombine.high %v64_v34, %v68_v35  ;;  %v716_v41 = vcombine.high %v65_v36, %v69_v37  ;;  %v72_v42 = vld [vmem:[#allocation2 + $0x150] sm:$0xff]  ;;  %v715_v47 = vcombine.low %v65_v36, %v69_v37 }
  0x26   :  { %v80_v50 = vld [vmem:[#allocation2 + $0x190] sm:$0xff] }
  0x27   :  { %435 = vmatpush1.bf16.msra.mxu0 %v709_v43  ;;  %488 = vmatpush1.bf16.msra.mxu1 %v711_v44  ;;  %v76_v43 = vld [vmem:[#allocation2 + $0x170] sm:$0xff]  ;;  %v73_v44 = vld [vmem:[#allocation2 + $0x158] sm:$0xff] }
  0x28   :  { %436 = vmatprep.subr.bf16.mxu0 %v718_v45  ;;  %489 = vmatprep.subr.bf16.mxu1 %v720_v46  ;;  %v77_v45 = vld [vmem:[#allocation2 + $0x178] sm:$0xff]  ;;  %v713_v46 = vcombine.low %v64_v34, %v68_v35  ;;  %v722_v48 = vcombine.high %v72_v42, %v76_v43  ;;  %v88_v58 = vld [vmem:[#allocation2 + $0x1d0] sm:$0xff] }
  0x29   :  { %v724_v49 = vcombine.high %v73_v44, %v77_v45  ;;  %v723_v55 = vcombine.low %v73_v44, %v77_v45 }
  0x2b   :  { %437 = vmatpush1.bf16.msra.mxu0 %v717_v51  ;;  %490 = vmatpush1.bf16.msra.mxu1 %v719_v52  ;;  %v84_v51 = vld [vmem:[#allocation2 + $0x1b0] sm:$0xff]  ;;  %v81_v52 = vld [vmem:[#allocation2 + $0x198] sm:$0xff] }
  0x2c   :  { %438 = vmatprep.subr.bf16.mxu0 %v726_v53  ;;  %491 = vmatprep.subr.bf16.mxu1 %v728_v54  ;;  %v85_v53 = vld [vmem:[#allocation2 + $0x1b8] sm:$0xff]  ;;  %v721_v54 = vcombine.low %v72_v42, %v76_v43  ;;  %v730_v56 = vcombine.high %v80_v50, %v84_v51 }
  0x2d   :  { %v732_v57 = vcombine.high %v81_v52, %v85_v53  ;;  %v731_v63 = vcombine.low %v81_v52, %v85_v53 }
  0x2f   :  { %439 = vmatpush1.bf16.msra.mxu0 %v725_v59  ;;  %492 = vmatpush1.bf16.msra.mxu1 %v727_v60  ;;  %v92_v59 = vld [vmem:[#allocation2 + $0x1f0] sm:$0xff]  ;;  %v89_v60 = vld [vmem:[#allocation2 + $0x1d8] sm:$0xff] }
  0x30   :  { %440 = vmatprep.subr.bf16.mxu0 %v734_v61  ;;  %493 = vmatprep.subr.bf16.mxu1 %v736_v62  ;;  %v93_v61 = vld [vmem:[#allocation2 + $0x1f8] sm:$0xff]  ;;  %v729_v62 = vcombine.low %v80_v50, %v84_v51  ;;  %v738_v1 = vcombine.high %v88_v58, %v92_v59  ;;  %v737_v3 = vcombine.low %v88_v58, %v92_v59 }
  0x31   :  { %v740_v2 = vcombine.high %v89_v60, %v93_v61 }
  0x33   :  { %441 = vmatpush1.bf16.msra.mxu0 %v733_v4  ;;  %494 = vmatpush1.bf16.msra.mxu1 %v735_v5  ;;  %v739_v4 = vcombine.low %v89_v60, %v93_v61 }
  0x34   :  { %532 = vmatprep.subr.bf16.mxu0 %v682_v6  ;;  %585 = vmatprep.subr.bf16.mxu1 %v684_v7 }
  0x36   :  { %459 = vmatmul.mubr.bf16.vlgmr.msra.gmra.mrb[0].mxu0 %v807_v10  ;;  %512 = vmatmul.mubr.bf16.vlgmr.msra.gmra.mrb[0].mxu1 %v807_v10 }
  0x37   :  { %533 = vmatpush1.bf16.msra.mxu0 %v681_v13  ;;  %586 = vmatpush1.bf16.msra.mxu1 %v683_v14 }
  0x38   :  { %534 = vmatprep.subr.bf16.mxu0 %v690_v15  ;;  %587 = vmatprep.subr.bf16.mxu1 %v692_v16 }
  0x39   :  { %468 = vmatprep.mubr.bf16.mxu0 %v774_v0  ;;  %521 = vmatprep.mubr.bf16.mxu1 %v774_v0 }
  0x3b   :  { %535 = vmatpush1.bf16.msra.mxu0 %v689_v21  ;;  %588 = vmatpush1.bf16.msra.mxu1 %v691_v22 }
  0x3c   :  { %536 = vmatprep.subr.bf16.mxu0 %v698_v23  ;;  %589 = vmatprep.subr.bf16.mxu1 %v700_v24 }
  0x3e   :  { %469 = vmatmul.mubr.bf16.gmra.mrb[4].mxu0 %v816_v29  ;;  %522 = vmatmul.mubr.bf16.gmra.mrb[4].mxu1 %v816_v29 }
  0x3f   :  { %537 = vmatpush1.bf16.msra.mxu0 %v697_v30  ;;  %590 = vmatpush1.bf16.msra.mxu1 %v699_v31 }
  0x40   :  { %538 = vmatprep.subr.bf16.mxu0 %v706_v32  ;;  %591 = vmatprep.subr.bf16.mxu1 %v708_v33 }
  0x41   :  { %564 = vmatprep.mubr.bf16.mxu0 %v774_v0  ;;  %617 = vmatprep.mubr.bf16.mxu1 %v774_v0 }
  0x43   :  { %539 = vmatpush1.bf16.msra.mxu0 %v705_v38  ;;  %592 = vmatpush1.bf16.msra.mxu1 %v707_v39 }
  0x44   :  { %540 = vmatprep.subr.bf16.mxu0 %v714_v40  ;;  %593 = vmatprep.subr.bf16.mxu1 %v716_v41 }
  0x47   :  { %541 = vmatpush1.bf16.msra.mxu0 %v713_v46  ;;  %594 = vmatpush1.bf16.msra.mxu1 %v715_v47 }
  0x48   :  { %542 = vmatprep.subr.bf16.mxu0 %v722_v48  ;;  %595 = vmatprep.subr.bf16.mxu1 %v724_v49 }
  0x4b   :  { %543 = vmatpush1.bf16.msra.mxu0 %v721_v54  ;;  %596 = vmatpush1.bf16.msra.mxu1 %v723_v55 }
  0x4c   :  { %544 = vmatprep.subr.bf16.mxu0 %v730_v56  ;;  %597 = vmatprep.subr.bf16.mxu1 %v732_v57 }
  0x4f   :  { %545 = vmatpush1.bf16.msra.mxu0 %v729_v62  ;;  %598 = vmatpush1.bf16.msra.mxu1 %v731_v63 }
  0x50   :  { %546 = vmatprep.subr.bf16.mxu0 %v738_v1  ;;  %599 = vmatprep.subr.bf16.mxu1 %v740_v2 }
  0x53   :  { %547 = vmatpush1.bf16.msra.mxu0 %v737_v3  ;;  %600 = vmatpush1.bf16.msra.mxu1 %v739_v4 }
  0x56   :  { %565 = vmatmul.mubr.bf16.vlgmr.msra.gmra.mrb[8].mxu0 %v807_v10  ;;  %618 = vmatmul.mubr.bf16.vlgmr.msra.gmra.mrb[8].mxu1 %v807_v10 }
  0x57   :  { %574 = vmatprep.mubr.bf16.mxu0 %v774_v0  ;;  %627 = vmatprep.mubr.bf16.mxu1 %v774_v0 }
  0x5e   :  { %575 = vmatmul.mubr.bf16.gmra.mrb[12].mxu0 %v816_v29  ;;  %628 = vmatmul.mubr.bf16.gmra.mrb[12].mxu1 %v816_v29 }
 0x109   :  { %v460_v5 = vpop.f32.mrb[0].mxu0  ;;  %v513_v6 = vpop.f32.mrb[0].mxu1 }
 0x10a   :  { %638 = vst [vmem:[%s926_s2] sm:$0xff] %v460_v5  ;;  %v462_v7 = vpop.f32.mrb[1].mxu0  ;;  %640 = vst [vmem:[%s926_s2 + $0x10] sm:$0xff] %v513_v6  ;;  %v515_v0 = vpop.f32.mrb[1].mxu1 }
 0x10b   :  { %639 = vst [vmem:[%s926_s2 + $0x8] sm:$0xff] %v462_v7  ;;  %v464_v8 = vpop.f32.mrb[2].mxu0  ;;  %641 = vst [vmem:[%s926_s2 + $0x18] sm:$0xff] %v515_v0  ;;  %v517_v9 = vpop.f32.mrb[2].mxu1 }
 0x10c   :  { %646 = vst [vmem:[%s926_s2 + $0x40] sm:$0xff] %v464_v8  ;;  %v466_v10 = vpop.f32.mrb[3].mxu0  ;;  %648 = vst [vmem:[%s926_s2 + $0x50] sm:$0xff] %v517_v9  ;;  %v519_v11 = vpop.f32.mrb[3].mxu1 }
 0x10d   :  { %647 = vst [vmem:[%s926_s2 + $0x48] sm:$0xff] %v466_v10  ;;  %649 = vst [vmem:[%s926_s2 + $0x58] sm:$0xff] %v519_v11 }
 0x111   :  { %v470_v12 = vpop.f32.mrb[4].mxu0  ;;  %v523_v13 = vpop.f32.mrb[4].mxu1 }
 0x112   :  { %654 = vst [vmem:[%s926_s2 + $0x80] sm:$0xff] %v470_v12  ;;  %v472_v14 = vpop.f32.mrb[5].mxu0  ;;  %656 = vst [vmem:[%s926_s2 + $0x90] sm:$0xff] %v523_v13  ;;  %v525_v15 = vpop.f32.mrb[5].mxu1 }
 0x113   :  { %655 = vst [vmem:[%s926_s2 + $0x88] sm:$0xff] %v472_v14  ;;  %v474_v16 = vpop.f32.mrb[6].mxu0  ;;  %657 = vst [vmem:[%s926_s2 + $0x98] sm:$0xff] %v525_v15  ;;  %v527_v17 = vpop.f32.mrb[6].mxu1 }
 0x114   :  { %662 = vst [vmem:[%s926_s2 + $0xc0] sm:$0xff] %v474_v16  ;;  %v476_v18 = vpop.f32.mrb[7].mxu0  ;;  %664 = vst [vmem:[%s926_s2 + $0xd0] sm:$0xff] %v527_v17  ;;  %v529_v19 = vpop.f32.mrb[7].mxu1 }
 0x115   :  { %663 = vst [vmem:[%s926_s2 + $0xc8] sm:$0xff] %v476_v18  ;;  %665 = vst [vmem:[%s926_s2 + $0xd8] sm:$0xff] %v529_v19 }
 0x129   :  { %v566_v20 = vpop.f32.mrb[8].mxu0  ;;  %v619_v21 = vpop.f32.mrb[8].mxu1 }
 0x12a   :  { %642 = vst [vmem:[%s926_s2 + $0x20] sm:$0xff] %v566_v20  ;;  %v568_v22 = vpop.f32.mrb[9].mxu0  ;;  %644 = vst [vmem:[%s926_s2 + $0x30] sm:$0xff] %v619_v21  ;;  %v621_v23 = vpop.f32.mrb[9].mxu1 }
 0x12b   :  { %643 = vst [vmem:[%s926_s2 + $0x28] sm:$0xff] %v568_v22  ;;  %v570_v24 = vpop.f32.mrb[10].mxu0  ;;  %645 = vst [vmem:[%s926_s2 + $0x38] sm:$0xff] %v621_v23  ;;  %v623_v25 = vpop.f32.mrb[10].mxu1 }
 0x12c   :  { %650 = vst [vmem:[%s926_s2 + $0x60] sm:$0xff] %v570_v24  ;;  %v572_v26 = vpop.f32.mrb[11].mxu0  ;;  %652 = vst [vmem:[%s926_s2 + $0x70] sm:$0xff] %v623_v25  ;;  %v625_v27 = vpop.f32.mrb[11].mxu1 }
 0x12d   :  { %651 = vst [vmem:[%s926_s2 + $0x68] sm:$0xff] %v572_v26  ;;  %653 = vst [vmem:[%s926_s2 + $0x78] sm:$0xff] %v625_v27 }
 0x131   :  { %v576_v28 = vpop.f32.mrb[12].mxu0  ;;  %v629_v29 = vpop.f32.mrb[12].mxu1 }
 0x132   :  { %658 = vst [vmem:[%s926_s2 + $0xa0] sm:$0xff] %v576_v28  ;;  %v578_v30 = vpop.f32.mrb[13].mxu0  ;;  %660 = vst [vmem:[%s926_s2 + $0xb0] sm:$0xff] %v629_v29  ;;  %v631_v31 = vpop.f32.mrb[13].mxu1 }
 0x133   :  { %659 = vst [vmem:[%s926_s2 + $0xa8] sm:$0xff] %v578_v30  ;;  %v580_v32 = vpop.f32.mrb[14].mxu0  ;;  %661 = vst [vmem:[%s926_s2 + $0xb8] sm:$0xff] %v631_v31  ;;  %v633_v33 = vpop.f32.mrb[14].mxu1 }
 0x134   :  { %666 = vst [vmem:[%s926_s2 + $0xe0] sm:$0xff] %v580_v32  ;;  %v582_v34 = vpop.f32.mrb[15].mxu0  ;;  %668 = vst [vmem:[%s926_s2 + $0xf0] sm:$0xff] %v633_v33  ;;  %v635_v35 = vpop.f32.mrb[15].mxu1 }
 0x135   :  { %667 = vst [vmem:[%s926_s2 + $0xe8] sm:$0xff] %v582_v34  ;;  %669 = vst [vmem:[%s926_s2 + $0xf8] sm:$0xff] %v635_v35 }
 0x136   :  { %674 = vsyncpa [#allocation3], 1 }

// kernel: generator_forward.13
= control target key start
LH: loop header
LB: loop body
LE: loop exit
PB: predicated region body
PF: predicated region fallthrough
CT: control target
= control target key end

     0   :  { %s202_s28 = smov 64   ;;  %v39_v21 = vlaneseq  ;;  %s267_s0 = inlined_call_operand.vmem [shape: f32[64,128], index: 0, kind: input, shape index: {}]   ;;  %s268_s1 = inlined_call_operand.vmem [shape: f32[1,128], index: 1, kind: input, shape index: {}]   ;;  %s269_s2 = inlined_call_operand.vmem [shape: f32[1,128], index: 2, kind: input, shape index: {}]   ;;  %s270_s3 = inlined_call_operand.vmem [shape: bf16[64,128], index: 3, kind: output, shape index: {}]  }
   0x1   :  { %v14_v0 = vld [vmem:[%s267_s0] sm:$0xff]  ;;  %v15_v1 = vld [vmem:[%s267_s0 + $0x8] sm:$0xff]  ;;  %v16_v2 = vld [vmem:[%s267_s0 + $0x10] sm:$0xff] }
   0x2   :  { %v22_v3 = vadd.f32 %v15_v1, %v14_v0  ;;  %v17_v4 = vld [vmem:[%s267_s0 + $0x18] sm:$0xff]  ;;  %v18_v6 = vld [vmem:[%s267_s0 + $0x20] sm:$0xff]  ;;  %v19_v8 = vld [vmem:[%s267_s0 + $0x28] sm:$0xff]  ;;  %v40_v22 = vshrl.u32 %v39_v21, 7 }
   0x3   :  { %v20_v10 = vld [vmem:[%s267_s0 + $0x30] sm:$0xff]  ;;  %v21_v12 = vld [vmem:[%s267_s0 + $0x38] sm:$0xff]  ;;  %v78_v61 = vld [vmem:[%s268_s1] sm:$0x1] }
   0x4   :  { %v23_v5 = vadd.f32 %v22_v3, %v16_v2  ;;  %v41_v24 = vsub.s32 0, %v40_v22 }
   0x6   :  { %v24_v7 = vadd.f32 %v23_v5, %v17_v4 }
   0x8   :  { %v25_v9 = vadd.f32 %v24_v7, %v18_v6 }
   0xa   :  { %v26_v11 = vadd.f32 %v25_v9, %v19_v8 }
   0xc   :  { %v27_v13 = vadd.f32 %v26_v11, %v20_v10 }
   0xe   :  { %v28_v14 = vadd.f32 %v27_v13, %v21_v12 }
  0x10   :  { %v29_v15 = vrot.slane %v28_v14, 4 }
  0x12   :  { %v30_v16 = vadd.f32 %v29_v15, %v28_v14 }
  0x14   :  { %v31_v17 = vrot.slane %v30_v16, 2 }
  0x16   :  { %v32_v18 = vadd.f32 %v31_v17, %v30_v16 }
  0x18   :  { %v33_v19 = vrot.slane %v32_v18, 1 }
  0x1a   :  { %v34_v20 = vadd.f32 %v33_v19, %v32_v18 }
  0x1c   :  { %35 = vrot.lane.b32.xlu0 %v34_v20, %s202_s28 }
  0x8e   :  { %v36_v23 = vpop.permute.xlu0 %35 }
  0x8f   :  { %v37_v25 = vadd.f32 %v36_v23, %v34_v20 }
  0x91   :  { %v38_v26 = vmul.f32 0.0078125, %v37_v25 }
  0x93   :  { %v42_v27 = vrot.slane %v38_v26, %v41_v24 }
  0x95   :  { %v43_v28 = vsub.f32 %v14_v0, %v42_v27  ;;  %v44_v29 = vsub.f32 %v15_v1, %v42_v27  ;;  %v45_v30 = vsub.f32 %v16_v2, %v42_v27  ;;  %v46_v31 = vsub.f32 %v17_v4, %v42_v27  ;;  %v159_v1 = vld [vmem:[%s269_s2] ss:$0 sm:$0xff] }
  0x96   :  { %v47_v34 = vsub.f32 %v18_v6, %v42_v27  ;;  %v48_v37 = vsub.f32 %v19_v8, %v42_v27  ;;  %v49_v40 = vsub.f32 %v20_v10, %v42_v27  ;;  %v50_v43 = vsub.f32 %v21_v12, %v42_v27 }
  0x97   :  { %v51_v32 = vmul.f32 %v43_v28, %v43_v28  ;;  %v52_v33 = vmul.f32 %v44_v29, %v44_v29  ;;  %v53_v35 = vmul.f32 %v45_v30, %v45_v30  ;;  %v54_v38 = vmul.f32 %v46_v31, %v46_v31 }
  0x98   :  { %v55_v41 = vmul.f32 %v47_v34, %v47_v34  ;;  %v56_v44 = vmul.f32 %v48_v37, %v48_v37  ;;  %v57_v46 = vmul.f32 %v49_v40, %v49_v40  ;;  %v58_v48 = vmul.f32 %v50_v43, %v50_v43 }
  0x99   :  { %v59_v36 = vadd.f32 %v52_v33, %v51_v32 }
  0x9b   :  { %v60_v39 = vadd.f32 %v59_v36, %v53_v35 }
  0x9d   :  { %v61_v42 = vadd.f32 %v60_v39, %v54_v38 }
  0x9f   :  { %v62_v45 = vadd.f32 %v61_v42, %v55_v41 }
  0xa1   :  { %v63_v47 = vadd.f32 %v62_v45, %v56_v44 }
  0xa3   :  { %v64_v49 = vadd.f32 %v63_v47, %v57_v46 }
  0xa5   :  { %v65_v50 = vadd.f32 %v64_v49, %v58_v48 }
  0xa7   :  { %v66_v51 = vrot.slane %v65_v50, 4 }
  0xa9   :  { %v67_v52 = vadd.f32 %v66_v51, %v65_v50 }
  0xab   :  { %v68_v53 = vrot.slane %v67_v52, 2 }
  0xad   :  { %v69_v54 = vadd.f32 %v68_v53, %v67_v52 }
  0xaf   :  { %v70_v55 = vrot.slane %v69_v54, 1 }
  0xb1   :  { %v71_v56 = vadd.f32 %v70_v55, %v69_v54 }
  0xb3   :  { %72 = vrot.lane.b32.xlu0 %v71_v56, %s202_s28 }
 0x125   :  { %v73_v57 = vpop.permute.xlu0 %72 }
 0x126   :  { %v74_v58 = vadd.f32 %v73_v57, %v71_v56 }
 0x128   :  { %v75_v59 = vmul.f32 0.0078125, %v74_v58 }
 0x12a   :  { %v76_v60 = vadd.f32 1e-05, %v75_v59 }
 0x12c   :  { %200 = vrsqrt.f32 %v76_v60 }
 0x136   :  { %v201_v62 = vpop.eup %200 }
 0x137   :  { %v79_v63 = vmul.f32 %v201_v62, %v78_v61 }
 0x139   :  { %v83_v0 = vrot.slane %v79_v63, %v41_v24 }
 0x13b   :  { %v84_v2 = vmul.f32 %v83_v0, %v43_v28  ;;  %v85_v3 = vmul.f32 %v83_v0, %v44_v29  ;;  %v86_v4 = vmul.f32 %v83_v0, %v45_v30  ;;  %v87_v5 = vmul.f32 %v83_v0, %v46_v31 }
 0x13c   :  { %v88_v6 = vmul.f32 %v83_v0, %v47_v34  ;;  %v89_v7 = vmul.f32 %v83_v0, %v48_v37  ;;  %v90_v8 = vmul.f32 %v83_v0, %v49_v40  ;;  %v91_v9 = vmul.f32 %v83_v0, %v50_v43 }
 0x13d   :  { %v99_v10 = vadd.f32 %v159_v1, %v84_v2  ;;  %v100_v11 = vadd.f32 %v159_v1, %v85_v3  ;;  %v101_v12 = vadd.f32 %v159_v1, %v86_v4  ;;  %v102_v13 = vadd.f32 %v159_v1, %v87_v5 }
 0x13e   :  { %v103_v14 = vadd.f32 %v159_v1, %v88_v6  ;;  %v104_v15 = vadd.f32 %v159_v1, %v89_v7  ;;  %v105_v16 = vadd.f32 %v159_v1, %v90_v8  ;;  %v106_v17 = vadd.f32 %v159_v1, %v91_v9 }
 0x13f   :  { %v107_v18 = vmax.f32 %v99_v10, 0.0  ;;  %v108_v19 = vmax.f32 %v100_v11, 0.0  ;;  %v109_v20 = vmax.f32 %v101_v12, 0.0  ;;  %v110_v21 = vmax.f32 %v102_v13, 0.0 }
 0x140   :  { %v111_v22 = vmax.f32 %v103_v14, 0.0  ;;  %v112_v23 = vmax.f32 %v104_v15, 0.0  ;;  %v113_v24 = vmax.f32 %v105_v16, 0.0  ;;  %v114_v25 = vmax.f32 %v106_v17, 0.0 }
 0x141   :  { %v179_v26 = vpack.c.bf16 %v108_v19, %v107_v18  ;;  %v184_v27 = vpack.c.bf16 %v110_v21, %v109_v20 }
 0x142   :  { %v189_v28 = vpack.c.bf16 %v112_v23, %v111_v22  ;;  %v194_v29 = vpack.c.bf16 %v114_v25, %v113_v24 }
 0x143   :  { %180 = vst [vmem:[%s270_s3] sm:$0xff] %v179_v26   ;;  %196 = vst [vmem:[%s270_s3 + $0x8] sm:$0xff] %v184_v27  }
 0x144   :  { %197 = vst [vmem:[%s270_s3 + $0x10] sm:$0xff] %v189_v28   ;;  %198 = vst [vmem:[%s270_s3 + $0x18] sm:$0xff] %v194_v29  }

// kernel: generator_forward.14
= control target key start
LH: loop header
LB: loop body
LE: loop exit
PB: predicated region body
PF: predicated region fallthrough
CT: control target
= control target key end

     0   :  { %v556_v1 = vmov 0   ;;  %vm164_vm0 = vcmask 523264   ;;  %s868_s1 = inlined_call_operand.vmem [shape: bf16[64,512], index: 1, kind: input, shape index: {}]   ;;  %s869_s0 = inlined_call_operand.vmem [shape: bf16[128,64], index: 0, kind: input, shape index: {}]   ;;  %s870_s2 = inlined_call_operand.vmem [shape: f32[128,512], index: 2, kind: output, shape index: {}]  }
   0x1   :  { %v524_v0 = vld [vmem:[%s868_s1 + $0x4] ss:$16 sps:$4 sm:$0xff]   ;;  %221 = vmatprep.mubr.bf16.mxu0 %v556_v1  ;;  %334 = vmatprep.mubr.bf16.mxu1 %v556_v1  ;;  %v526_v2 = vld [vmem:[%s868_s1 + $0xc] ss:$16 sps:$4 sm:$0xff]   ;;  %v528_v3 = vld [vmem:[%s868_s1] ss:$16 sps:$4 sm:$0xff]  }
   0x2   :  { %189 = vmatprep.subr.bf16.mxu0 %v524_v0  ;;  %v529_v4 = vld [vmem:[%s868_s1 + $0x8] ss:$16 sps:$4 sm:$0xff]   ;;  %302 = vmatprep.subr.bf16.mxu1 %v526_v2  ;;  %v530_v5 = vld [vmem:[%s868_s1 + $0x24] ss:$16 sps:$4 sm:$0xff]   ;;  %v532_v6 = vld [vmem:[%s868_s1 + $0x2c] ss:$16 sps:$4 sm:$0xff]  }
   0x3   :  { %190 = vmatpush1.bf16.msra.mxu0 %v528_v3  ;;  %303 = vmatpush1.bf16.msra.mxu1 %v529_v4  ;;  %v534_v7 = vld [vmem:[%s868_s1 + $0x20] ss:$16 sps:$4 sm:$0xff]   ;;  %v535_v8 = vld [vmem:[%s868_s1 + $0x28] ss:$16 sps:$4 sm:$0xff]   ;;  %v536_v9 = vld [vmem:[%s868_s1 + $0x44] ss:$16 sps:$4 sm:$0xff]  }
   0x4   :  { %191 = vmatprep.subr.bf16.mxu0 %v530_v5  ;;  %304 = vmatprep.subr.bf16.mxu1 %v532_v6  ;;  %v538_v10 = vld [vmem:[%s868_s1 + $0x4c] ss:$16 sps:$4 sm:$0xff]   ;;  %v540_v11 = vld [vmem:[%s868_s1 + $0x40] ss:$16 sps:$4 sm:$0xff]   ;;  %v541_v12 = vld [vmem:[%s868_s1 + $0x48] ss:$16 sps:$4 sm:$0xff]  }
   0x5   :  { %v542_v13 = vld [vmem:[%s868_s1 + $0x64] ss:$16 sps:$4 sm:$0xff]   ;;  %v544_v14 = vld [vmem:[%s868_s1 + $0x6c] ss:$16 sps:$4 sm:$0xff]   ;;  %v546_v15 = vld [vmem:[%s868_s1 + $0x60] ss:$16 sps:$4 sm:$0xff]  }
   0x6   :  { %v547_v16 = vld [vmem:[%s868_s1 + $0x68] ss:$16 sps:$4 sm:$0xff]   ;;  %v548_v17 = vld [vmem:[%s869_s0] sm:$0xff]   ;;  %v550_v19 = vld [vmem:[%s869_s0 + $0x10] sm:$0xff]  }
   0x7   :  { %192 = vmatpush1.bf16.msra.mxu0 %v534_v7  ;;  %305 = vmatpush1.bf16.msra.mxu1 %v535_v8  ;;  %v549_v18 = vld [vmem:[%s869_s0 + $0x8] sm:$0xff]   ;;  %v551_v20 = vld [vmem:[%s869_s0 + $0x18] sm:$0xff]   ;;  %v552_v21 = vld [vmem:[%s869_s0 + $0x20] sm:$0xff]  }
   0x8   :  { %193 = vmatprep.subr.bf16.mxu0 %v536_v9  ;;  %306 = vmatprep.subr.bf16.mxu1 %v538_v10  ;;  %v553_v22 = vld [vmem:[%s869_s0 + $0x28] sm:$0xff]   ;;  %v554_v23 = vld [vmem:[%s869_s0 + $0x30] sm:$0xff]   ;;  %v555_v24 = vld [vmem:[%s869_s0 + $0x38] sm:$0xff]  }
   0xb   :  { %194 = vmatpush1.bf16.msra.mxu0 %v540_v11  ;;  %307 = vmatpush1.bf16.msra.mxu1 %v541_v12 }
   0xc   :  { %195 = vmatprep.subr.bf16.mxu0 %v542_v13  ;;  %308 = vmatprep.subr.bf16.mxu1 %v544_v14 }
   0xf   :  { %196 = vmatpush1.bf16.msra.mxu0 %v546_v15  ;;  %309 = vmatpush1.bf16.msra.mxu1 %v547_v16 }
  0x12   :  { %507 = vmatmul.mubr.msk.bf16.vlgmr.msra.gmra.mrb[0].mxu0 %vm164_vm0, %v548_v17  ;;  %515 = vmatmul.mubr.msk.bf16.vlgmr.msra.gmra.mrb[0].mxu1 %vm164_vm0, %v548_v17 }
  0x13   :  { %231 = vmatprep.mubr.bf16.mxu0 %v556_v1  ;;  %344 = vmatprep.mubr.bf16.mxu1 %v556_v1 }
  0x1a   :  { %508 = vmatmul.mubr.msk.bf16.gmra.mrb[4].mxu0 %vm164_vm0, %v549_v18  ;;  %516 = vmatmul.mubr.msk.bf16.gmra.mrb[4].mxu1 %vm164_vm0, %v549_v18 }
  0x1b   :  { %241 = vmatprep.mubr.bf16.mxu0 %v556_v1  ;;  %354 = vmatprep.mubr.bf16.mxu1 %v556_v1 }
  0x22   :  { %509 = vmatmul.mubr.msk.bf16.gmra.mrb[8].mxu0 %vm164_vm0, %v550_v19  ;;  %517 = vmatmul.mubr.msk.bf16.gmra.mrb[8].mxu1 %vm164_vm0, %v550_v19 }
  0x23   :  { %251 = vmatprep.mubr.bf16.mxu0 %v556_v1  ;;  %364 = vmatprep.mubr.bf16.mxu1 %v556_v1 }
  0x2a   :  { %510 = vmatmul.mubr.msk.bf16.gmra.mrb[12].mxu0 %vm164_vm0, %v551_v20  ;;  %518 = vmatmul.mubr.msk.bf16.gmra.mrb[12].mxu1 %vm164_vm0, %v551_v20 }
  0x2b   :  { %261 = vmatprep.mubr.bf16.mxu0 %v556_v1  ;;  %374 = vmatprep.mubr.bf16.mxu1 %v556_v1 }
  0x32   :  { %511 = vmatmul.mubr.msk.bf16.gmra.mrb[16].mxu0 %vm164_vm0, %v552_v21  ;;  %519 = vmatmul.mubr.msk.bf16.gmra.mrb[16].mxu1 %vm164_vm0, %v552_v21 }
  0x33   :  { %271 = vmatprep.mubr.bf16.mxu0 %v556_v1  ;;  %384 = vmatprep.mubr.bf16.mxu1 %v556_v1 }
  0x3a   :  { %512 = vmatmul.mubr.msk.bf16.gmra.mrb[20].mxu0 %vm164_vm0, %v553_v22  ;;  %520 = vmatmul.mubr.msk.bf16.gmra.mrb[20].mxu1 %vm164_vm0, %v553_v22 }
  0x3b   :  { %281 = vmatprep.mubr.bf16.mxu0 %v556_v1  ;;  %394 = vmatprep.mubr.bf16.mxu1 %v556_v1 }
  0x42   :  { %513 = vmatmul.mubr.msk.bf16.gmra.mrb[24].mxu0 %vm164_vm0, %v554_v23  ;;  %521 = vmatmul.mubr.msk.bf16.gmra.mrb[24].mxu1 %vm164_vm0, %v554_v23 }
  0x43   :  { %291 = vmatprep.mubr.bf16.mxu0 %v556_v1  ;;  %404 = vmatprep.mubr.bf16.mxu1 %v556_v1 }
  0x4a   :  { %514 = vmatmul.mubr.msk.bf16.gmra.mrb[28].mxu0 %vm164_vm0, %v555_v24  ;;  %522 = vmatmul.mubr.msk.bf16.gmra.mrb[28].mxu1 %vm164_vm0, %v555_v24 }
  0xe5   :  { %v223_v25 = vpop.f32.mrb[0].mxu0  ;;  %v336_v26 = vpop.f32.mrb[0].mxu1 }
  0xe6   :  { %415 = vst [vmem:[%s870_s2] sm:$0xff] %v223_v25  ;;  %417 = vst [vmem:[%s870_s2 + $0x10] sm:$0xff] %v336_v26  ;;  %v225_v27 = vpop.f32.mrb[1].mxu0  ;;  %v338_v28 = vpop.f32.mrb[1].mxu1 }
  0xe7   :  { %416 = vst [vmem:[%s870_s2 + $0x8] sm:$0xff] %v225_v27  ;;  %418 = vst [vmem:[%s870_s2 + $0x18] sm:$0xff] %v338_v28  ;;  %v227_v29 = vpop.f32.mrb[2].mxu0  ;;  %v340_v30 = vpop.f32.mrb[2].mxu1 }
  0xe8   :  { %419 = vst [vmem:[%s870_s2 + $0x20] sm:$0xff] %v227_v29  ;;  %421 = vst [vmem:[%s870_s2 + $0x30] sm:$0xff] %v340_v30  ;;  %v229_v31 = vpop.f32.mrb[3].mxu0  ;;  %v342_v32 = vpop.f32.mrb[3].mxu1 }
  0xe9   :  { %420 = vst [vmem:[%s870_s2 + $0x28] sm:$0xff] %v229_v31  ;;  %422 = vst [vmem:[%s870_s2 + $0x38] sm:$0xff] %v342_v32 }
  0xed   :  { %v233_v33 = vpop.f32.mrb[4].mxu0  ;;  %v346_v34 = vpop.f32.mrb[4].mxu1 }
  0xee   :  { %423 = vst [vmem:[%s870_s2 + $0x40] sm:$0xff] %v233_v33  ;;  %425 = vst [vmem:[%s870_s2 + $0x50] sm:$0xff] %v346_v34  ;;  %v235_v35 = vpop.f32.mrb[5].mxu0  ;;  %v348_v36 = vpop.f32.mrb[5].mxu1 }
  0xef   :  { %424 = vst [vmem:[%s870_s2 + $0x48] sm:$0xff] %v235_v35  ;;  %426 = vst [vmem:[%s870_s2 + $0x58] sm:$0xff] %v348_v36  ;;  %v237_v37 = vpop.f32.mrb[6].mxu0  ;;  %v350_v38 = vpop.f32.mrb[6].mxu1 }
  0xf0   :  { %427 = vst [vmem:[%s870_s2 + $0x60] sm:$0xff] %v237_v37  ;;  %429 = vst [vmem:[%s870_s2 + $0x70] sm:$0xff] %v350_v38  ;;  %v239_v39 = vpop.f32.mrb[7].mxu0  ;;  %v352_v40 = vpop.f32.mrb[7].mxu1 }
  0xf1   :  { %428 = vst [vmem:[%s870_s2 + $0x68] sm:$0xff] %v239_v39  ;;  %430 = vst [vmem:[%s870_s2 + $0x78] sm:$0xff] %v352_v40 }
  0xf5   :  { %v243_v41 = vpop.f32.mrb[8].mxu0  ;;  %v356_v42 = vpop.f32.mrb[8].mxu1 }
  0xf6   :  { %431 = vst [vmem:[%s870_s2 + $0x80] sm:$0xff] %v243_v41  ;;  %433 = vst [vmem:[%s870_s2 + $0x90] sm:$0xff] %v356_v42  ;;  %v245_v43 = vpop.f32.mrb[9].mxu0  ;;  %v358_v44 = vpop.f32.mrb[9].mxu1 }
  0xf7   :  { %432 = vst [vmem:[%s870_s2 + $0x88] sm:$0xff] %v245_v43  ;;  %434 = vst [vmem:[%s870_s2 + $0x98] sm:$0xff] %v358_v44  ;;  %v247_v45 = vpop.f32.mrb[10].mxu0  ;;  %v360_v46 = vpop.f32.mrb[10].mxu1 }
  0xf8   :  { %435 = vst [vmem:[%s870_s2 + $0xa0] sm:$0xff] %v247_v45  ;;  %437 = vst [vmem:[%s870_s2 + $0xb0] sm:$0xff] %v360_v46  ;;  %v249_v47 = vpop.f32.mrb[11].mxu0  ;;  %v362_v48 = vpop.f32.mrb[11].mxu1 }
  0xf9   :  { %436 = vst [vmem:[%s870_s2 + $0xa8] sm:$0xff] %v249_v47  ;;  %438 = vst [vmem:[%s870_s2 + $0xb8] sm:$0xff] %v362_v48 }
  0xfd   :  { %v253_v49 = vpop.f32.mrb[12].mxu0  ;;  %v366_v50 = vpop.f32.mrb[12].mxu1 }
  0xfe   :  { %439 = vst [vmem:[%s870_s2 + $0xc0] sm:$0xff] %v253_v49  ;;  %441 = vst [vmem:[%s870_s2 + $0xd0] sm:$0xff] %v366_v50  ;;  %v255_v51 = vpop.f32.mrb[13].mxu0  ;;  %v368_v52 = vpop.f32.mrb[13].mxu1 }
  0xff   :  { %440 = vst [vmem:[%s870_s2 + $0xc8] sm:$0xff] %v255_v51  ;;  %442 = vst [vmem:[%s870_s2 + $0xd8] sm:$0xff] %v368_v52  ;;  %v257_v53 = vpop.f32.mrb[14].mxu0  ;;  %v370_v54 = vpop.f32.mrb[14].mxu1 }
 0x100   :  { %443 = vst [vmem:[%s870_s2 + $0xe0] sm:$0xff] %v257_v53  ;;  %445 = vst [vmem:[%s870_s2 + $0xf0] sm:$0xff] %v370_v54  ;;  %v259_v55 = vpop.f32.mrb[15].mxu0  ;;  %v372_v56 = vpop.f32.mrb[15].mxu1 }
 0x101   :  { %444 = vst [vmem:[%s870_s2 + $0xe8] sm:$0xff] %v259_v55  ;;  %446 = vst [vmem:[%s870_s2 + $0xf8] sm:$0xff] %v372_v56 }
 0x105   :  { %v263_v57 = vpop.f32.mrb[16].mxu0  ;;  %v376_v58 = vpop.f32.mrb[16].mxu1 }
 0x106   :  { %447 = vst [vmem:[%s870_s2 + $0x100] sm:$0xff] %v263_v57  ;;  %449 = vst [vmem:[%s870_s2 + $0x110] sm:$0xff] %v376_v58  ;;  %v265_v59 = vpop.f32.mrb[17].mxu0  ;;  %v378_v60 = vpop.f32.mrb[17].mxu1 }
 0x107   :  { %448 = vst [vmem:[%s870_s2 + $0x108] sm:$0xff] %v265_v59  ;;  %450 = vst [vmem:[%s870_s2 + $0x118] sm:$0xff] %v378_v60  ;;  %v267_v61 = vpop.f32.mrb[18].mxu0  ;;  %v380_v62 = vpop.f32.mrb[18].mxu1 }
 0x108   :  { %451 = vst [vmem:[%s870_s2 + $0x120] sm:$0xff] %v267_v61  ;;  %453 = vst [vmem:[%s870_s2 + $0x130] sm:$0xff] %v380_v62  ;;  %v269_v63 = vpop.f32.mrb[19].mxu0  ;;  %v382_v0 = vpop.f32.mrb[19].mxu1 }
 0x109   :  { %452 = vst [vmem:[%s870_s2 + $0x128] sm:$0xff] %v269_v63  ;;  %454 = vst [vmem:[%s870_s2 + $0x138] sm:$0xff] %v382_v0 }
 0x10d   :  { %v273_v1 = vpop.f32.mrb[20].mxu0  ;;  %v386_v2 = vpop.f32.mrb[20].mxu1 }
 0x10e   :  { %455 = vst [vmem:[%s870_s2 + $0x140] sm:$0xff] %v273_v1  ;;  %457 = vst [vmem:[%s870_s2 + $0x150] sm:$0xff] %v386_v2  ;;  %v275_v3 = vpop.f32.mrb[21].mxu0  ;;  %v388_v4 = vpop.f32.mrb[21].mxu1 }
 0x10f   :  { %456 = vst [vmem:[%s870_s2 + $0x148] sm:$0xff] %v275_v3  ;;  %458 = vst [vmem:[%s870_s2 + $0x158] sm:$0xff] %v388_v4  ;;  %v277_v5 = vpop.f32.mrb[22].mxu0  ;;  %v390_v6 = vpop.f32.mrb[22].mxu1 }
 0x110   :  { %459 = vst [vmem:[%s870_s2 + $0x160] sm:$0xff] %v277_v5  ;;  %461 = vst [vmem:[%s870_s2 + $0x170] sm:$0xff] %v390_v6  ;;  %v279_v7 = vpop.f32.mrb[23].mxu0  ;;  %v392_v8 = vpop.f32.mrb[23].mxu1 }
 0x111   :  { %460 = vst [vmem:[%s870_s2 + $0x168] sm:$0xff] %v279_v7  ;;  %462 = vst [vmem:[%s870_s2 + $0x178] sm:$0xff] %v392_v8 }
 0x115   :  { %v283_v9 = vpop.f32.mrb[24].mxu0  ;;  %v396_v10 = vpop.f32.mrb[24].mxu1 }
 0x116   :  { %463 = vst [vmem:[%s870_s2 + $0x180] sm:$0xff] %v283_v9  ;;  %465 = vst [vmem:[%s870_s2 + $0x190] sm:$0xff] %v396_v10  ;;  %v285_v11 = vpop.f32.mrb[25].mxu0  ;;  %v398_v12 = vpop.f32.mrb[25].mxu1 }
 0x117   :  { %464 = vst [vmem:[%s870_s2 + $0x188] sm:$0xff] %v285_v11  ;;  %466 = vst [vmem:[%s870_s2 + $0x198] sm:$0xff] %v398_v12  ;;  %v287_v13 = vpop.f32.mrb[26].mxu0  ;;  %v400_v14 = vpop.f32.mrb[26].mxu1 }
 0x118   :  { %467 = vst [vmem:[%s870_s2 + $0x1a0] sm:$0xff] %v287_v13  ;;  %469 = vst [vmem:[%s870_s2 + $0x1b0] sm:$0xff] %v400_v14  ;;  %v289_v15 = vpop.f32.mrb[27].mxu0  ;;  %v402_v16 = vpop.f32.mrb[27].mxu1 }
 0x119   :  { %468 = vst [vmem:[%s870_s2 + $0x1a8] sm:$0xff] %v289_v15  ;;  %470 = vst [vmem:[%s870_s2 + $0x1b8] sm:$0xff] %v402_v16 }
 0x11d   :  { %v293_v17 = vpop.f32.mrb[28].mxu0  ;;  %v406_v18 = vpop.f32.mrb[28].mxu1 }
 0x11e   :  { %471 = vst [vmem:[%s870_s2 + $0x1c0] sm:$0xff] %v293_v17  ;;  %473 = vst [vmem:[%s870_s2 + $0x1d0] sm:$0xff] %v406_v18  ;;  %v295_v19 = vpop.f32.mrb[29].mxu0  ;;  %v408_v20 = vpop.f32.mrb[29].mxu1 }
 0x11f   :  { %472 = vst [vmem:[%s870_s2 + $0x1c8] sm:$0xff] %v295_v19  ;;  %474 = vst [vmem:[%s870_s2 + $0x1d8] sm:$0xff] %v408_v20  ;;  %v297_v21 = vpop.f32.mrb[30].mxu0  ;;  %v410_v22 = vpop.f32.mrb[30].mxu1 }
 0x120   :  { %475 = vst [vmem:[%s870_s2 + $0x1e0] sm:$0xff] %v297_v21  ;;  %477 = vst [vmem:[%s870_s2 + $0x1f0] sm:$0xff] %v410_v22  ;;  %v299_v23 = vpop.f32.mrb[31].mxu0  ;;  %v412_v24 = vpop.f32.mrb[31].mxu1 }
 0x121   :  { %476 = vst [vmem:[%s870_s2 + $0x1e8] sm:$0xff] %v299_v23  ;;  %478 = vst [vmem:[%s870_s2 + $0x1f8] sm:$0xff] %v412_v24 }

// kernel: tile.52
= control target key start
LH: loop header
LB: loop body
LE: loop exit
PB: predicated region body
PF: predicated region fallthrough
CT: control target
= control target key end

     0   :  { %s22_s0 = inlined_call_operand.vmem [shape: f32[32], index: 0, kind: input, shape index: {}]   ;;  %s23_s1 = inlined_call_operand.vmem [shape: f32[4,32], index: 1, kind: output, shape index: {}]  }
   0x1   :  { %v4_v0 = vld [vmem:[%s22_s0] ss:$0 sm:$0xff] }
   0x2   :  { %5 = vst [vmem:[%s23_s1] sm:$0xf] %v4_v0 }

// kernel: tile.53
= control target key start
LH: loop header
LB: loop body
LE: loop exit
PB: predicated region body
PF: predicated region fallthrough
CT: control target
= control target key end

     0   :  { %vm7_vm0 = vcmask 261120   ;;  %s37_s8 = smov 32   ;;  %s38_s9 = smov 64   ;;  %vm13_vm1 = vcmask 1048320   ;;  %vm19_vm2 = vcmask 785920   ;;  %vm25_vm3 = vcmask 523520   ;;  %s55_s0 = inlined_call_operand.vmem [shape: f32[4,32], index: 0, kind: input, shape index: {}]   ;;  %s56_s1 = inlined_call_operand.vmem [shape: f32[1,128], index: 1, kind: output, shape index: {}]  }
   0x1   :  { %v4_v0 = vld [vmem:[%s55_s0] sm:$0xf]  ;;  %s36_s0 = smov 96  }
   0x2   :  { %5 = vst [vmem:[#allocation1] sm:$0xf] %v4_v0 }
   0x9   :  { %v10_v1 = vld [vmem:[#allocation1 + $0x3] sm:$0x1]   ;;  %v22_v2 = vld [vmem:[#allocation1 + $0x1] sm:$0x1]   ;;  %v6_v3 = vld [vmem:[#allocation1] sm:$0x1]  }
   0xa   :  { %11 = vrot.lane.b32.xlu0 %v10_v1, %s36_s0  ;;  %23 = vrot.lane.b32.xlu1 %v22_v2, %s37_s8  ;;  %v16_v4 = vld [vmem:[#allocation1 + $0x2] sm:$0x1]   ;;  %8 = vst.msk [vmem:[#allocation0] sm:$0x1] %vm7_vm0, %v6_v3  }
   0xe   :  { %17 = vrot.lane.b32.xlu0 %v16_v4, %s38_s9 }
  0x7c   :  { %v12_v5 = vpop.permute.xlu0 %11   ;;  %v24_v6 = vpop.permute.xlu1 %23  }
  0x7d   :  { %14 = vst.msk [vmem:[#allocation0] sm:$0x1] %vm13_vm1, %v12_v5  }
  0x80   :  { %v18_v7 = vpop.permute.xlu0 %17  }
  0x81   :  { %20 = vst.msk [vmem:[#allocation0] sm:$0x1] %vm19_vm2, %v18_v7  }
  0x82   :  { %26 = vst.msk [vmem:[#allocation0] sm:$0x1] %vm25_vm3, %v24_v6  }
  0x89   :  { %v30_v8 = vld [vmem:[#allocation0] sm:$0x1] }
  0x8a   :  { %32 = vst [vmem:[%s56_s1] sm:$0x1] %v30_v8 }

// kernel: generator_forward.15
= control target key start
LH: loop header
LB: loop body
LE: loop exit
PB: predicated region body
PF: predicated region fallthrough
CT: control target
= control target key end

     0   :  { %s360_s17 = smov 32   ;;  %s361_s18 = smov 96   ;;  %v61_v37 = vlaneseq  ;;  %s526_s0 = inlined_call_operand.vmem [shape: f32[128,128], index: 0, kind: input, shape index: {}]   ;;  %s527_s1 = inlined_call_operand.vmem [shape: f32[1,128], index: 1, kind: input, shape index: {}]   ;;  %s528_s2 = inlined_call_operand.vmem [shape: f32[1,128], index: 2, kind: input, shape index: {}]   ;;  %s529_s3 = inlined_call_operand.vmem [shape: bf16[128,128], index: 3, kind: output, shape index: {}]  }
   0x1   :  { %v14_v0 = vld [vmem:[%s526_s0] sm:$0xff]  ;;  %v15_v1 = vld [vmem:[%s526_s0 + $0x8] sm:$0xff]  ;;  %v16_v2 = vld [vmem:[%s526_s0 + $0x10] sm:$0xff]  ;;  %s362_s19 = smov 64  }
   0x2   :  { %v30_v3 = vadd.f32 %v15_v1, %v14_v0  ;;  %v17_v4 = vld [vmem:[%s526_s0 + $0x18] sm:$0xff]  ;;  %v18_v6 = vld [vmem:[%s526_s0 + $0x20] sm:$0xff]  ;;  %v19_v8 = vld [vmem:[%s526_s0 + $0x28] sm:$0xff]  ;;  %v443_v40 = vshrl.u32 %v61_v37, 7 }
   0x3   :  { %v20_v10 = vld [vmem:[%s526_s0 + $0x30] sm:$0xff]  ;;  %v21_v12 = vld [vmem:[%s526_s0 + $0x38] sm:$0xff]  ;;  %v22_v14 = vld [vmem:[%s526_s0 + $0x40] sm:$0xff] }
   0x4   :  { %v31_v5 = vadd.f32 %v30_v3, %v16_v2  ;;  %v23_v16 = vld [vmem:[%s526_s0 + $0x48] sm:$0xff]  ;;  %v24_v18 = vld [vmem:[%s526_s0 + $0x50] sm:$0xff]  ;;  %v25_v20 = vld [vmem:[%s526_s0 + $0x58] sm:$0xff]  ;;  %v63_v44 = vsub.s32 0, %v443_v40 }
   0x5   :  { %v26_v22 = vld [vmem:[%s526_s0 + $0x60] sm:$0xff]  ;;  %v425_v24 = vld [vmem:[%s526_s0 + $0x68] sm:$0xff]  ;;  %v430_v26 = vld [vmem:[%s526_s0 + $0x70] sm:$0xff] }
   0x6   :  { %v32_v7 = vadd.f32 %v31_v5, %v17_v4  ;;  %v436_v28 = vld [vmem:[%s526_s0 + $0x78] sm:$0xff] }
   0x8   :  { %v33_v9 = vadd.f32 %v32_v7, %v18_v6 }
   0xa   :  { %v34_v11 = vadd.f32 %v33_v9, %v19_v8 }
   0xc   :  { %v35_v13 = vadd.f32 %v34_v11, %v20_v10 }
   0xe   :  { %v36_v15 = vadd.f32 %v35_v13, %v21_v12 }
  0x10   :  { %v37_v17 = vadd.f32 %v36_v15, %v22_v14 }
  0x12   :  { %v38_v19 = vadd.f32 %v37_v17, %v23_v16 }
  0x14   :  { %v39_v21 = vadd.f32 %v38_v19, %v24_v18 }
  0x16   :  { %v40_v23 = vadd.f32 %v39_v21, %v25_v20 }
  0x18   :  { %v41_v25 = vadd.f32 %v40_v23, %v26_v22 }
  0x1a   :  { %v42_v27 = vadd.f32 %v41_v25, %v425_v24 }
  0x1c   :  { %v43_v29 = vadd.f32 %v42_v27, %v430_v26 }
  0x1e   :  { %v44_v30 = vadd.f32 %v43_v29, %v436_v28 }
  0x20   :  { %v45_v31 = vrot.slane %v44_v30, 4 }
  0x22   :  { %v46_v32 = vadd.f32 %v45_v31, %v44_v30 }
  0x24   :  { %v47_v33 = vrot.slane %v46_v32, 2 }
  0x26   :  { %v48_v34 = vadd.f32 %v47_v33, %v46_v32 }
  0x28   :  { %v49_v35 = vrot.slane %v48_v34, 1 }
  0x2a   :  { %v50_v36 = vadd.f32 %v49_v35, %v48_v34 }
  0x2c   :  { %51 = vrot.lane.b32.xlu0 %v50_v36, %s360_s17  ;;  %57 = vrot.lane.b32.xlu1 %v50_v36, %s361_s18 }
  0x30   :  { %54 = vrot.lane.b32.xlu0 %v50_v36, %s362_s19 }
  0x9e   :  { %v52_v38 = vpop.permute.xlu0 %51  ;;  %v58_v42 = vpop.permute.xlu1 %57 }
  0x9f   :  { %v53_v39 = vadd.f32 %v52_v38, %v50_v36 }
  0xa2   :  { %v55_v41 = vpop.permute.xlu0 %54 }
  0xa3   :  { %v56_v43 = vadd.f32 %v55_v41, %v53_v39 }
  0xa5   :  { %v59_v45 = vadd.f32 %v58_v42, %v56_v43 }
  0xa7   :  { %v60_v46 = vmul.f32 0.001953125, %v59_v45 }
  0xa9   :  { %v64_v47 = vrot.slane %v60_v46, %v63_v44 }
  0xab   :  { %v448_v48 = vsub.f32 %v14_v0, %v64_v47  ;;  %v450_v49 = vsub.f32 %v15_v1, %v64_v47  ;;  %v452_v50 = vsub.f32 %v16_v2, %v64_v47  ;;  %v458_v53 = vsub.f32 %v17_v4, %v64_v47 }
  0xac   :  { %v460_v54 = vsub.f32 %v18_v6, %v64_v47  ;;  %v464_v57 = vsub.f32 %v19_v8, %v64_v47  ;;  %v468_v60 = vsub.f32 %v20_v10, %v64_v47  ;;  %v472_v63 = vsub.f32 %v21_v12, %v64_v47 }
  0xad   :  { %v81_v51 = vmul.f32 %v448_v48, %v448_v48  ;;  %v82_v52 = vmul.f32 %v450_v49, %v450_v49  ;;  %v83_v55 = vmul.f32 %v452_v50, %v452_v50  ;;  %v84_v58 = vmul.f32 %v458_v53, %v458_v53 }
  0xae   :  { %v85_v61 = vmul.f32 %v460_v54, %v460_v54  ;;  %v86_v0 = vmul.f32 %v464_v57, %v464_v57  ;;  %v73_v2 = vsub.f32 %v22_v14, %v64_v47  ;;  %v87_v3 = vmul.f32 %v468_v60, %v468_v60 }
  0xaf   :  { %v97_v56 = vadd.f32 %v82_v52, %v81_v51  ;;  %v74_v5 = vsub.f32 %v23_v16, %v64_v47  ;;  %v88_v6 = vmul.f32 %v472_v63, %v472_v63  ;;  %v75_v8 = vsub.f32 %v24_v18, %v64_v47 }
  0xb0   :  { %v89_v9 = vmul.f32 %v73_v2, %v73_v2  ;;  %v76_v11 = vsub.f32 %v25_v20, %v64_v47  ;;  %v77_v15 = vsub.f32 %v26_v22, %v64_v47  ;;  %v78_v14 = vsub.f32 %v425_v24, %v64_v47 }
  0xb1   :  { %v98_v59 = vadd.f32 %v97_v56, %v83_v55  ;;  %v90_v12 = vmul.f32 %v74_v5, %v74_v5  ;;  %v91_v17 = vmul.f32 %v75_v8, %v75_v8  ;;  %v79_v25 = vsub.f32 %v430_v26, %v64_v47 }
  0xb2   :  { %v92_v21 = vmul.f32 %v76_v11, %v76_v11  ;;  %v93_v16 = vmul.f32 %v77_v15, %v77_v15  ;;  %v80_v29 = vsub.f32 %v436_v28, %v64_v47  ;;  %v94_v30 = vmul.f32 %v78_v14, %v78_v14  ;;  %v130_v47 = vld [vmem:[%s527_s1] sm:$0x1] }
  0xb3   :  { %v99_v62 = vadd.f32 %v98_v59, %v84_v58  ;;  %v95_v31 = vmul.f32 %v79_v25, %v79_v25 }
  0xb4   :  { %v96_v20 = vmul.f32 %v80_v29, %v80_v29 }
  0xb5   :  { %v100_v1 = vadd.f32 %v99_v62, %v85_v61  ;;  %v275_v62 = vld [vmem:[%s528_s2] ss:$0 sm:$0xff] }
  0xb7   :  { %v101_v4 = vadd.f32 %v100_v1, %v86_v0 }
  0xb9   :  { %v102_v7 = vadd.f32 %v101_v4, %v87_v3 }
  0xbb   :  { %v103_v10 = vadd.f32 %v102_v7, %v88_v6 }
  0xbd   :  { %v104_v13 = vadd.f32 %v103_v10, %v89_v9 }
  0xbf   :  { %v105_v19 = vadd.f32 %v104_v13, %v90_v12 }
  0xc1   :  { %v106_v23 = vadd.f32 %v105_v19, %v91_v17 }
  0xc3   :  { %v107_v27 = vadd.f32 %v106_v23, %v92_v21 }
  0xc5   :  { %v108_v18 = vadd.f32 %v107_v27, %v93_v16 }
  0xc7   :  { %v109_v32 = vadd.f32 %v108_v18, %v94_v30 }
  0xc9   :  { %v110_v33 = vadd.f32 %v109_v32, %v95_v31 }
  0xcb   :  { %v111_v34 = vadd.f32 %v110_v33, %v96_v20 }
  0xcd   :  { %v112_v22 = vrot.slane %v111_v34, 4 }
  0xcf   :  { %v113_v35 = vadd.f32 %v112_v22, %v111_v34 }
  0xd1   :  { %v114_v36 = vrot.slane %v113_v35, 2 }
  0xd3   :  { %v115_v37 = vadd.f32 %v114_v36, %v113_v35 }
  0xd5   :  { %v116_v24 = vrot.slane %v115_v37, 1 }
  0xd7   :  { %v117_v38 = vadd.f32 %v116_v24, %v115_v37 }
  0xd9   :  { %121 = vrot.lane.b32.xlu0 %v117_v38, %s362_s19  ;;  %118 = vrot.lane.b32.xlu1 %v117_v38, %s360_s17 }
  0xdd   :  { %124 = vrot.lane.b32.xlu1 %v117_v38, %s361_s18 }
 0x14b   :  { %v119_v26 = vpop.permute.xlu1 %118  ;;  %v122_v39 = vpop.permute.xlu0 %121 }
 0x14c   :  { %v120_v28 = vadd.f32 %v119_v26, %v117_v38 }
 0x14e   :  { %v123_v41 = vadd.f32 %v122_v39, %v120_v28 }
 0x14f   :  { %v125_v42 = vpop.permute.xlu1 %124 }
 0x150   :  { %v126_v43 = vadd.f32 %v125_v42, %v123_v41 }
 0x152   :  { %v127_v45 = vmul.f32 0.001953125, %v126_v43 }
 0x154   :  { %v128_v46 = vadd.f32 1e-05, %v127_v45 }
 0x156   :  { %358 = vrsqrt.f32 %v128_v46 }
 0x160   :  { %v359_v51 = vpop.eup %358 }
 0x161   :  { %v131_v52 = vmul.f32 %v359_v51, %v130_v47 }
 0x163   :  { %v135_v55 = vrot.slane %v131_v52, %v63_v44 }
 0x165   :  { %v136_v56 = vmul.f32 %v135_v55, %v448_v48  ;;  %v137_v58 = vmul.f32 %v135_v55, %v450_v49  ;;  %v138_v59 = vmul.f32 %v135_v55, %v452_v50  ;;  %v139_v61 = vmul.f32 %v135_v55, %v458_v53 }
 0x166   :  { %v140_v0 = vmul.f32 %v135_v55, %v460_v54  ;;  %v141_v1 = vmul.f32 %v135_v55, %v464_v57  ;;  %v142_v3 = vmul.f32 %v135_v55, %v468_v60  ;;  %v143_v40 = vmul.f32 %v135_v55, %v472_v63 }
 0x167   :  { %v144_v44 = vmul.f32 %v135_v55, %v73_v2  ;;  %v145_v48 = vmul.f32 %v135_v55, %v74_v5  ;;  %v146_v4 = vmul.f32 %v135_v55, %v75_v8  ;;  %v147_v49 = vmul.f32 %v135_v55, %v76_v11 }
 0x168   :  { %v148_v6 = vmul.f32 %v135_v55, %v77_v15  ;;  %v149_v50 = vmul.f32 %v135_v55, %v78_v14  ;;  %v150_v7 = vmul.f32 %v135_v55, %v79_v25  ;;  %v151_v53 = vmul.f32 %v135_v55, %v80_v29 }
 0x169   :  { %v159_v9 = vadd.f32 %v275_v62, %v136_v56  ;;  %v160_v10 = vadd.f32 %v275_v62, %v137_v58  ;;  %v161_v12 = vadd.f32 %v275_v62, %v138_v59  ;;  %v162_v13 = vadd.f32 %v275_v62, %v139_v61 }
 0x16a   :  { %v163_v17 = vadd.f32 %v275_v62, %v140_v0  ;;  %v164_v54 = vadd.f32 %v275_v62, %v141_v1  ;;  %v165_v19 = vadd.f32 %v275_v62, %v142_v3  ;;  %v166_v57 = vadd.f32 %v275_v62, %v143_v40 }
 0x16b   :  { %v167_v21 = vadd.f32 %v275_v62, %v144_v44  ;;  %v168_v60 = vadd.f32 %v275_v62, %v145_v48  ;;  %v169_v23 = vadd.f32 %v275_v62, %v146_v4  ;;  %v170_v63 = vadd.f32 %v275_v62, %v147_v49 }
 0x16c   :  { %v171_v2 = vadd.f32 %v275_v62, %v148_v6  ;;  %v172_v5 = vadd.f32 %v275_v62, %v149_v50  ;;  %v173_v8 = vadd.f32 %v275_v62, %v150_v7  ;;  %v174_v11 = vadd.f32 %v275_v62, %v151_v53 }
 0x16d   :  { %v175_v15 = vmax.f32 %v159_v9, 0.0  ;;  %v176_v14 = vmax.f32 %v160_v10, 0.0  ;;  %v177_v25 = vmax.f32 %v161_v12, 0.0  ;;  %v178_v16 = vmax.f32 %v162_v13, 0.0 }
 0x16e   :  { %v179_v27 = vmax.f32 %v163_v17, 0.0  ;;  %v180_v29 = vmax.f32 %v164_v54, 0.0  ;;  %v181_v30 = vmax.f32 %v165_v19, 0.0  ;;  %v182_v18 = vmax.f32 %v166_v57, 0.0 }
 0x16f   :  { %v183_v31 = vmax.f32 %v167_v21, 0.0  ;;  %v184_v32 = vmax.f32 %v168_v60, 0.0  ;;  %v185_v20 = vmax.f32 %v169_v23, 0.0  ;;  %v186_v33 = vmax.f32 %v170_v63, 0.0 }
 0x170   :  { %v187_v34 = vmax.f32 %v171_v2, 0.0  ;;  %v188_v22 = vmax.f32 %v172_v5, 0.0  ;;  %v189_v35 = vmax.f32 %v173_v8, 0.0  ;;  %v190_v36 = vmax.f32 %v174_v11, 0.0 }
 0x171   :  { %v311_v37 = vpack.c.bf16 %v176_v14, %v175_v15  ;;  %v316_v24 = vpack.c.bf16 %v178_v16, %v177_v25  ;;  %v321_v38 = vpack.c.bf16 %v180_v29, %v179_v27  ;;  %v326_v26 = vpack.c.bf16 %v182_v18, %v181_v30 }
 0x172   :  { %v331_v28 = vpack.c.bf16 %v184_v32, %v183_v31  ;;  %v336_v39 = vpack.c.bf16 %v186_v33, %v185_v20  ;;  %v341_v41 = vpack.c.bf16 %v188_v22, %v187_v34  ;;  %v346_v42 = vpack.c.bf16 %v190_v36, %v189_v35 }
 0x173   :  { %312 = vst [vmem:[%s529_s3] sm:$0xff] %v311_v37   ;;  %348 = vst [vmem:[%s529_s3 + $0x8] sm:$0xff] %v316_v24  }
 0x174   :  { %349 = vst [vmem:[%s529_s3 + $0x10] sm:$0xff] %v321_v38   ;;  %350 = vst [vmem:[%s529_s3 + $0x18] sm:$0xff] %v326_v26  }
 0x175   :  { %351 = vst [vmem:[%s529_s3 + $0x20] sm:$0xff] %v331_v28   ;;  %352 = vst [vmem:[%s529_s3 + $0x28] sm:$0xff] %v336_v39  }
 0x176   :  { %353 = vst [vmem:[%s529_s3 + $0x30] sm:$0xff] %v341_v41   ;;  %354 = vst [vmem:[%s529_s3 + $0x38] sm:$0xff] %v346_v42  }

// kernel: generator_forward.16
= control target key start
LH: loop header
LB: loop body
LE: loop exit
PB: predicated region body
PF: predicated region fallthrough
CT: control target
= control target key end

     0   :  { %v953_v1 = vmov 0   ;;  %vm260_vm0 = vcmask 261120   ;;  %s1525_s1 = inlined_call_operand.vmem [shape: bf16[32,256], index: 1, kind: input, shape index: {}]   ;;  %s1526_s0 = inlined_call_operand.vmem [shape: bf16[512,32], index: 0, kind: input, shape index: {}]   ;;  %s1527_s2 = inlined_call_operand.vmem [shape: f32[512,256], index: 2, kind: output, shape index: {}]  }
   0x1   :  { %v915_v0 = vld [vmem:[%s1525_s1 + $0x4] ss:$8 sps:$4 sm:$0xff]   ;;  %389 = vmatprep.mubr.bf16.mxu0 %v953_v1  ;;  %549 = vmatprep.mubr.bf16.mxu1 %v953_v1  ;;  %v917_v2 = vld [vmem:[%s1525_s1] ss:$8 sps:$4 sm:$0xff]   ;;  %v918_v3 = vld [vmem:[%s1525_s1 + $0x14] ss:$8 sps:$4 sm:$0xff]  }
   0x2   :  { %357 = vmatprep.subr.bf16.mxu0 %v915_v0  ;;  %910 = vmatprep.subr.bf16.mxu1 %v915_v0  ;;  %v920_v4 = vld [vmem:[%s1525_s1 + $0x10] ss:$8 sps:$4 sm:$0xff]   ;;  %v921_v5 = vld [vmem:[%s1526_s0] sm:$0xff]   ;;  %v923_v7 = vld [vmem:[%s1526_s0 + $0x8] sm:$0xff]  }
   0x3   :  { %358 = vmatpush1.bf16.msra.mxu0 %v917_v2  ;;  %912 = vmatpush1.bf16.msra.mxu1 %v917_v2  ;;  %v922_v6 = vld [vmem:[%s1526_s0 + $0x80] sm:$0xff]   ;;  %v924_v8 = vld [vmem:[%s1526_s0 + $0x88] sm:$0xff]   ;;  %v925_v9 = vld [vmem:[%s1526_s0 + $0x10] sm:$0xff]  }
   0x4   :  { %359 = vmatprep.subr.bf16.mxu0 %v918_v3  ;;  %911 = vmatprep.subr.bf16.mxu1 %v918_v3  ;;  %v926_v10 = vld [vmem:[%s1526_s0 + $0x90] sm:$0xff]   ;;  %v927_v11 = vld [vmem:[%s1526_s0 + $0x18] sm:$0xff]   ;;  %v929_v13 = vld [vmem:[%s1526_s0 + $0x20] sm:$0xff]  }
   0x5   :  { %v928_v12 = vld [vmem:[%s1526_s0 + $0x98] sm:$0xff]   ;;  %v930_v14 = vld [vmem:[%s1526_s0 + $0xa0] sm:$0xff]   ;;  %v931_v15 = vld [vmem:[%s1526_s0 + $0x28] sm:$0xff]  }
   0x6   :  { %v932_v16 = vld [vmem:[%s1526_s0 + $0xa8] sm:$0xff]   ;;  %v933_v17 = vld [vmem:[%s1526_s0 + $0x30] sm:$0xff]   ;;  %v935_v19 = vld [vmem:[%s1526_s0 + $0x38] sm:$0xff]  }
   0x7   :  { %360 = vmatpush1.bf16.msra.mxu0 %v920_v4  ;;  %913 = vmatpush1.bf16.msra.mxu1 %v920_v4  ;;  %v934_v18 = vld [vmem:[%s1526_s0 + $0xb0] sm:$0xff]   ;;  %v936_v20 = vld [vmem:[%s1526_s0 + $0xb8] sm:$0xff]   ;;  %v937_v21 = vld [vmem:[%s1526_s0 + $0x40] sm:$0xff]  }
   0x8   :  { %v938_v22 = vld [vmem:[%s1526_s0 + $0xc0] sm:$0xff]   ;;  %v939_v23 = vld [vmem:[%s1526_s0 + $0x48] sm:$0xff]   ;;  %v941_v25 = vld [vmem:[%s1526_s0 + $0x50] sm:$0xff]  }
   0x9   :  { %v940_v24 = vld [vmem:[%s1526_s0 + $0xc8] sm:$0xff]   ;;  %v942_v26 = vld [vmem:[%s1526_s0 + $0xd0] sm:$0xff]   ;;  %v943_v27 = vld [vmem:[%s1526_s0 + $0x58] sm:$0xff]  }
   0xa   :  { %878 = vmatmul.mubr.msk.bf16.vlgmr.msra.gmra.mrb[0].mxu0 %vm260_vm0, %v921_v5  ;;  %894 = vmatmul.mubr.msk.bf16.vlgmr.msra.gmra.mrb[0].mxu1 %vm260_vm0, %v922_v6  ;;  %v944_v28 = vld [vmem:[%s1526_s0 + $0xd8] sm:$0xff]   ;;  %v945_v29 = vld [vmem:[%s1526_s0 + $0x60] sm:$0xff]   ;;  %v947_v31 = vld [vmem:[%s1526_s0 + $0x68] sm:$0xff]  }
   0xb   :  { %399 = vmatprep.mubr.bf16.mxu0 %v953_v1  ;;  %559 = vmatprep.mubr.bf16.mxu1 %v953_v1  ;;  %v946_v30 = vld [vmem:[%s1526_s0 + $0xe0] sm:$0xff]   ;;  %v948_v32 = vld [vmem:[%s1526_s0 + $0xe8] sm:$0xff]   ;;  %v949_v33 = vld [vmem:[%s1526_s0 + $0x70] sm:$0xff]  }
   0xc   :  { %v950_v34 = vld [vmem:[%s1526_s0 + $0xf0] sm:$0xff]   ;;  %v951_v35 = vld [vmem:[%s1526_s0 + $0x78] sm:$0xff]  }
   0xd   :  { %v952_v36 = vld [vmem:[%s1526_s0 + $0xf8] sm:$0xff]  }
  0x12   :  { %879 = vmatmul.mubr.msk.bf16.gmra.mrb[4].mxu0 %vm260_vm0, %v923_v7  ;;  %895 = vmatmul.mubr.msk.bf16.gmra.mrb[4].mxu1 %vm260_vm0, %v924_v8 }
  0x13   :  { %409 = vmatprep.mubr.bf16.mxu0 %v953_v1  ;;  %569 = vmatprep.mubr.bf16.mxu1 %v953_v1 }
  0x1a   :  { %880 = vmatmul.mubr.msk.bf16.gmra.mrb[8].mxu0 %vm260_vm0, %v925_v9  ;;  %896 = vmatmul.mubr.msk.bf16.gmra.mrb[8].mxu1 %vm260_vm0, %v926_v10 }
  0x1b   :  { %419 = vmatprep.mubr.bf16.mxu0 %v953_v1  ;;  %579 = vmatprep.mubr.bf16.mxu1 %v953_v1 }
  0x22   :  { %881 = vmatmul.mubr.msk.bf16.gmra.mrb[12].mxu0 %vm260_vm0, %v927_v11  ;;  %897 = vmatmul.mubr.msk.bf16.gmra.mrb[12].mxu1 %vm260_vm0, %v928_v12 }
  0x23   :  { %429 = vmatprep.mubr.bf16.mxu0 %v953_v1  ;;  %589 = vmatprep.mubr.bf16.mxu1 %v953_v1 }
  0x2a   :  { %882 = vmatmul.mubr.msk.bf16.gmra.mrb[16].mxu0 %vm260_vm0, %v929_v13  ;;  %898 = vmatmul.mubr.msk.bf16.gmra.mrb[16].mxu1 %vm260_vm0, %v930_v14 }
  0x2b   :  { %439 = vmatprep.mubr.bf16.mxu0 %v953_v1  ;;  %599 = vmatprep.mubr.bf16.mxu1 %v953_v1 }
  0x32   :  { %883 = vmatmul.mubr.msk.bf16.gmra.mrb[20].mxu0 %vm260_vm0, %v931_v15  ;;  %899 = vmatmul.mubr.msk.bf16.gmra.mrb[20].mxu1 %vm260_vm0, %v932_v16 }
  0x33   :  { %449 = vmatprep.mubr.bf16.mxu0 %v953_v1  ;;  %609 = vmatprep.mubr.bf16.mxu1 %v953_v1 }
  0x3a   :  { %884 = vmatmul.mubr.msk.bf16.gmra.mrb[24].mxu0 %vm260_vm0, %v933_v17  ;;  %900 = vmatmul.mubr.msk.bf16.gmra.mrb[24].mxu1 %vm260_vm0, %v934_v18 }
  0x3b   :  { %459 = vmatprep.mubr.bf16.mxu0 %v953_v1  ;;  %619 = vmatprep.mubr.bf16.mxu1 %v953_v1 }
  0x42   :  { %885 = vmatmul.mubr.msk.bf16.gmra.mrb[28].mxu0 %vm260_vm0, %v935_v19  ;;  %901 = vmatmul.mubr.msk.bf16.gmra.mrb[28].mxu1 %vm260_vm0, %v936_v20 }
  0x43   :  { %469 = vmatprep.mubr.bf16.mxu0 %v953_v1  ;;  %629 = vmatprep.mubr.bf16.mxu1 %v953_v1 }
  0x4a   :  { %886 = vmatmul.mubr.msk.bf16.gmra.mrb[32].mxu0 %vm260_vm0, %v937_v21  ;;  %902 = vmatmul.mubr.msk.bf16.gmra.mrb[32].mxu1 %vm260_vm0, %v938_v22 }
  0x4b   :  { %479 = vmatprep.mubr.bf16.mxu0 %v953_v1  ;;  %639 = vmatprep.mubr.bf16.mxu1 %v953_v1 }
  0x52   :  { %887 = vmatmul.mubr.msk.bf16.gmra.mrb[36].mxu0 %vm260_vm0, %v939_v23  ;;  %903 = vmatmul.mubr.msk.bf16.gmra.mrb[36].mxu1 %vm260_vm0, %v940_v24 }
  0x53   :  { %489 = vmatprep.mubr.bf16.mxu0 %v953_v1  ;;  %649 = vmatprep.mubr.bf16.mxu1 %v953_v1 }
  0x5a   :  { %888 = vmatmul.mubr.msk.bf16.gmra.mrb[40].mxu0 %vm260_vm0, %v941_v25  ;;  %904 = vmatmul.mubr.msk.bf16.gmra.mrb[40].mxu1 %vm260_vm0, %v942_v26 }
  0x5b   :  { %499 = vmatprep.mubr.bf16.mxu0 %v953_v1  ;;  %659 = vmatprep.mubr.bf16.mxu1 %v953_v1 }
  0x62   :  { %889 = vmatmul.mubr.msk.bf16.gmra.mrb[44].mxu0 %vm260_vm0, %v943_v27  ;;  %905 = vmatmul.mubr.msk.bf16.gmra.mrb[44].mxu1 %vm260_vm0, %v944_v28 }
  0x63   :  { %509 = vmatprep.mubr.bf16.mxu0 %v953_v1  ;;  %669 = vmatprep.mubr.bf16.mxu1 %v953_v1 }
  0x6a   :  { %890 = vmatmul.mubr.msk.bf16.gmra.mrb[48].mxu0 %vm260_vm0, %v945_v29  ;;  %906 = vmatmul.mubr.msk.bf16.gmra.mrb[48].mxu1 %vm260_vm0, %v946_v30 }
  0x6b   :  { %519 = vmatprep.mubr.bf16.mxu0 %v953_v1  ;;  %679 = vmatprep.mubr.bf16.mxu1 %v953_v1 }
  0x72   :  { %891 = vmatmul.mubr.msk.bf16.gmra.mrb[52].mxu0 %vm260_vm0, %v947_v31  ;;  %907 = vmatmul.mubr.msk.bf16.gmra.mrb[52].mxu1 %vm260_vm0, %v948_v32 }
  0x73   :  { %529 = vmatprep.mubr.bf16.mxu0 %v953_v1  ;;  %689 = vmatprep.mubr.bf16.mxu1 %v953_v1 }
  0x7a   :  { %892 = vmatmul.mubr.msk.bf16.gmra.mrb[56].mxu0 %vm260_vm0, %v949_v33  ;;  %908 = vmatmul.mubr.msk.bf16.gmra.mrb[56].mxu1 %vm260_vm0, %v950_v34 }
  0x7b   :  { %539 = vmatprep.mubr.bf16.mxu0 %v953_v1  ;;  %699 = vmatprep.mubr.bf16.mxu1 %v953_v1 }
  0x82   :  { %893 = vmatmul.mubr.msk.bf16.gmra.mrb[60].mxu0 %vm260_vm0, %v951_v35  ;;  %909 = vmatmul.mubr.msk.bf16.gmra.mrb[60].mxu1 %vm260_vm0, %v952_v36 }
  0xdd   :  { %v391_v37 = vpop.f32.mrb[0].mxu0  ;;  %v551_v38 = vpop.f32.mrb[0].mxu1 }
  0xde   :  { %710 = vst [vmem:[%s1527_s2] sm:$0xff] %v391_v37  ;;  %774 = vst [vmem:[%s1527_s2 + $0x200] sm:$0xff] %v551_v38  ;;  %v393_v39 = vpop.f32.mrb[1].mxu0  ;;  %v553_v40 = vpop.f32.mrb[1].mxu1 }
  0xdf   :  { %711 = vst [vmem:[%s1527_s2 + $0x8] sm:$0xff] %v393_v39  ;;  %775 = vst [vmem:[%s1527_s2 + $0x208] sm:$0xff] %v553_v40  ;;  %v395_v41 = vpop.f32.mrb[2].mxu0  ;;  %v555_v42 = vpop.f32.mrb[2].mxu1 }
  0xe0   :  { %712 = vst [vmem:[%s1527_s2 + $0x10] sm:$0xff] %v395_v41  ;;  %776 = vst [vmem:[%s1527_s2 + $0x210] sm:$0xff] %v555_v42  ;;  %v397_v43 = vpop.f32.mrb[3].mxu0  ;;  %v557_v44 = vpop.f32.mrb[3].mxu1 }
  0xe1   :  { %713 = vst [vmem:[%s1527_s2 + $0x18] sm:$0xff] %v397_v43  ;;  %777 = vst [vmem:[%s1527_s2 + $0x218] sm:$0xff] %v557_v44 }
  0xe5   :  { %v401_v45 = vpop.f32.mrb[4].mxu0  ;;  %v561_v46 = vpop.f32.mrb[4].mxu1 }
  0xe6   :  { %714 = vst [vmem:[%s1527_s2 + $0x20] sm:$0xff] %v401_v45  ;;  %778 = vst [vmem:[%s1527_s2 + $0x220] sm:$0xff] %v561_v46  ;;  %v403_v47 = vpop.f32.mrb[5].mxu0  ;;  %v563_v48 = vpop.f32.mrb[5].mxu1 }
  0xe7   :  { %715 = vst [vmem:[%s1527_s2 + $0x28] sm:$0xff] %v403_v47  ;;  %779 = vst [vmem:[%s1527_s2 + $0x228] sm:$0xff] %v563_v48  ;;  %v405_v49 = vpop.f32.mrb[6].mxu0  ;;  %v565_v50 = vpop.f32.mrb[6].mxu1 }
  0xe8   :  { %716 = vst [vmem:[%s1527_s2 + $0x30] sm:$0xff] %v405_v49  ;;  %780 = vst [vmem:[%s1527_s2 + $0x230] sm:$0xff] %v565_v50  ;;  %v407_v51 = vpop.f32.mrb[7].mxu0  ;;  %v567_v52 = vpop.f32.mrb[7].mxu1 }
  0xe9   :  { %717 = vst [vmem:[%s1527_s2 + $0x38] sm:$0xff] %v407_v51  ;;  %781 = vst [vmem:[%s1527_s2 + $0x238] sm:$0xff] %v567_v52 }
  0xed   :  { %v411_v53 = vpop.f32.mrb[8].mxu0  ;;  %v571_v54 = vpop.f32.mrb[8].mxu1 }
  0xee   :  { %718 = vst [vmem:[%s1527_s2 + $0x40] sm:$0xff] %v411_v53  ;;  %782 = vst [vmem:[%s1527_s2 + $0x240] sm:$0xff] %v571_v54  ;;  %v413_v55 = vpop.f32.mrb[9].mxu0  ;;  %v573_v56 = vpop.f32.mrb[9].mxu1 }
  0xef   :  { %719 = vst [vmem:[%s1527_s2 + $0x48] sm:$0xff] %v413_v55  ;;  %783 = vst [vmem:[%s1527_s2 + $0x248] sm:$0xff] %v573_v56  ;;  %v415_v57 = vpop.f32.mrb[10].mxu0  ;;  %v575_v58 = vpop.f32.mrb[10].mxu1 }
  0xf0   :  { %720 = vst [vmem:[%s1527_s2 + $0x50] sm:$0xff] %v415_v57  ;;  %784 = vst [vmem:[%s1527_s2 + $0x250] sm:$0xff] %v575_v58  ;;  %v417_v59 = vpop.f32.mrb[11].mxu0  ;;  %v577_v60 = vpop.f32.mrb[11].mxu1 }
  0xf1   :  { %721 = vst [vmem:[%s1527_s2 + $0x58] sm:$0xff] %v417_v59  ;;  %785 = vst [vmem:[%s1527_s2 + $0x258] sm:$0xff] %v577_v60 }
  0xf5   :  { %v421_v61 = vpop.f32.mrb[12].mxu0  ;;  %v581_v62 = vpop.f32.mrb[12].mxu1 }
  0xf6   :  { %722 = vst [vmem:[%s1527_s2 + $0x60] sm:$0xff] %v421_v61  ;;  %786 = vst [vmem:[%s1527_s2 + $0x260] sm:$0xff] %v581_v62  ;;  %v423_v63 = vpop.f32.mrb[13].mxu0  ;;  %v583_v0 = vpop.f32.mrb[13].mxu1 }
  0xf7   :  { %723 = vst [vmem:[%s1527_s2 + $0x68] sm:$0xff] %v423_v63  ;;  %787 = vst [vmem:[%s1527_s2 + $0x268] sm:$0xff] %v583_v0  ;;  %v425_v1 = vpop.f32.mrb[14].mxu0  ;;  %v585_v2 = vpop.f32.mrb[14].mxu1 }
  0xf8   :  { %724 = vst [vmem:[%s1527_s2 + $0x70] sm:$0xff] %v425_v1  ;;  %788 = vst [vmem:[%s1527_s2 + $0x270] sm:$0xff] %v585_v2  ;;  %v427_v3 = vpop.f32.mrb[15].mxu0  ;;  %v587_v4 = vpop.f32.mrb[15].mxu1 }
  0xf9   :  { %725 = vst [vmem:[%s1527_s2 + $0x78] sm:$0xff] %v427_v3  ;;  %789 = vst [vmem:[%s1527_s2 + $0x278] sm:$0xff] %v587_v4 }
  0xfd   :  { %v431_v5 = vpop.f32.mrb[16].mxu0  ;;  %v591_v6 = vpop.f32.mrb[16].mxu1 }
  0xfe   :  { %726 = vst [vmem:[%s1527_s2 + $0x80] sm:$0xff] %v431_v5  ;;  %790 = vst [vmem:[%s1527_s2 + $0x280] sm:$0xff] %v591_v6  ;;  %v433_v7 = vpop.f32.mrb[17].mxu0  ;;  %v593_v8 = vpop.f32.mrb[17].mxu1 }
  0xff   :  { %727 = vst [vmem:[%s1527_s2 + $0x88] sm:$0xff] %v433_v7  ;;  %791 = vst [vmem:[%s1527_s2 + $0x288] sm:$0xff] %v593_v8  ;;  %v435_v9 = vpop.f32.mrb[18].mxu0  ;;  %v595_v10 = vpop.f32.mrb[18].mxu1 }
 0x100   :  { %728 = vst [vmem:[%s1527_s2 + $0x90] sm:$0xff] %v435_v9  ;;  %792 = vst [vmem:[%s1527_s2 + $0x290] sm:$0xff] %v595_v10  ;;  %v437_v11 = vpop.f32.mrb[19].mxu0  ;;  %v597_v12 = vpop.f32.mrb[19].mxu1 }
 0x101   :  { %729 = vst [vmem:[%s1527_s2 + $0x98] sm:$0xff] %v437_v11  ;;  %793 = vst [vmem:[%s1527_s2 + $0x298] sm:$0xff] %v597_v12 }
 0x105   :  { %v441_v13 = vpop.f32.mrb[20].mxu0  ;;  %v601_v14 = vpop.f32.mrb[20].mxu1 }
 0x106   :  { %730 = vst [vmem:[%s1527_s2 + $0xa0] sm:$0xff] %v441_v13  ;;  %794 = vst [vmem:[%s1527_s2 + $0x2a0] sm:$0xff] %v601_v14  ;;  %v443_v15 = vpop.f32.mrb[21].mxu0  ;;  %v603_v16 = vpop.f32.mrb[21].mxu1 }
 0x107   :  { %731 = vst [vmem:[%s1527_s2 + $0xa8] sm:$0xff] %v443_v15  ;;  %795 = vst [vmem:[%s1527_s2 + $0x2a8] sm:$0xff] %v603_v16  ;;  %v445_v17 = vpop.f32.mrb[22].mxu0  ;;  %v605_v18 = vpop.f32.mrb[22].mxu1 }
 0x108   :  { %732 = vst [vmem:[%s1527_s2 + $0xb0] sm:$0xff] %v445_v17  ;;  %796 = vst [vmem:[%s1527_s2 + $0x2b0] sm:$0xff] %v605_v18  ;;  %v447_v19 = vpop.f32.mrb[23].mxu0  ;;  %v607_v20 = vpop.f32.mrb[23].mxu1 }
 0x109   :  { %733 = vst [vmem:[%s1527_s2 + $0xb8] sm:$0xff] %v447_v19  ;;  %797 = vst [vmem:[%s1527_s2 + $0x2b8] sm:$0xff] %v607_v20 }
 0x10d   :  { %v451_v21 = vpop.f32.mrb[24].mxu0  ;;  %v611_v22 = vpop.f32.mrb[24].mxu1 }
 0x10e   :  { %734 = vst [vmem:[%s1527_s2 + $0xc0] sm:$0xff] %v451_v21  ;;  %798 = vst [vmem:[%s1527_s2 + $0x2c0] sm:$0xff] %v611_v22  ;;  %v453_v23 = vpop.f32.mrb[25].mxu0  ;;  %v613_v24 = vpop.f32.mrb[25].mxu1 }
 0x10f   :  { %735 = vst [vmem:[%s1527_s2 + $0xc8] sm:$0xff] %v453_v23  ;;  %799 = vst [vmem:[%s1527_s2 + $0x2c8] sm:$0xff] %v613_v24  ;;  %v455_v25 = vpop.f32.mrb[26].mxu0  ;;  %v615_v26 = vpop.f32.mrb[26].mxu1 }
 0x110   :  { %736 = vst [vmem:[%s1527_s2 + $0xd0] sm:$0xff] %v455_v25  ;;  %800 = vst [vmem:[%s1527_s2 + $0x2d0] sm:$0xff] %v615_v26  ;;  %v457_v27 = vpop.f32.mrb[27].mxu0  ;;  %v617_v28 = vpop.f32.mrb[27].mxu1 }
 0x111   :  { %737 = vst [vmem:[%s1527_s2 + $0xd8] sm:$0xff] %v457_v27  ;;  %801 = vst [vmem:[%s1527_s2 + $0x2d8] sm:$0xff] %v617_v28 }
 0x115   :  { %v461_v29 = vpop.f32.mrb[28].mxu0  ;;  %v621_v30 = vpop.f32.mrb[28].mxu1 }
 0x116   :  { %738 = vst [vmem:[%s1527_s2 + $0xe0] sm:$0xff] %v461_v29  ;;  %802 = vst [vmem:[%s1527_s2 + $0x2e0] sm:$0xff] %v621_v30  ;;  %v463_v31 = vpop.f32.mrb[29].mxu0  ;;  %v623_v32 = vpop.f32.mrb[29].mxu1 }
 0x117   :  { %739 = vst [vmem:[%s1527_s2 + $0xe8] sm:$0xff] %v463_v31  ;;  %803 = vst [vmem:[%s1527_s2 + $0x2e8] sm:$0xff] %v623_v32  ;;  %v465_v33 = vpop.f32.mrb[30].mxu0  ;;  %v625_v34 = vpop.f32.mrb[30].mxu1 }
 0x118   :  { %740 = vst [vmem:[%s1527_s2 + $0xf0] sm:$0xff] %v465_v33  ;;  %804 = vst [vmem:[%s1527_s2 + $0x2f0] sm:$0xff] %v625_v34  ;;  %v467_v35 = vpop.f32.mrb[31].mxu0  ;;  %v627_v36 = vpop.f32.mrb[31].mxu1 }
 0x119   :  { %741 = vst [vmem:[%s1527_s2 + $0xf8] sm:$0xff] %v467_v35  ;;  %805 = vst [vmem:[%s1527_s2 + $0x2f8] sm:$0xff] %v627_v36 }
 0x11d   :  { %v471_v37 = vpop.f32.mrb[32].mxu0  ;;  %v631_v38 = vpop.f32.mrb[32].mxu1 }
 0x11e   :  { %742 = vst [vmem:[%s1527_s2 + $0x100] sm:$0xff] %v471_v37  ;;  %806 = vst [vmem:[%s1527_s2 + $0x300] sm:$0xff] %v631_v38  ;;  %v473_v39 = vpop.f32.mrb[33].mxu0  ;;  %v633_v40 = vpop.f32.mrb[33].mxu1 }
 0x11f   :  { %743 = vst [vmem:[%s1527_s2 + $0x108] sm:$0xff] %v473_v39  ;;  %807 = vst [vmem:[%s1527_s2 + $0x308] sm:$0xff] %v633_v40  ;;  %v475_v41 = vpop.f32.mrb[34].mxu0  ;;  %v635_v42 = vpop.f32.mrb[34].mxu1 }
 0x120   :  { %744 = vst [vmem:[%s1527_s2 + $0x110] sm:$0xff] %v475_v41  ;;  %808 = vst [vmem:[%s1527_s2 + $0x310] sm:$0xff] %v635_v42  ;;  %v477_v43 = vpop.f32.mrb[35].mxu0  ;;  %v637_v44 = vpop.f32.mrb[35].mxu1 }
 0x121   :  { %745 = vst [vmem:[%s1527_s2 + $0x118] sm:$0xff] %v477_v43  ;;  %809 = vst [vmem:[%s1527_s2 + $0x318] sm:$0xff] %v637_v44 }
 0x125   :  { %v481_v45 = vpop.f32.mrb[36].mxu0  ;;  %v641_v46 = vpop.f32.mrb[36].mxu1 }
 0x126   :  { %746 = vst [vmem:[%s1527_s2 + $0x120] sm:$0xff] %v481_v45  ;;  %810 = vst [vmem:[%s1527_s2 + $0x320] sm:$0xff] %v641_v46  ;;  %v483_v47 = vpop.f32.mrb[37].mxu0  ;;  %v643_v48 = vpop.f32.mrb[37].mxu1 }
 0x127   :  { %747 = vst [vmem:[%s1527_s2 + $0x128] sm:$0xff] %v483_v47  ;;  %811 = vst [vmem:[%s1527_s2 + $0x328] sm:$0xff] %v643_v48  ;;  %v485_v49 = vpop.f32.mrb[38].mxu0  ;;  %v645_v50 = vpop.f32.mrb[38].mxu1 }
 0x128   :  { %748 = vst [vmem:[%s1527_s2 + $0x130] sm:$0xff] %v485_v49  ;;  %812 = vst [vmem:[%s1527_s2 + $0x330] sm:$0xff] %v645_v50  ;;  %v487_v51 = vpop.f32.mrb[39].mxu0  ;;  %v647_v52 = vpop.f32.mrb[39].mxu1 }
 0x129   :  { %749 = vst [vmem:[%s1527_s2 + $0x138] sm:$0xff] %v487_v51  ;;  %813 = vst [vmem:[%s1527_s2 + $0x338] sm:$0xff] %v647_v52 }
 0x12d   :  { %v491_v53 = vpop.f32.mrb[40].mxu0  ;;  %v651_v54 = vpop.f32.mrb[40].mxu1 }
 0x12e   :  { %750 = vst [vmem:[%s1527_s2 + $0x140] sm:$0xff] %v491_v53  ;;  %814 = vst [vmem:[%s1527_s2 + $0x340] sm:$0xff] %v651_v54  ;;  %v493_v55 = vpop.f32.mrb[41].mxu0  ;;  %v653_v56 = vpop.f32.mrb[41].mxu1 }
 0x12f   :  { %751 = vst [vmem:[%s1527_s2 + $0x148] sm:$0xff] %v493_v55  ;;  %815 = vst [vmem:[%s1527_s2 + $0x348] sm:$0xff] %v653_v56  ;;  %v495_v57 = vpop.f32.mrb[42].mxu0  ;;  %v655_v58 = vpop.f32.mrb[42].mxu1 }
 0x130   :  { %752 = vst [vmem:[%s1527_s2 + $0x150] sm:$0xff] %v495_v57  ;;  %816 = vst [vmem:[%s1527_s2 + $0x350] sm:$0xff] %v655_v58  ;;  %v497_v59 = vpop.f32.mrb[43].mxu0  ;;  %v657_v60 = vpop.f32.mrb[43].mxu1 }
 0x131   :  { %753 = vst [vmem:[%s1527_s2 + $0x158] sm:$0xff] %v497_v59  ;;  %817 = vst [vmem:[%s1527_s2 + $0x358] sm:$0xff] %v657_v60 }
 0x135   :  { %v501_v61 = vpop.f32.mrb[44].mxu0  ;;  %v661_v62 = vpop.f32.mrb[44].mxu1 }
 0x136   :  { %754 = vst [vmem:[%s1527_s2 + $0x160] sm:$0xff] %v501_v61  ;;  %818 = vst [vmem:[%s1527_s2 + $0x360] sm:$0xff] %v661_v62  ;;  %v503_v63 = vpop.f32.mrb[45].mxu0  ;;  %v663_v0 = vpop.f32.mrb[45].mxu1 }
 0x137   :  { %755 = vst [vmem:[%s1527_s2 + $0x168] sm:$0xff] %v503_v63  ;;  %819 = vst [vmem:[%s1527_s2 + $0x368] sm:$0xff] %v663_v0  ;;  %v505_v1 = vpop.f32.mrb[46].mxu0  ;;  %v665_v2 = vpop.f32.mrb[46].mxu1 }
 0x138   :  { %756 = vst [vmem:[%s1527_s2 + $0x170] sm:$0xff] %v505_v1  ;;  %820 = vst [vmem:[%s1527_s2 + $0x370] sm:$0xff] %v665_v2  ;;  %v507_v3 = vpop.f32.mrb[47].mxu0  ;;  %v667_v4 = vpop.f32.mrb[47].mxu1 }
 0x139   :  { %757 = vst [vmem:[%s1527_s2 + $0x178] sm:$0xff] %v507_v3  ;;  %821 = vst [vmem:[%s1527_s2 + $0x378] sm:$0xff] %v667_v4 }
 0x13d   :  { %v511_v5 = vpop.f32.mrb[48].mxu0  ;;  %v671_v6 = vpop.f32.mrb[48].mxu1 }
 0x13e   :  { %758 = vst [vmem:[%s1527_s2 + $0x180] sm:$0xff] %v511_v5  ;;  %822 = vst [vmem:[%s1527_s2 + $0x380] sm:$0xff] %v671_v6  ;;  %v513_v7 = vpop.f32.mrb[49].mxu0  ;;  %v673_v8 = vpop.f32.mrb[49].mxu1 }
 0x13f   :  { %759 = vst [vmem:[%s1527_s2 + $0x188] sm:$0xff] %v513_v7  ;;  %823 = vst [vmem:[%s1527_s2 + $0x388] sm:$0xff] %v673_v8  ;;  %v515_v9 = vpop.f32.mrb[50].mxu0  ;;  %v675_v10 = vpop.f32.mrb[50].mxu1 }
 0x140   :  { %760 = vst [vmem:[%s1527_s2 + $0x190] sm:$0xff] %v515_v9  ;;  %824 = vst [vmem:[%s1527_s2 + $0x390] sm:$0xff] %v675_v10  ;;  %v517_v11 = vpop.f32.mrb[51].mxu0  ;;  %v677_v12 = vpop.f32.mrb[51].mxu1 }
 0x141   :  { %761 = vst [vmem:[%s1527_s2 + $0x198] sm:$0xff] %v517_v11  ;;  %825 = vst [vmem:[%s1527_s2 + $0x398] sm:$0xff] %v677_v12 }
 0x145   :  { %v521_v13 = vpop.f32.mrb[52].mxu0  ;;  %v681_v14 = vpop.f32.mrb[52].mxu1 }
 0x146   :  { %762 = vst [vmem:[%s1527_s2 + $0x1a0] sm:$0xff] %v521_v13  ;;  %826 = vst [vmem:[%s1527_s2 + $0x3a0] sm:$0xff] %v681_v14  ;;  %v523_v15 = vpop.f32.mrb[53].mxu0  ;;  %v683_v16 = vpop.f32.mrb[53].mxu1 }
 0x147   :  { %763 = vst [vmem:[%s1527_s2 + $0x1a8] sm:$0xff] %v523_v15  ;;  %827 = vst [vmem:[%s1527_s2 + $0x3a8] sm:$0xff] %v683_v16  ;;  %v525_v17 = vpop.f32.mrb[54].mxu0  ;;  %v685_v18 = vpop.f32.mrb[54].mxu1 }
 0x148   :  { %764 = vst [vmem:[%s1527_s2 + $0x1b0] sm:$0xff] %v525_v17  ;;  %828 = vst [vmem:[%s1527_s2 + $0x3b0] sm:$0xff] %v685_v18  ;;  %v527_v19 = vpop.f32.mrb[55].mxu0  ;;  %v687_v20 = vpop.f32.mrb[55].mxu1 }
 0x149   :  { %765 = vst [vmem:[%s1527_s2 + $0x1b8] sm:$0xff] %v527_v19  ;;  %829 = vst [vmem:[%s1527_s2 + $0x3b8] sm:$0xff] %v687_v20 }
 0x14d   :  { %v531_v21 = vpop.f32.mrb[56].mxu0  ;;  %v691_v22 = vpop.f32.mrb[56].mxu1 }
 0x14e   :  { %766 = vst [vmem:[%s1527_s2 + $0x1c0] sm:$0xff] %v531_v21  ;;  %830 = vst [vmem:[%s1527_s2 + $0x3c0] sm:$0xff] %v691_v22  ;;  %v533_v23 = vpop.f32.mrb[57].mxu0  ;;  %v693_v24 = vpop.f32.mrb[57].mxu1 }
 0x14f   :  { %767 = vst [vmem:[%s1527_s2 + $0x1c8] sm:$0xff] %v533_v23  ;;  %831 = vst [vmem:[%s1527_s2 + $0x3c8] sm:$0xff] %v693_v24  ;;  %v535_v25 = vpop.f32.mrb[58].mxu0  ;;  %v695_v26 = vpop.f32.mrb[58].mxu1 }
 0x150   :  { %768 = vst [vmem:[%s1527_s2 + $0x1d0] sm:$0xff] %v535_v25  ;;  %832 = vst [vmem:[%s1527_s2 + $0x3d0] sm:$0xff] %v695_v26  ;;  %v537_v27 = vpop.f32.mrb[59].mxu0  ;;  %v697_v28 = vpop.f32.mrb[59].mxu1 }
 0x151   :  { %769 = vst [vmem:[%s1527_s2 + $0x1d8] sm:$0xff] %v537_v27  ;;  %833 = vst [vmem:[%s1527_s2 + $0x3d8] sm:$0xff] %v697_v28 }
 0x155   :  { %v541_v29 = vpop.f32.mrb[60].mxu0  ;;  %v701_v30 = vpop.f32.mrb[60].mxu1 }
 0x156   :  { %770 = vst [vmem:[%s1527_s2 + $0x1e0] sm:$0xff] %v541_v29  ;;  %834 = vst [vmem:[%s1527_s2 + $0x3e0] sm:$0xff] %v701_v30  ;;  %v543_v31 = vpop.f32.mrb[61].mxu0  ;;  %v703_v32 = vpop.f32.mrb[61].mxu1 }
 0x157   :  { %771 = vst [vmem:[%s1527_s2 + $0x1e8] sm:$0xff] %v543_v31  ;;  %835 = vst [vmem:[%s1527_s2 + $0x3e8] sm:$0xff] %v703_v32  ;;  %v545_v33 = vpop.f32.mrb[62].mxu0  ;;  %v705_v34 = vpop.f32.mrb[62].mxu1 }
 0x158   :  { %772 = vst [vmem:[%s1527_s2 + $0x1f0] sm:$0xff] %v545_v33  ;;  %836 = vst [vmem:[%s1527_s2 + $0x3f0] sm:$0xff] %v705_v34  ;;  %v547_v35 = vpop.f32.mrb[63].mxu0  ;;  %v707_v36 = vpop.f32.mrb[63].mxu1 }
 0x159   :  { %773 = vst [vmem:[%s1527_s2 + $0x1f8] sm:$0xff] %v547_v35  ;;  %837 = vst [vmem:[%s1527_s2 + $0x3f8] sm:$0xff] %v707_v36 }

// kernel: tile.62
= control target key start
LH: loop header
LB: loop body
LE: loop exit
PB: predicated region body
PF: predicated region fallthrough
CT: control target
= control target key end

     0   :  { %s22_s0 = inlined_call_operand.vmem [shape: f32[16], index: 0, kind: input, shape index: {}]   ;;  %s23_s1 = inlined_call_operand.vmem [shape: f32[8,16], index: 1, kind: output, shape index: {}]  }
   0x1   :  { %v4_v0 = vld [vmem:[%s22_s0] ss:$0 sm:$0xff] }
   0x2   :  { %5 = vst [vmem:[%s23_s1] sm:$0xff] %v4_v0 }

// kernel: tile.63
= control target key start
LH: loop header
LB: loop body
LE: loop exit
PB: predicated region body
PF: predicated region fallthrough
CT: control target
= control target key end

     0   :  { %s67_s10 = smov 112   ;;  %s68_s11 = smov 80   ;;  %vm3_vm0 = vcmask 130048   ;;  %vm9_vm1 = vcmask 1048448   ;;  %vm15_vm2 = vcmask 917248   ;;  %vm21_vm3 = vcmask 786048   ;;  %s111_s0 = inlined_call_operand.vmem [shape: f32[8,16], index: 0, kind: input, shape index: {}]   ;;  %s112_s1 = inlined_call_operand.vmem [shape: f32[1,128], index: 1, kind: output, shape index: {}]  }
   0x1   :  { %v53_v0 = vld [vmem:[%s111_s0 + $0x7] sm:$0x1]   ;;  %v55_v1 = vld [vmem:[%s111_s0 + $0x5] sm:$0x1]   ;;  %v54_v2 = vld [vmem:[%s111_s0 + $0x6] sm:$0x1]  }
   0x2   :  { %7 = vrot.lane.b32.xlu0 %v53_v0, %s67_s10  ;;  %19 = vrot.lane.b32.xlu1 %v55_v1, %s68_s11  ;;  %v56_v3 = vld [vmem:[%s111_s0 + $0x4] sm:$0x1]   ;;  %v2_v4 = vld [vmem:[%s111_s0] sm:$0x1]   ;;  %s69_s18 = smov 96   ;;  %s70_s19 = smov 64  }
   0x3   :  { %4 = vst.msk [vmem:[#allocation0] sm:$0x1] %vm3_vm0, %v2_v4   ;;  %v57_v5 = vld [vmem:[%s111_s0 + $0x3] sm:$0x1]   ;;  %v58_v6 = vld [vmem:[%s111_s0 + $0x2] sm:$0x1]  }
   0x4   :  { %s71_s24 = smov 48   ;;  %s72_s25 = smov 32   ;;  %v59_v7 = vld [vmem:[%s111_s0 + $0x1] sm:$0x1]   ;;  %vm27_vm4 = vcmask 654848   ;;  %vm33_vm5 = vcmask 523648  }
   0x5   :  { %s73_s0 = smov 16   ;;  %vm39_vm6 = vcmask 392448   ;;  %vm45_vm7 = vcmask 261248  }
   0x6   :  { %13 = vrot.lane.b32.xlu0 %v54_v2, %s69_s18  ;;  %25 = vrot.lane.b32.xlu1 %v56_v3, %s70_s19 }
   0xa   :  { %31 = vrot.lane.b32.xlu0 %v57_v5, %s71_s24  ;;  %37 = vrot.lane.b32.xlu1 %v58_v6, %s72_s25 }
   0xe   :  { %43 = vrot.lane.b32.xlu0 %v59_v7, %s73_s0 }
  0x74   :  { %v8_v8 = vpop.permute.xlu0 %7   ;;  %v20_v9 = vpop.permute.xlu1 %19  }
  0x75   :  { %10 = vst.msk [vmem:[#allocation0] sm:$0x1] %vm9_vm1, %v8_v8  }
  0x78   :  { %v14_v10 = vpop.permute.xlu0 %13   ;;  %v26_v11 = vpop.permute.xlu1 %25  }
  0x79   :  { %16 = vst.msk [vmem:[#allocation0] sm:$0x1] %vm15_vm2, %v14_v10  }
  0x7a   :  { %22 = vst.msk [vmem:[#allocation0] sm:$0x1] %vm21_vm3, %v20_v9  }
  0x7b   :  { %28 = vst.msk [vmem:[#allocation0] sm:$0x1] %vm27_vm4, %v26_v11  }
  0x7c   :  { %v32_v12 = vpop.permute.xlu0 %31   ;;  %v38_v13 = vpop.permute.xlu1 %37  }
  0x7d   :  { %34 = vst.msk [vmem:[#allocation0] sm:$0x1] %vm33_vm5, %v32_v12  }
  0x7e   :  { %40 = vst.msk [vmem:[#allocation0] sm:$0x1] %vm39_vm6, %v38_v13  }
  0x80   :  { %v44_v14 = vpop.permute.xlu0 %43  }
  0x81   :  { %46 = vst.msk [vmem:[#allocation0] sm:$0x1] %vm45_vm7, %v44_v14  }
  0x88   :  { %v50_v15 = vld [vmem:[#allocation0] sm:$0x1] }
  0x89   :  { %52 = vst [vmem:[%s112_s1] sm:$0x1] %v50_v15 }

// kernel: generator_forward.17
= control target key start
LH: loop header
LB: loop body
LE: loop exit
PB: predicated region body
PF: predicated region fallthrough
CT: control target
= control target key end

     0   :  { %s676_s22 = smov 16   ;;  %s677_s23 = smov 48   ;;  %s1217_s0 = inlined_call_operand.vmem [shape: f32[256,128], index: 0, kind: input, shape index: {}]   ;;  %s1218_s1 = inlined_call_operand.vmem [shape: f32[1,128], index: 1, kind: input, shape index: {}]   ;;  %s1219_s2 = inlined_call_operand.vmem [shape: f32[1,128], index: 2, kind: input, shape index: {}]   ;;  %s1220_s3 = inlined_call_operand.vmem [shape: bf16[256,128], index: 3, kind: output, shape index: {}]  }
   0x1   :  { %v706_v0 = vld [vmem:[%s1217_s0] sm:$0xff]  ;;  %v711_v1 = vld [vmem:[%s1217_s0 + $0x8] sm:$0xff]  ;;  %v716_v2 = vld [vmem:[%s1217_s0 + $0x10] sm:$0xff]  ;;  %s678_s24 = smov 32   ;;  %s680_s25 = smov 80  }
   0x2   :  { %v46_v3 = vadd.f32 %v711_v1, %v706_v0  ;;  %v723_v4 = vld [vmem:[%s1217_s0 + $0x18] sm:$0xff]  ;;  %v729_v6 = vld [vmem:[%s1217_s0 + $0x20] sm:$0xff]  ;;  %v735_v8 = vld [vmem:[%s1217_s0 + $0x28] sm:$0xff]  ;;  %s681_s26 = smov 96   ;;  %s682_s27 = smov 112  }
   0x3   :  { %v741_v10 = vld [vmem:[%s1217_s0 + $0x30] sm:$0xff]  ;;  %v747_v12 = vld [vmem:[%s1217_s0 + $0x38] sm:$0xff]  ;;  %v753_v14 = vld [vmem:[%s1217_s0 + $0x40] sm:$0xff] }
   0x4   :  { %v47_v5 = vadd.f32 %v46_v3, %v716_v2  ;;  %v759_v16 = vld [vmem:[%s1217_s0 + $0x48] sm:$0xff]  ;;  %v765_v18 = vld [vmem:[%s1217_s0 + $0x50] sm:$0xff]  ;;  %v771_v20 = vld [vmem:[%s1217_s0 + $0x58] sm:$0xff] }
   0x5   :  { %v777_v22 = vld [vmem:[%s1217_s0 + $0x60] sm:$0xff]  ;;  %v783_v24 = vld [vmem:[%s1217_s0 + $0x68] sm:$0xff]  ;;  %v789_v26 = vld [vmem:[%s1217_s0 + $0x70] sm:$0xff] }
   0x6   :  { %v48_v7 = vadd.f32 %v47_v5, %v723_v4  ;;  %v795_v28 = vld [vmem:[%s1217_s0 + $0x78] sm:$0xff]  ;;  %v801_v30 = vld [vmem:[%s1217_s0 + $0x80] sm:$0xff]  ;;  %v807_v32 = vld [vmem:[%s1217_s0 + $0x88] sm:$0xff] }
   0x7   :  { %v813_v34 = vld [vmem:[%s1217_s0 + $0x90] sm:$0xff]  ;;  %v819_v36 = vld [vmem:[%s1217_s0 + $0x98] sm:$0xff]  ;;  %v825_v38 = vld [vmem:[%s1217_s0 + $0xa0] sm:$0xff] }
   0x8   :  { %v49_v9 = vadd.f32 %v48_v7, %v729_v6  ;;  %v831_v40 = vld [vmem:[%s1217_s0 + $0xa8] sm:$0xff]  ;;  %v837_v42 = vld [vmem:[%s1217_s0 + $0xb0] sm:$0xff]  ;;  %v843_v44 = vld [vmem:[%s1217_s0 + $0xb8] sm:$0xff] }
   0x9   :  { %v849_v46 = vld [vmem:[%s1217_s0 + $0xc0] sm:$0xff]  ;;  %v855_v48 = vld [vmem:[%s1217_s0 + $0xc8] sm:$0xff]  ;;  %v861_v50 = vld [vmem:[%s1217_s0 + $0xd0] sm:$0xff] }
   0xa   :  { %v50_v11 = vadd.f32 %v49_v9, %v735_v8  ;;  %v867_v52 = vld [vmem:[%s1217_s0 + $0xd8] sm:$0xff]  ;;  %v873_v54 = vld [vmem:[%s1217_s0 + $0xe0] sm:$0xff]  ;;  %v879_v56 = vld [vmem:[%s1217_s0 + $0xe8] sm:$0xff] }
   0xb   :  { %v885_v58 = vld [vmem:[%s1217_s0 + $0xf0] sm:$0xff]  ;;  %v891_v60 = vld [vmem:[%s1217_s0 + $0xf8] sm:$0xff]  ;;  %s679_s0 = smov 64  }
   0xc   :  { %v51_v13 = vadd.f32 %v50_v11, %v741_v10 }
   0xe   :  { %v52_v15 = vadd.f32 %v51_v13, %v747_v12 }
  0x10   :  { %v53_v17 = vadd.f32 %v52_v15, %v753_v14 }
  0x12   :  { %v54_v19 = vadd.f32 %v53_v17, %v759_v16 }
  0x14   :  { %v55_v21 = vadd.f32 %v54_v19, %v765_v18 }
  0x16   :  { %v56_v23 = vadd.f32 %v55_v21, %v771_v20 }
  0x18   :  { %v57_v25 = vadd.f32 %v56_v23, %v777_v22 }
  0x1a   :  { %v58_v27 = vadd.f32 %v57_v25, %v783_v24 }
  0x1c   :  { %v59_v29 = vadd.f32 %v58_v27, %v789_v26 }
  0x1e   :  { %v60_v31 = vadd.f32 %v59_v29, %v795_v28 }
  0x20   :  { %v61_v33 = vadd.f32 %v60_v31, %v801_v30 }
  0x22   :  { %v62_v35 = vadd.f32 %v61_v33, %v807_v32 }
  0x24   :  { %v63_v37 = vadd.f32 %v62_v35, %v813_v34 }
  0x26   :  { %v64_v39 = vadd.f32 %v63_v37, %v819_v36  ;;  %v105_v37 = vlaneseq }
  0x28   :  { %v65_v41 = vadd.f32 %v64_v39, %v825_v38 }
  0x2a   :  { %v66_v43 = vadd.f32 %v65_v41, %v831_v40  ;;  %v902_v41 = vshrl.u32 %v105_v37, 7 }
  0x2c   :  { %v67_v45 = vadd.f32 %v66_v43, %v837_v42 }
  0x2e   :  { %v68_v47 = vadd.f32 %v67_v45, %v843_v44  ;;  %v107_v45 = vsub.s32 0, %v902_v41 }
  0x30   :  { %v69_v49 = vadd.f32 %v68_v47, %v849_v46 }
  0x32   :  { %v70_v51 = vadd.f32 %v69_v49, %v855_v48 }
  0x34   :  { %v71_v53 = vadd.f32 %v70_v51, %v861_v50 }
  0x36   :  { %v72_v55 = vadd.f32 %v71_v53, %v867_v52 }
  0x38   :  { %v73_v57 = vadd.f32 %v72_v55, %v873_v54 }
  0x3a   :  { %v74_v59 = vadd.f32 %v73_v57, %v879_v56 }
  0x3c   :  { %v75_v61 = vadd.f32 %v74_v59, %v885_v58 }
  0x3e   :  { %v76_v62 = vadd.f32 %v75_v61, %v891_v60 }
  0x40   :  { %v77_v63 = vrot.slane %v76_v62, 4 }
  0x42   :  { %v78_v3 = vadd.f32 %v77_v63, %v76_v62 }
  0x44   :  { %v79_v5 = vrot.slane %v78_v3, 2 }
  0x46   :  { %v80_v7 = vadd.f32 %v79_v5, %v78_v3 }
  0x48   :  { %v81_v9 = vrot.slane %v80_v7, 1 }
  0x4a   :  { %v82_v11 = vadd.f32 %v81_v9, %v80_v7 }
  0x4c   :  { %83 = vrot.lane.b32.xlu0 %v82_v11, %s676_s22  ;;  %89 = vrot.lane.b32.xlu1 %v82_v11, %s677_s23 }
  0x50   :  { %86 = vrot.lane.b32.xlu0 %v82_v11, %s678_s24  ;;  %92 = vrot.lane.b32.xlu1 %v82_v11, %s679_s0 }
  0x54   :  { %95 = vrot.lane.b32.xlu0 %v82_v11, %s680_s25  ;;  %98 = vrot.lane.b32.xlu1 %v82_v11, %s681_s26 }
  0x58   :  { %101 = vrot.lane.b32.xlu0 %v82_v11, %s682_s27 }
  0xbe   :  { %v84_v13 = vpop.permute.xlu0 %83  ;;  %v90_v15 = vpop.permute.xlu1 %89 }
  0xbf   :  { %v85_v17 = vadd.f32 %v84_v13, %v82_v11 }
  0xc2   :  { %v87_v19 = vpop.permute.xlu0 %86  ;;  %v93_v21 = vpop.permute.xlu1 %92 }
  0xc3   :  { %v88_v23 = vadd.f32 %v87_v19, %v85_v17 }
  0xc5   :  { %v91_v25 = vadd.f32 %v90_v15, %v88_v23 }
  0xc6   :  { %v96_v27 = vpop.permute.xlu0 %95  ;;  %v99_v31 = vpop.permute.xlu1 %98 }
  0xc7   :  { %v94_v29 = vadd.f32 %v93_v21, %v91_v25 }
  0xc9   :  { %v97_v33 = vadd.f32 %v96_v27, %v94_v29 }
  0xca   :  { %v102_v39 = vpop.permute.xlu0 %101 }
  0xcb   :  { %v100_v35 = vadd.f32 %v99_v31, %v97_v33 }
  0xcd   :  { %v103_v43 = vadd.f32 %v102_v39, %v100_v35 }
  0xcf   :  { %v104_v47 = vmul.f32 0.00048828125, %v103_v43 }
  0xd1   :  { %v907_v49 = vrot.slane %v104_v47, %v107_v45 }
  0xd3   :  { %v911_v51 = vsub.f32 %v706_v0, %v907_v49  ;;  %v915_v53 = vsub.f32 %v711_v1, %v907_v49  ;;  %v919_v55 = vsub.f32 %v716_v2, %v907_v49  ;;  %v927_v61 = vsub.f32 %v723_v4, %v907_v49 }
  0xd4   :  { %v931_v0 = vsub.f32 %v729_v6, %v907_v49  ;;  %v937_v2 = vsub.f32 %v735_v8, %v907_v49  ;;  %v943_v4 = vsub.f32 %v741_v10, %v907_v49  ;;  %v949_v7 = vsub.f32 %v747_v12, %v907_v49 }
  0xd5   :  { %v141_v57 = vmul.f32 %v911_v51, %v911_v51  ;;  %v142_v59 = vmul.f32 %v915_v53, %v915_v53  ;;  %v143_v1 = vmul.f32 %v919_v55, %v919_v55  ;;  %v144_v63 = vmul.f32 %v927_v61, %v927_v61 }
  0xd6   :  { %v145_v6 = vmul.f32 %v931_v0, %v931_v0  ;;  %v146_v8 = vmul.f32 %v937_v2, %v937_v2  ;;  %v955_v11 = vsub.f32 %v753_v14, %v907_v49  ;;  %v147_v10 = vmul.f32 %v943_v4, %v943_v4 }
  0xd7   :  { %v173_v62 = vadd.f32 %v142_v59, %v141_v57  ;;  %v961_v15 = vsub.f32 %v759_v16, %v907_v49  ;;  %v148_v12 = vmul.f32 %v949_v7, %v949_v7  ;;  %v967_v19 = vsub.f32 %v765_v18, %v907_v49 }
  0xd8   :  { %v149_v14 = vmul.f32 %v955_v11, %v955_v11  ;;  %v973_v23 = vsub.f32 %v771_v20, %v907_v49  ;;  %v979_v27 = vsub.f32 %v777_v22, %v907_v49  ;;  %v985_v31 = vsub.f32 %v783_v24, %v907_v49 }
  0xd9   :  { %v174_v3 = vadd.f32 %v173_v62, %v143_v1  ;;  %v150_v16 = vmul.f32 %v961_v15, %v961_v15  ;;  %v151_v18 = vmul.f32 %v967_v19, %v967_v19  ;;  %v991_v35 = vsub.f32 %v789_v26, %v907_v49 }
  0xda   :  { %v152_v20 = vmul.f32 %v973_v23, %v973_v23  ;;  %v153_v22 = vmul.f32 %v979_v27, %v979_v27  ;;  %v997_v39 = vsub.f32 %v795_v28, %v907_v49  ;;  %v154_v24 = vmul.f32 %v985_v31, %v985_v31 }
  0xdb   :  { %v175_v5 = vadd.f32 %v174_v3, %v144_v63  ;;  %v1003_v47 = vsub.f32 %v801_v30, %v907_v49  ;;  %v155_v26 = vmul.f32 %v991_v35, %v991_v35  ;;  %v1009_v59 = vsub.f32 %v807_v32, %v907_v49 }
  0xdc   :  { %v156_v28 = vmul.f32 %v997_v39, %v997_v39  ;;  %v1015_v62 = vsub.f32 %v813_v34, %v907_v49  ;;  %v1021_v3 = vsub.f32 %v819_v36, %v907_v49 }
  0xdd   :  { %v176_v9 = vadd.f32 %v175_v5, %v145_v6  ;;  %v157_v30 = vmul.f32 %v1003_v47, %v1003_v47  ;;  %v158_v32 = vmul.f32 %v1009_v59, %v1009_v59  ;;  %v1027_v5 = vsub.f32 %v825_v38, %v907_v49 }
  0xde   :  { %v159_v34 = vmul.f32 %v1015_v62, %v1015_v62  ;;  %v160_v36 = vmul.f32 %v1021_v3, %v1021_v3 }
  0xdf   :  { %v177_v13 = vadd.f32 %v176_v9, %v146_v8  ;;  %v1033_v9 = vsub.f32 %v831_v40, %v907_v49  ;;  %v161_v38 = vmul.f32 %v1027_v5, %v1027_v5 }
  0xe1   :  { %v178_v17 = vadd.f32 %v177_v13, %v147_v10  ;;  %v1039_v13 = vsub.f32 %v837_v42, %v907_v49  ;;  %v162_v40 = vmul.f32 %v1033_v9, %v1033_v9 }
  0xe3   :  { %v179_v21 = vadd.f32 %v178_v17, %v148_v12  ;;  %v1045_v17 = vsub.f32 %v843_v44, %v907_v49  ;;  %v163_v42 = vmul.f32 %v1039_v13, %v1039_v13 }
  0xe5   :  { %v180_v25 = vadd.f32 %v179_v21, %v149_v14  ;;  %v1051_v21 = vsub.f32 %v849_v46, %v907_v49  ;;  %v164_v44 = vmul.f32 %v1045_v17, %v1045_v17 }
  0xe7   :  { %v181_v29 = vadd.f32 %v180_v25, %v150_v16  ;;  %v1057_v25 = vsub.f32 %v855_v48, %v907_v49  ;;  %v165_v46 = vmul.f32 %v1051_v21, %v1051_v21 }
  0xe9   :  { %v182_v33 = vadd.f32 %v181_v29, %v151_v18  ;;  %v1063_v29 = vsub.f32 %v861_v50, %v907_v49  ;;  %v166_v48 = vmul.f32 %v1057_v25, %v1057_v25 }
  0xeb   :  { %v183_v37 = vadd.f32 %v182_v33, %v152_v20  ;;  %v1069_v33 = vsub.f32 %v867_v52, %v907_v49  ;;  %v167_v50 = vmul.f32 %v1063_v29, %v1063_v29 }
  0xed   :  { %v184_v43 = vadd.f32 %v183_v37, %v153_v22  ;;  %v1075_v37 = vsub.f32 %v873_v54, %v907_v49  ;;  %v168_v52 = vmul.f32 %v1069_v33, %v1069_v33 }
  0xef   :  { %v185_v57 = vadd.f32 %v184_v43, %v154_v24  ;;  %v1081_v43 = vsub.f32 %v879_v56, %v907_v49  ;;  %v169_v54 = vmul.f32 %v1075_v37, %v1075_v37 }
  0xf1   :  { %v186_v1 = vadd.f32 %v185_v57, %v155_v26  ;;  %v1087_v57 = vsub.f32 %v885_v58, %v907_v49  ;;  %v170_v56 = vmul.f32 %v1081_v43, %v1081_v43 }
  0xf3   :  { %v187_v63 = vadd.f32 %v186_v1, %v156_v28  ;;  %v1093_v1 = vsub.f32 %v891_v60, %v907_v49 }
  0xf5   :  { %v188_v6 = vadd.f32 %v187_v63, %v157_v30  ;;  %v171_v63 = vmul.f32 %v1087_v57, %v1087_v57  ;;  %v172_v58 = vmul.f32 %v1093_v1, %v1093_v1 }
  0xf7   :  { %v189_v8 = vadd.f32 %v188_v6, %v158_v32 }
  0xf9   :  { %v190_v10 = vadd.f32 %v189_v8, %v159_v34 }
  0xfb   :  { %v191_v12 = vadd.f32 %v190_v10, %v160_v36 }
  0xfd   :  { %v192_v14 = vadd.f32 %v191_v12, %v161_v38 }
  0xff   :  { %v193_v16 = vadd.f32 %v192_v14, %v162_v40 }
 0x101   :  { %v194_v18 = vadd.f32 %v193_v16, %v163_v42 }
 0x103   :  { %v195_v20 = vadd.f32 %v194_v18, %v164_v44 }
 0x105   :  { %v196_v22 = vadd.f32 %v195_v20, %v165_v46 }
 0x107   :  { %v197_v24 = vadd.f32 %v196_v22, %v166_v48 }
 0x109   :  { %v198_v26 = vadd.f32 %v197_v24, %v167_v50 }
 0x10b   :  { %v199_v28 = vadd.f32 %v198_v26, %v168_v52 }
 0x10d   :  { %v200_v30 = vadd.f32 %v199_v28, %v169_v54  ;;  %v234_v28 = vld [vmem:[%s1218_s1] sm:$0x1] }
 0x10f   :  { %v201_v32 = vadd.f32 %v200_v30, %v170_v56 }
 0x111   :  { %v202_v6 = vadd.f32 %v201_v32, %v171_v63 }
 0x113   :  { %v203_v34 = vadd.f32 %v202_v6, %v172_v58 }
 0x115   :  { %v204_v8 = vrot.slane %v203_v34, 4 }
 0x117   :  { %v205_v36 = vadd.f32 %v204_v8, %v203_v34 }
 0x119   :  { %v206_v10 = vrot.slane %v205_v36, 2 }
 0x11b   :  { %v207_v38 = vadd.f32 %v206_v10, %v205_v36 }
 0x11d   :  { %v208_v12 = vrot.slane %v207_v38, 1 }
 0x11f   :  { %v209_v60 = vadd.f32 %v208_v12, %v207_v38 }
 0x121   :  { %213 = vrot.lane.b32.xlu0 %v209_v60, %s678_s24  ;;  %210 = vrot.lane.b32.xlu1 %v209_v60, %s676_s22 }
 0x125   :  { %219 = vrot.lane.b32.xlu0 %v209_v60, %s679_s0  ;;  %216 = vrot.lane.b32.xlu1 %v209_v60, %s677_s23 }
 0x129   :  { %225 = vrot.lane.b32.xlu0 %v209_v60, %s681_s26  ;;  %222 = vrot.lane.b32.xlu1 %v209_v60, %s680_s25 }
 0x12d   :  { %228 = vrot.lane.b32.xlu1 %v209_v60, %s682_s27 }
 0x193   :  { %v214_v49 = vpop.permute.xlu0 %213  ;;  %v211_v40 = vpop.permute.xlu1 %210 }
 0x194   :  { %v212_v14 = vadd.f32 %v211_v40, %v209_v60 }
 0x196   :  { %v215_v42 = vadd.f32 %v214_v49, %v212_v14 }
 0x197   :  { %v220_v16 = vpop.permute.xlu0 %219  ;;  %v217_v44 = vpop.permute.xlu1 %216 }
 0x198   :  { %v218_v18 = vadd.f32 %v217_v44, %v215_v42 }
 0x19a   :  { %v221_v46 = vadd.f32 %v220_v16, %v218_v18 }
 0x19b   :  { %v223_v20 = vpop.permute.xlu1 %222  ;;  %v226_v22 = vpop.permute.xlu0 %225 }
 0x19c   :  { %v224_v48 = vadd.f32 %v223_v20, %v221_v46 }
 0x19e   :  { %v227_v50 = vadd.f32 %v226_v22, %v224_v48 }
 0x19f   :  { %v229_v24 = vpop.permute.xlu1 %228 }
 0x1a0   :  { %v230_v52 = vadd.f32 %v229_v24, %v227_v50 }
 0x1a2   :  { %v231_v26 = vmul.f32 0.00048828125, %v230_v52 }
 0x1a4   :  { %v232_v54 = vadd.f32 1e-05, %v231_v26 }
 0x1a6   :  { %674 = vrsqrt.f32 %v232_v54 }
 0x1b0   :  { %v675_v56 = vpop.eup %674 }
 0x1b1   :  { %v235_v30 = vmul.f32 %v675_v56, %v234_v28 }
 0x1b3   :  { %v239_v63 = vrot.slane %v235_v30, %v107_v45 }
 0x1b5   :  { %v240_v32 = vmul.f32 %v239_v63, %v911_v51  ;;  %v241_v58 = vmul.f32 %v239_v63, %v915_v53  ;;  %v242_v6 = vmul.f32 %v239_v63, %v919_v55  ;;  %v243_v34 = vmul.f32 %v239_v63, %v927_v61 }
 0x1b6   :  { %v244_v8 = vmul.f32 %v239_v63, %v931_v0  ;;  %v245_v36 = vmul.f32 %v239_v63, %v937_v2  ;;  %v246_v10 = vmul.f32 %v239_v63, %v943_v4  ;;  %v247_v38 = vmul.f32 %v239_v63, %v949_v7 }
 0x1b7   :  { %v248_v12 = vmul.f32 %v239_v63, %v955_v11  ;;  %v249_v41 = vmul.f32 %v239_v63, %v961_v15  ;;  %v250_v45 = vmul.f32 %v239_v63, %v967_v19  ;;  %v251_v51 = vmul.f32 %v239_v63, %v973_v23  ;;  %v507_v15 = vld [vmem:[%s1219_s2] ss:$0 sm:$0xff] }
 0x1b8   :  { %v252_v53 = vmul.f32 %v239_v63, %v979_v27  ;;  %v253_v55 = vmul.f32 %v239_v63, %v985_v31  ;;  %v254_v61 = vmul.f32 %v239_v63, %v991_v35  ;;  %v255_v0 = vmul.f32 %v239_v63, %v997_v39 }
 0x1b9   :  { %v256_v2 = vmul.f32 %v239_v63, %v1003_v47  ;;  %v257_v4 = vmul.f32 %v239_v63, %v1009_v59  ;;  %v258_v7 = vmul.f32 %v239_v63, %v1015_v62  ;;  %v259_v11 = vmul.f32 %v239_v63, %v1021_v3 }
 0x1ba   :  { %v260_v19 = vmul.f32 %v239_v63, %v1027_v5  ;;  %v261_v23 = vmul.f32 %v239_v63, %v1033_v9  ;;  %v262_v27 = vmul.f32 %v239_v63, %v1039_v13  ;;  %v263_v31 = vmul.f32 %v239_v63, %v1045_v17 }
 0x1bb   :  { %v264_v35 = vmul.f32 %v239_v63, %v1051_v21  ;;  %v265_v39 = vmul.f32 %v239_v63, %v1057_v25  ;;  %v266_v47 = vmul.f32 %v239_v63, %v1063_v29  ;;  %v267_v59 = vmul.f32 %v239_v63, %v1069_v33 }
 0x1bc   :  { %v268_v62 = vmul.f32 %v239_v63, %v1075_v37  ;;  %v269_v3 = vmul.f32 %v239_v63, %v1081_v43  ;;  %v270_v5 = vmul.f32 %v239_v63, %v1087_v57  ;;  %v271_v9 = vmul.f32 %v239_v63, %v1093_v1 }
 0x1bd   :  { %v1148_v60 = vadd.f32 %v507_v15, %v240_v32  ;;  %v1150_v13 = vadd.f32 %v507_v15, %v241_v58  ;;  %v1152_v17 = vadd.f32 %v507_v15, %v242_v6  ;;  %v1154_v21 = vadd.f32 %v507_v15, %v243_v34 }
 0x1be   :  { %v1156_v25 = vadd.f32 %v507_v15, %v244_v8  ;;  %v1158_v29 = vadd.f32 %v507_v15, %v245_v36  ;;  %v1160_v33 = vadd.f32 %v507_v15, %v246_v10  ;;  %v286_v37 = vadd.f32 %v507_v15, %v247_v38 }
 0x1bf   :  { %v287_v43 = vadd.f32 %v507_v15, %v248_v12  ;;  %v288_v49 = vadd.f32 %v507_v15, %v249_v41  ;;  %v289_v57 = vadd.f32 %v507_v15, %v250_v45  ;;  %v290_v40 = vadd.f32 %v507_v15, %v251_v51 }
 0x1c0   :  { %v291_v1 = vadd.f32 %v507_v15, %v252_v53  ;;  %v292_v14 = vadd.f32 %v507_v15, %v253_v55  ;;  %v293_v42 = vadd.f32 %v507_v15, %v254_v61  ;;  %v294_v16 = vadd.f32 %v507_v15, %v255_v0 }
 0x1c1   :  { %v295_v44 = vadd.f32 %v507_v15, %v256_v2  ;;  %v296_v18 = vadd.f32 %v507_v15, %v257_v4  ;;  %v297_v46 = vadd.f32 %v507_v15, %v258_v7  ;;  %v298_v20 = vadd.f32 %v507_v15, %v259_v11 }
 0x1c2   :  { %v299_v48 = vadd.f32 %v507_v15, %v260_v19  ;;  %v300_v22 = vadd.f32 %v507_v15, %v261_v23  ;;  %v301_v50 = vadd.f32 %v507_v15, %v262_v27  ;;  %v302_v24 = vadd.f32 %v507_v15, %v263_v31 }
 0x1c3   :  { %v303_v52 = vadd.f32 %v507_v15, %v264_v35  ;;  %v304_v26 = vadd.f32 %v507_v15, %v265_v39  ;;  %v305_v54 = vadd.f32 %v507_v15, %v266_v47  ;;  %v306_v28 = vadd.f32 %v507_v15, %v267_v59 }
 0x1c4   :  { %v307_v56 = vadd.f32 %v507_v15, %v268_v62  ;;  %v308_v30 = vadd.f32 %v507_v15, %v269_v3  ;;  %v309_v63 = vadd.f32 %v507_v15, %v270_v5  ;;  %v310_v32 = vadd.f32 %v507_v15, %v271_v9 }
 0x1c5   :  { %v311_v58 = vmax.f32 %v1148_v60, 0.0  ;;  %v312_v6 = vmax.f32 %v1150_v13, 0.0  ;;  %v313_v34 = vmax.f32 %v1152_v17, 0.0  ;;  %v314_v8 = vmax.f32 %v1154_v21, 0.0 }
 0x1c6   :  { %v315_v36 = vmax.f32 %v1156_v25, 0.0  ;;  %v316_v10 = vmax.f32 %v1158_v29, 0.0  ;;  %v317_v38 = vmax.f32 %v1160_v33, 0.0  ;;  %v318_v12 = vmax.f32 %v286_v37, 0.0 }
 0x1c7   :  { %v319_v41 = vmax.f32 %v287_v43, 0.0  ;;  %v320_v45 = vmax.f32 %v288_v49, 0.0  ;;  %v321_v51 = vmax.f32 %v289_v57, 0.0  ;;  %v322_v53 = vmax.f32 %v290_v40, 0.0 }
 0x1c8   :  { %v323_v55 = vmax.f32 %v291_v1, 0.0  ;;  %v324_v61 = vmax.f32 %v292_v14, 0.0  ;;  %v325_v0 = vmax.f32 %v293_v42, 0.0  ;;  %v326_v2 = vmax.f32 %v294_v16, 0.0 }
 0x1c9   :  { %v327_v4 = vmax.f32 %v295_v44, 0.0  ;;  %v328_v7 = vmax.f32 %v296_v18, 0.0  ;;  %v329_v11 = vmax.f32 %v297_v46, 0.0  ;;  %v330_v15 = vmax.f32 %v298_v20, 0.0 }
 0x1ca   :  { %v331_v19 = vmax.f32 %v299_v48, 0.0  ;;  %v332_v23 = vmax.f32 %v300_v22, 0.0  ;;  %v333_v27 = vmax.f32 %v301_v50, 0.0  ;;  %v334_v31 = vmax.f32 %v302_v24, 0.0 }
 0x1cb   :  { %v335_v35 = vmax.f32 %v303_v52, 0.0  ;;  %v336_v39 = vmax.f32 %v304_v26, 0.0  ;;  %v337_v47 = vmax.f32 %v305_v54, 0.0  ;;  %v338_v59 = vmax.f32 %v306_v28, 0.0 }
 0x1cc   :  { %v339_v62 = vmax.f32 %v307_v56, 0.0  ;;  %v340_v3 = vmax.f32 %v308_v30, 0.0  ;;  %v341_v5 = vmax.f32 %v309_v63, 0.0  ;;  %v342_v9 = vmax.f32 %v310_v32, 0.0 }
 0x1cd   :  { %v575_v60 = vpack.c.bf16 %v312_v6, %v311_v58  ;;  %v580_v13 = vpack.c.bf16 %v314_v8, %v313_v34  ;;  %v585_v17 = vpack.c.bf16 %v316_v10, %v315_v36  ;;  %v590_v21 = vpack.c.bf16 %v318_v12, %v317_v38 }
 0x1ce   :  { %v595_v25 = vpack.c.bf16 %v320_v45, %v319_v41  ;;  %v600_v29 = vpack.c.bf16 %v322_v53, %v321_v51  ;;  %v605_v33 = vpack.c.bf16 %v324_v61, %v323_v55  ;;  %v610_v37 = vpack.c.bf16 %v326_v2, %v325_v0 }
 0x1cf   :  { %576 = vst [vmem:[%s1220_s3] sm:$0xff] %v575_v60   ;;  %652 = vst [vmem:[%s1220_s3 + $0x8] sm:$0xff] %v580_v13   ;;  %v615_v43 = vpack.c.bf16 %v328_v7, %v327_v4  ;;  %v620_v49 = vpack.c.bf16 %v330_v15, %v329_v11  ;;  %v625_v57 = vpack.c.bf16 %v332_v23, %v331_v19 }
 0x1d0   :  { %653 = vst [vmem:[%s1220_s3 + $0x10] sm:$0xff] %v585_v17   ;;  %654 = vst [vmem:[%s1220_s3 + $0x18] sm:$0xff] %v590_v21   ;;  %v630_v40 = vpack.c.bf16 %v334_v31, %v333_v27  ;;  %v635_v1 = vpack.c.bf16 %v336_v39, %v335_v35  ;;  %v640_v14 = vpack.c.bf16 %v338_v59, %v337_v47 }
 0x1d1   :  { %655 = vst [vmem:[%s1220_s3 + $0x20] sm:$0xff] %v595_v25   ;;  %656 = vst [vmem:[%s1220_s3 + $0x28] sm:$0xff] %v600_v29   ;;  %v645_v42 = vpack.c.bf16 %v340_v3, %v339_v62  ;;  %v650_v16 = vpack.c.bf16 %v342_v9, %v341_v5 }
 0x1d2   :  { %657 = vst [vmem:[%s1220_s3 + $0x30] sm:$0xff] %v605_v33   ;;  %658 = vst [vmem:[%s1220_s3 + $0x38] sm:$0xff] %v610_v37  }
 0x1d3   :  { %659 = vst [vmem:[%s1220_s3 + $0x40] sm:$0xff] %v615_v43   ;;  %660 = vst [vmem:[%s1220_s3 + $0x48] sm:$0xff] %v620_v49  }
 0x1d4   :  { %661 = vst [vmem:[%s1220_s3 + $0x50] sm:$0xff] %v625_v57   ;;  %662 = vst [vmem:[%s1220_s3 + $0x58] sm:$0xff] %v630_v40  }
 0x1d5   :  { %663 = vst [vmem:[%s1220_s3 + $0x60] sm:$0xff] %v635_v1   ;;  %664 = vst [vmem:[%s1220_s3 + $0x68] sm:$0xff] %v640_v14  }
 0x1d6   :  { %665 = vst [vmem:[%s1220_s3 + $0x70] sm:$0xff] %v645_v42   ;;  %666 = vst [vmem:[%s1220_s3 + $0x78] sm:$0xff] %v650_v16  }

// kernel: generator_forward.18
= control target key start
LH: loop header
LB: loop body
LE: loop exit
PB: predicated region body
PF: predicated region fallthrough
CT: control target
= control target key end

     0   :  { %vm916_vm0 = vcmask 130048   ;;  %s4947_s1 = inlined_call_operand.vmem [shape: bf16[16,16], index: 1, kind: input, shape index: {}]   ;;  %s4948_s0 = inlined_call_operand.vmem [shape: bf16[2048,16], index: 0, kind: input, shape index: {}]   ;;  %s4949_s2 = inlined_call_operand.vmem [shape: f32[2048,16], index: 2, kind: output, shape index: {}]  }
   0x1   :  { %v3264_v0 = vld [vmem:[%s4947_s1] sm:$0xff]   ;;  %v3267_v3 = vld [vmem:[%s4948_s0 + $0x8] sm:$0xff]   ;;  %v3269_v5 = vld [vmem:[%s4948_s0 + $0x10] sm:$0xff]  }
   0x2   :  { %v3265_v1 = vld [vmem:[%s4948_s0] sm:$0xff]   ;;  %3004 = vmatprep.subr.bf16.mxu0 %v3264_v0  ;;  %3262 = vmatprep.subr.bf16.mxu1 %v3264_v0  ;;  %v3268_v4 = vld [vmem:[%s4948_s0 + $0x208] sm:$0xff]   ;;  %v3270_v6 = vld [vmem:[%s4948_s0 + $0x210] sm:$0xff]  }
   0x3   :  { %v3266_v2 = vld [vmem:[%s4948_s0 + $0x200] sm:$0xff]   ;;  %3005 = vmatpush3.bf16.msra.mxu0 %v3264_v0  ;;  %3263 = vmatpush3.bf16.msra.mxu1 %v3264_v0  ;;  %v3271_v7 = vld [vmem:[%s4948_s0 + $0x18] sm:$0xff]   ;;  %v3275_v11 = vld [vmem:[%s4948_s0 + $0x28] sm:$0xff]  }
   0x4   :  { %3006 = vmatprep.mubr.msk.bf16.mxu0 %vm916_vm0, %v3265_v1  ;;  %3134 = vmatprep.mubr.msk.bf16.mxu1 %vm916_vm0, %v3266_v2  ;;  %v3272_v8 = vld [vmem:[%s4948_s0 + $0x218] sm:$0xff]   ;;  %v3273_v9 = vld [vmem:[%s4948_s0 + $0x20] sm:$0xff]   ;;  %v3276_v12 = vld [vmem:[%s4948_s0 + $0x228] sm:$0xff]  }
   0x5   :  { %v3274_v10 = vld [vmem:[%s4948_s0 + $0x220] sm:$0xff]   ;;  %v3277_v13 = vld [vmem:[%s4948_s0 + $0x30] sm:$0xff]   ;;  %v3279_v15 = vld [vmem:[%s4948_s0 + $0x38] sm:$0xff]  }
   0x6   :  { %3007 = vmatmul.mubr.msk.bf16.vlgmr.msra.gmra.mrb[0].mxu0 %vm916_vm0, %v3267_v3  ;;  %3135 = vmatmul.mubr.msk.bf16.vlgmr.msra.gmra.mrb[0].mxu1 %vm916_vm0, %v3268_v4  ;;  %v3278_v14 = vld [vmem:[%s4948_s0 + $0x230] sm:$0xff]   ;;  %v3280_v16 = vld [vmem:[%s4948_s0 + $0x238] sm:$0xff]   ;;  %v3281_v17 = vld [vmem:[%s4948_s0 + $0x40] sm:$0xff]  }
   0x7   :  { %3010 = vmatprep.mubr.msk.bf16.mxu0 %vm916_vm0, %v3269_v5  ;;  %3138 = vmatprep.mubr.msk.bf16.mxu1 %vm916_vm0, %v3270_v6  ;;  %v3282_v18 = vld [vmem:[%s4948_s0 + $0x240] sm:$0xff]   ;;  %v3283_v19 = vld [vmem:[%s4948_s0 + $0x48] sm:$0xff]   ;;  %v3285_v21 = vld [vmem:[%s4948_s0 + $0x50] sm:$0xff]  }
   0x8   :  { %v3284_v20 = vld [vmem:[%s4948_s0 + $0x248] sm:$0xff]   ;;  %v3286_v22 = vld [vmem:[%s4948_s0 + $0x250] sm:$0xff]   ;;  %v3287_v23 = vld [vmem:[%s4948_s0 + $0x58] sm:$0xff]  }
   0x9   :  { %v3288_v24 = vld [vmem:[%s4948_s0 + $0x258] sm:$0xff]   ;;  %v3289_v25 = vld [vmem:[%s4948_s0 + $0x60] sm:$0xff]   ;;  %v3291_v27 = vld [vmem:[%s4948_s0 + $0x68] sm:$0xff]  }
   0xa   :  { %v3290_v26 = vld [vmem:[%s4948_s0 + $0x260] sm:$0xff]   ;;  %v3292_v28 = vld [vmem:[%s4948_s0 + $0x268] sm:$0xff]   ;;  %v3293_v29 = vld [vmem:[%s4948_s0 + $0x70] sm:$0xff]  }
   0xb   :  { %v3294_v30 = vld [vmem:[%s4948_s0 + $0x270] sm:$0xff]   ;;  %v3295_v31 = vld [vmem:[%s4948_s0 + $0x78] sm:$0xff]   ;;  %v3297_v33 = vld [vmem:[%s4948_s0 + $0x80] sm:$0xff]  }
   0xc   :  { %v3296_v32 = vld [vmem:[%s4948_s0 + $0x278] sm:$0xff]   ;;  %v3298_v34 = vld [vmem:[%s4948_s0 + $0x280] sm:$0xff]   ;;  %v3299_v35 = vld [vmem:[%s4948_s0 + $0x88] sm:$0xff]  }
   0xd   :  { %v3300_v36 = vld [vmem:[%s4948_s0 + $0x288] sm:$0xff]   ;;  %v3301_v37 = vld [vmem:[%s4948_s0 + $0x90] sm:$0xff]   ;;  %v3303_v39 = vld [vmem:[%s4948_s0 + $0x98] sm:$0xff]  }
   0xe   :  { %3011 = vmatmul.mubr.msk.bf16.gmra.mrb[4].mxu0 %vm916_vm0, %v3271_v7  ;;  %3139 = vmatmul.mubr.msk.bf16.gmra.mrb[4].mxu1 %vm916_vm0, %v3272_v8  ;;  %v3302_v38 = vld [vmem:[%s4948_s0 + $0x290] sm:$0xff]   ;;  %v3304_v40 = vld [vmem:[%s4948_s0 + $0x298] sm:$0xff]   ;;  %v3305_v41 = vld [vmem:[%s4948_s0 + $0xa0] sm:$0xff]  }
   0xf   :  { %3014 = vmatprep.mubr.msk.bf16.mxu0 %vm916_vm0, %v3273_v9  ;;  %3142 = vmatprep.mubr.msk.bf16.mxu1 %vm916_vm0, %v3274_v10  ;;  %v3306_v42 = vld [vmem:[%s4948_s0 + $0x2a0] sm:$0xff]   ;;  %v3307_v43 = vld [vmem:[%s4948_s0 + $0xa8] sm:$0xff]   ;;  %v3309_v45 = vld [vmem:[%s4948_s0 + $0xb0] sm:$0xff]  }
  0x10   :  { %v3308_v44 = vld [vmem:[%s4948_s0 + $0x2a8] sm:$0xff]   ;;  %v3310_v46 = vld [vmem:[%s4948_s0 + $0x2b0] sm:$0xff]   ;;  %v3311_v47 = vld [vmem:[%s4948_s0 + $0xb8] sm:$0xff]  }
  0x11   :  { %v3312_v48 = vld [vmem:[%s4948_s0 + $0x2b8] sm:$0xff]   ;;  %v3313_v49 = vld [vmem:[%s4948_s0 + $0xc0] sm:$0xff]   ;;  %v3315_v51 = vld [vmem:[%s4948_s0 + $0xc8] sm:$0xff]  }
  0x12   :  { %v3314_v50 = vld [vmem:[%s4948_s0 + $0x2c0] sm:$0xff]   ;;  %v3316_v52 = vld [vmem:[%s4948_s0 + $0x2c8] sm:$0xff]   ;;  %v3317_v53 = vld [vmem:[%s4948_s0 + $0xd0] sm:$0xff]  }
  0x13   :  { %v3318_v54 = vld [vmem:[%s4948_s0 + $0x2d0] sm:$0xff]   ;;  %v3319_v55 = vld [vmem:[%s4948_s0 + $0xd8] sm:$0xff]   ;;  %v3321_v57 = vld [vmem:[%s4948_s0 + $0xe0] sm:$0xff]  }
  0x14   :  { %v3320_v56 = vld [vmem:[%s4948_s0 + $0x2d8] sm:$0xff]   ;;  %v3322_v58 = vld [vmem:[%s4948_s0 + $0x2e0] sm:$0xff]   ;;  %v3323_v59 = vld [vmem:[%s4948_s0 + $0xe8] sm:$0xff]  }
  0x15   :  { %v3324_v60 = vld [vmem:[%s4948_s0 + $0x2e8] sm:$0xff]   ;;  %v3325_v61 = vld [vmem:[%s4948_s0 + $0xf0] sm:$0xff]   ;;  %v3327_v63 = vld [vmem:[%s4948_s0 + $0xf8] sm:$0xff]  }
  0x16   :  { %3015 = vmatmul.mubr.msk.bf16.gmra.mrb[8].mxu0 %vm916_vm0, %v3275_v11  ;;  %3143 = vmatmul.mubr.msk.bf16.gmra.mrb[8].mxu1 %vm916_vm0, %v3276_v12  ;;  %v3326_v62 = vld [vmem:[%s4948_s0 + $0x2f0] sm:$0xff]   ;;  %v3328_v0 = vld [vmem:[%s4948_s0 + $0x2f8] sm:$0xff]   ;;  %v3329_v1 = vld [vmem:[%s4948_s0 + $0x100] sm:$0xff]  }
  0x17   :  { %3018 = vmatprep.mubr.msk.bf16.mxu0 %vm916_vm0, %v3277_v13  ;;  %3146 = vmatprep.mubr.msk.bf16.mxu1 %vm916_vm0, %v3278_v14  ;;  %v3330_v2 = vld [vmem:[%s4948_s0 + $0x300] sm:$0xff]   ;;  %v3331_v3 = vld [vmem:[%s4948_s0 + $0x108] sm:$0xff]   ;;  %v3333_v5 = vld [vmem:[%s4948_s0 + $0x110] sm:$0xff]  }
  0x18   :  { %v3332_v4 = vld [vmem:[%s4948_s0 + $0x308] sm:$0xff]   ;;  %v3334_v6 = vld [vmem:[%s4948_s0 + $0x310] sm:$0xff]   ;;  %v3335_v7 = vld [vmem:[%s4948_s0 + $0x118] sm:$0xff]  }
  0x19   :  { %v3336_v8 = vld [vmem:[%s4948_s0 + $0x318] sm:$0xff]   ;;  %v3337_v9 = vld [vmem:[%s4948_s0 + $0x120] sm:$0xff]   ;;  %v3339_v11 = vld [vmem:[%s4948_s0 + $0x128] sm:$0xff]  }
  0x1a   :  { %v3338_v10 = vld [vmem:[%s4948_s0 + $0x320] sm:$0xff]   ;;  %v3340_v12 = vld [vmem:[%s4948_s0 + $0x328] sm:$0xff]   ;;  %v3341_v13 = vld [vmem:[%s4948_s0 + $0x130] sm:$0xff]  }
  0x1b   :  { %v3342_v14 = vld [vmem:[%s4948_s0 + $0x330] sm:$0xff]  }
  0x1e   :  { %3019 = vmatmul.mubr.msk.bf16.gmra.mrb[12].mxu0 %vm916_vm0, %v3279_v15  ;;  %3147 = vmatmul.mubr.msk.bf16.gmra.mrb[12].mxu1 %vm916_vm0, %v3280_v16  ;;  %v3343_v15 = vld [vmem:[%s4948_s0 + $0x138] sm:$0xff]  }
  0x1f   :  { %3022 = vmatprep.mubr.msk.bf16.mxu0 %vm916_vm0, %v3281_v17  ;;  %3150 = vmatprep.mubr.msk.bf16.mxu1 %vm916_vm0, %v3282_v18  ;;  %v3344_v16 = vld [vmem:[%s4948_s0 + $0x338] sm:$0xff]   ;;  %v3345_v17 = vld [vmem:[%s4948_s0 + $0x140] sm:$0xff]  }
  0x20   :  { %v3346_v18 = vld [vmem:[%s4948_s0 + $0x340] sm:$0xff]  }
  0x26   :  { %3023 = vmatmul.mubr.msk.bf16.gmra.mrb[16].mxu0 %vm916_vm0, %v3283_v19  ;;  %3151 = vmatmul.mubr.msk.bf16.gmra.mrb[16].mxu1 %vm916_vm0, %v3284_v20  ;;  %v3347_v19 = vld [vmem:[%s4948_s0 + $0x148] sm:$0xff]  }
  0x27   :  { %3026 = vmatprep.mubr.msk.bf16.mxu0 %vm916_vm0, %v3285_v21  ;;  %3154 = vmatprep.mubr.msk.bf16.mxu1 %vm916_vm0, %v3286_v22  ;;  %v3348_v20 = vld [vmem:[%s4948_s0 + $0x348] sm:$0xff]   ;;  %v3349_v21 = vld [vmem:[%s4948_s0 + $0x150] sm:$0xff]  }
  0x28   :  { %v3350_v22 = vld [vmem:[%s4948_s0 + $0x350] sm:$0xff]  }
  0x2e   :  { %3027 = vmatmul.mubr.msk.bf16.gmra.mrb[20].mxu0 %vm916_vm0, %v3287_v23  ;;  %3155 = vmatmul.mubr.msk.bf16.gmra.mrb[20].mxu1 %vm916_vm0, %v3288_v24  ;;  %v3351_v23 = vld [vmem:[%s4948_s0 + $0x158] sm:$0xff]  }
  0x2f   :  { %3030 = vmatprep.mubr.msk.bf16.mxu0 %vm916_vm0, %v3289_v25  ;;  %3158 = vmatprep.mubr.msk.bf16.mxu1 %vm916_vm0, %v3290_v26  ;;  %v3352_v24 = vld [vmem:[%s4948_s0 + $0x358] sm:$0xff]   ;;  %v3353_v25 = vld [vmem:[%s4948_s0 + $0x160] sm:$0xff]  }
  0x30   :  { %v3354_v26 = vld [vmem:[%s4948_s0 + $0x360] sm:$0xff]  }
  0x36   :  { %3031 = vmatmul.mubr.msk.bf16.gmra.mrb[24].mxu0 %vm916_vm0, %v3291_v27  ;;  %3159 = vmatmul.mubr.msk.bf16.gmra.mrb[24].mxu1 %vm916_vm0, %v3292_v28  ;;  %v3355_v27 = vld [vmem:[%s4948_s0 + $0x168] sm:$0xff]  }
  0x37   :  { %3034 = vmatprep.mubr.msk.bf16.mxu0 %vm916_vm0, %v3293_v29  ;;  %3162 = vmatprep.mubr.msk.bf16.mxu1 %vm916_vm0, %v3294_v30  ;;  %v3356_v28 = vld [vmem:[%s4948_s0 + $0x368] sm:$0xff]   ;;  %v3357_v29 = vld [vmem:[%s4948_s0 + $0x170] sm:$0xff]  }
  0x38   :  { %v3358_v30 = vld [vmem:[%s4948_s0 + $0x370] sm:$0xff]  }
  0x3e   :  { %3035 = vmatmul.mubr.msk.bf16.gmra.mrb[28].mxu0 %vm916_vm0, %v3295_v31  ;;  %3163 = vmatmul.mubr.msk.bf16.gmra.mrb[28].mxu1 %vm916_vm0, %v3296_v32  ;;  %v3359_v31 = vld [vmem:[%s4948_s0 + $0x178] sm:$0xff]  }
  0x3f   :  { %3038 = vmatprep.mubr.msk.bf16.mxu0 %vm916_vm0, %v3297_v33  ;;  %3166 = vmatprep.mubr.msk.bf16.mxu1 %vm916_vm0, %v3298_v34  ;;  %v3360_v32 = vld [vmem:[%s4948_s0 + $0x378] sm:$0xff]   ;;  %v3361_v33 = vld [vmem:[%s4948_s0 + $0x180] sm:$0xff]  }
  0x40   :  { %v3362_v34 = vld [vmem:[%s4948_s0 + $0x380] sm:$0xff]  }
  0x46   :  { %3039 = vmatmul.mubr.msk.bf16.gmra.mrb[32].mxu0 %vm916_vm0, %v3299_v35  ;;  %3167 = vmatmul.mubr.msk.bf16.gmra.mrb[32].mxu1 %vm916_vm0, %v3300_v36  ;;  %v3363_v35 = vld [vmem:[%s4948_s0 + $0x188] sm:$0xff]  }
  0x47   :  { %3042 = vmatprep.mubr.msk.bf16.mxu0 %vm916_vm0, %v3301_v37  ;;  %3170 = vmatprep.mubr.msk.bf16.mxu1 %vm916_vm0, %v3302_v38  ;;  %v3364_v36 = vld [vmem:[%s4948_s0 + $0x388] sm:$0xff]   ;;  %v3365_v37 = vld [vmem:[%s4948_s0 + $0x190] sm:$0xff]  }
  0x48   :  { %v3366_v38 = vld [vmem:[%s4948_s0 + $0x390] sm:$0xff]  }
  0x4e   :  { %3043 = vmatmul.mubr.msk.bf16.gmra.mrb[36].mxu0 %vm916_vm0, %v3303_v39  ;;  %3171 = vmatmul.mubr.msk.bf16.gmra.mrb[36].mxu1 %vm916_vm0, %v3304_v40  ;;  %v3367_v39 = vld [vmem:[%s4948_s0 + $0x198] sm:$0xff]  }
  0x4f   :  { %3046 = vmatprep.mubr.msk.bf16.mxu0 %vm916_vm0, %v3305_v41  ;;  %3174 = vmatprep.mubr.msk.bf16.mxu1 %vm916_vm0, %v3306_v42  ;;  %v3368_v40 = vld [vmem:[%s4948_s0 + $0x398] sm:$0xff]   ;;  %v3369_v41 = vld [vmem:[%s4948_s0 + $0x1a0] sm:$0xff]  }
  0x50   :  { %v3370_v42 = vld [vmem:[%s4948_s0 + $0x3a0] sm:$0xff]  }
  0x56   :  { %3047 = vmatmul.mubr.msk.bf16.gmra.mrb[40].mxu0 %vm916_vm0, %v3307_v43  ;;  %3175 = vmatmul.mubr.msk.bf16.gmra.mrb[40].mxu1 %vm916_vm0, %v3308_v44  ;;  %v3371_v43 = vld [vmem:[%s4948_s0 + $0x1a8] sm:$0xff]  }
  0x57   :  { %3050 = vmatprep.mubr.msk.bf16.mxu0 %vm916_vm0, %v3309_v45  ;;  %3178 = vmatprep.mubr.msk.bf16.mxu1 %vm916_vm0, %v3310_v46  ;;  %v3372_v44 = vld [vmem:[%s4948_s0 + $0x3a8] sm:$0xff]   ;;  %v3373_v45 = vld [vmem:[%s4948_s0 + $0x1b0] sm:$0xff]  }
  0x58   :  { %v3374_v46 = vld [vmem:[%s4948_s0 + $0x3b0] sm:$0xff]  }
  0x5e   :  { %3051 = vmatmul.mubr.msk.bf16.gmra.mrb[44].mxu0 %vm916_vm0, %v3311_v47  ;;  %3179 = vmatmul.mubr.msk.bf16.gmra.mrb[44].mxu1 %vm916_vm0, %v3312_v48 }
  0x5f   :  { %3054 = vmatprep.mubr.msk.bf16.mxu0 %vm916_vm0, %v3313_v49  ;;  %3182 = vmatprep.mubr.msk.bf16.mxu1 %vm916_vm0, %v3314_v50 }
  0x66   :  { %3055 = vmatmul.mubr.msk.bf16.gmra.mrb[48].mxu0 %vm916_vm0, %v3315_v51  ;;  %3183 = vmatmul.mubr.msk.bf16.gmra.mrb[48].mxu1 %vm916_vm0, %v3316_v52  ;;  %v3375_v51 = vld [vmem:[%s4948_s0 + $0x1b8] sm:$0xff]  }
  0x67   :  { %3058 = vmatprep.mubr.msk.bf16.mxu0 %vm916_vm0, %v3317_v53  ;;  %3186 = vmatprep.mubr.msk.bf16.mxu1 %vm916_vm0, %v3318_v54  ;;  %v3376_v52 = vld [vmem:[%s4948_s0 + $0x3b8] sm:$0xff]  }
  0x6e   :  { %3059 = vmatmul.mubr.msk.bf16.gmra.mrb[52].mxu0 %vm916_vm0, %v3319_v55  ;;  %3187 = vmatmul.mubr.msk.bf16.gmra.mrb[52].mxu1 %vm916_vm0, %v3320_v56  ;;  %v3377_v55 = vld [vmem:[%s4948_s0 + $0x1c0] sm:$0xff]  }
  0x6f   :  { %3062 = vmatprep.mubr.msk.bf16.mxu0 %vm916_vm0, %v3321_v57  ;;  %3190 = vmatprep.mubr.msk.bf16.mxu1 %vm916_vm0, %v3322_v58  ;;  %v3378_v56 = vld [vmem:[%s4948_s0 + $0x3c0] sm:$0xff]  }
  0x76   :  { %3063 = vmatmul.mubr.msk.bf16.gmra.mrb[56].mxu0 %vm916_vm0, %v3323_v59  ;;  %3191 = vmatmul.mubr.msk.bf16.gmra.mrb[56].mxu1 %vm916_vm0, %v3324_v60 }
  0x77   :  { %3066 = vmatprep.mubr.msk.bf16.mxu0 %vm916_vm0, %v3325_v61  ;;  %3194 = vmatprep.mubr.msk.bf16.mxu1 %vm916_vm0, %v3326_v62 }
  0x7e   :  { %3067 = vmatmul.mubr.msk.bf16.gmra.mrb[60].mxu0 %vm916_vm0, %v3327_v63  ;;  %3195 = vmatmul.mubr.msk.bf16.gmra.mrb[60].mxu1 %vm916_vm0, %v3328_v0  ;;  %v3379_v63 = vld [vmem:[%s4948_s0 + $0x1c8] sm:$0xff]  }
  0x7f   :  { %3070 = vmatprep.mubr.msk.bf16.mxu0 %vm916_vm0, %v3329_v1  ;;  %3198 = vmatprep.mubr.msk.bf16.mxu1 %vm916_vm0, %v3330_v2  ;;  %v3380_v0 = vld [vmem:[%s4948_s0 + $0x3c8] sm:$0xff]  }
  0x86   :  { %3071 = vmatmul.mubr.msk.bf16.gmra.mrb[64].mxu0 %vm916_vm0, %v3331_v3  ;;  %3199 = vmatmul.mubr.msk.bf16.gmra.mrb[64].mxu1 %vm916_vm0, %v3332_v4  ;;  %v3381_v3 = vld [vmem:[%s4948_s0 + $0x1d0] sm:$0xff]  }
  0x87   :  { %3074 = vmatprep.mubr.msk.bf16.mxu0 %vm916_vm0, %v3333_v5  ;;  %3202 = vmatprep.mubr.msk.bf16.mxu1 %vm916_vm0, %v3334_v6  ;;  %v3382_v4 = vld [vmem:[%s4948_s0 + $0x3d0] sm:$0xff]  }
  0x8e   :  { %3075 = vmatmul.mubr.msk.bf16.gmra.mrb[68].mxu0 %vm916_vm0, %v3335_v7  ;;  %3203 = vmatmul.mubr.msk.bf16.gmra.mrb[68].mxu1 %vm916_vm0, %v3336_v8 }
  0x8f   :  { %3078 = vmatprep.mubr.msk.bf16.mxu0 %vm916_vm0, %v3337_v9  ;;  %3206 = vmatprep.mubr.msk.bf16.mxu1 %vm916_vm0, %v3338_v10 }
  0x96   :  { %3079 = vmatmul.mubr.msk.bf16.gmra.mrb[72].mxu0 %vm916_vm0, %v3339_v11  ;;  %3207 = vmatmul.mubr.msk.bf16.gmra.mrb[72].mxu1 %vm916_vm0, %v3340_v12  ;;  %v3383_v11 = vld [vmem:[%s4948_s0 + $0x1d8] sm:$0xff]  }
  0x97   :  { %3082 = vmatprep.mubr.msk.bf16.mxu0 %vm916_vm0, %v3341_v13  ;;  %3210 = vmatprep.mubr.msk.bf16.mxu1 %vm916_vm0, %v3342_v14  ;;  %v3384_v12 = vld [vmem:[%s4948_s0 + $0x3d8] sm:$0xff]  }
  0x9e   :  { %3083 = vmatmul.mubr.msk.bf16.gmra.mrb[76].mxu0 %vm916_vm0, %v3343_v15  ;;  %3211 = vmatmul.mubr.msk.bf16.gmra.mrb[76].mxu1 %vm916_vm0, %v3344_v16  ;;  %v3385_v15 = vld [vmem:[%s4948_s0 + $0x1e0] sm:$0xff]  }
  0x9f   :  { %3086 = vmatprep.mubr.msk.bf16.mxu0 %vm916_vm0, %v3345_v17  ;;  %3214 = vmatprep.mubr.msk.bf16.mxu1 %vm916_vm0, %v3346_v18  ;;  %v3386_v16 = vld [vmem:[%s4948_s0 + $0x3e0] sm:$0xff]  }
  0xa6   :  { %3087 = vmatmul.mubr.msk.bf16.gmra.mrb[80].mxu0 %vm916_vm0, %v3347_v19  ;;  %3215 = vmatmul.mubr.msk.bf16.gmra.mrb[80].mxu1 %vm916_vm0, %v3348_v20 }
  0xa7   :  { %3090 = vmatprep.mubr.msk.bf16.mxu0 %vm916_vm0, %v3349_v21  ;;  %3218 = vmatprep.mubr.msk.bf16.mxu1 %vm916_vm0, %v3350_v22 }
  0xae   :  { %3091 = vmatmul.mubr.msk.bf16.gmra.mrb[84].mxu0 %vm916_vm0, %v3351_v23  ;;  %3219 = vmatmul.mubr.msk.bf16.gmra.mrb[84].mxu1 %vm916_vm0, %v3352_v24  ;;  %v3387_v23 = vld [vmem:[%s4948_s0 + $0x1e8] sm:$0xff]  }
  0xaf   :  { %3094 = vmatprep.mubr.msk.bf16.mxu0 %vm916_vm0, %v3353_v25  ;;  %3222 = vmatprep.mubr.msk.bf16.mxu1 %vm916_vm0, %v3354_v26  ;;  %v3388_v24 = vld [vmem:[%s4948_s0 + $0x3e8] sm:$0xff]  }
  0xb6   :  { %3095 = vmatmul.mubr.msk.bf16.gmra.mrb[88].mxu0 %vm916_vm0, %v3355_v27  ;;  %3223 = vmatmul.mubr.msk.bf16.gmra.mrb[88].mxu1 %vm916_vm0, %v3356_v28  ;;  %v3389_v27 = vld [vmem:[%s4948_s0 + $0x1f0] sm:$0xff]  }
  0xb7   :  { %3098 = vmatprep.mubr.msk.bf16.mxu0 %vm916_vm0, %v3357_v29  ;;  %3226 = vmatprep.mubr.msk.bf16.mxu1 %vm916_vm0, %v3358_v30  ;;  %v3390_v28 = vld [vmem:[%s4948_s0 + $0x3f0] sm:$0xff]  }
  0xbe   :  { %3099 = vmatmul.mubr.msk.bf16.gmra.mrb[92].mxu0 %vm916_vm0, %v3359_v31  ;;  %3227 = vmatmul.mubr.msk.bf16.gmra.mrb[92].mxu1 %vm916_vm0, %v3360_v32 }
  0xbf   :  { %3102 = vmatprep.mubr.msk.bf16.mxu0 %vm916_vm0, %v3361_v33  ;;  %3230 = vmatprep.mubr.msk.bf16.mxu1 %vm916_vm0, %v3362_v34 }
  0xc6   :  { %3103 = vmatmul.mubr.msk.bf16.gmra.mrb[96].mxu0 %vm916_vm0, %v3363_v35  ;;  %3231 = vmatmul.mubr.msk.bf16.gmra.mrb[96].mxu1 %vm916_vm0, %v3364_v36  ;;  %v3391_v35 = vld [vmem:[%s4948_s0 + $0x1f8] sm:$0xff]  }
  0xc7   :  { %3106 = vmatprep.mubr.msk.bf16.mxu0 %vm916_vm0, %v3365_v37  ;;  %3234 = vmatprep.mubr.msk.bf16.mxu1 %vm916_vm0, %v3366_v38  ;;  %v3392_v36 = vld [vmem:[%s4948_s0 + $0x3f8] sm:$0xff]  }
  0xce   :  { %3107 = vmatmul.mubr.msk.bf16.gmra.mrb[100].mxu0 %vm916_vm0, %v3367_v39  ;;  %3235 = vmatmul.mubr.msk.bf16.gmra.mrb[100].mxu1 %vm916_vm0, %v3368_v40 }
  0xcf   :  { %3110 = vmatprep.mubr.msk.bf16.mxu0 %vm916_vm0, %v3369_v41  ;;  %3238 = vmatprep.mubr.msk.bf16.mxu1 %vm916_vm0, %v3370_v42 }
  0xd6   :  { %3111 = vmatmul.mubr.msk.bf16.gmra.mrb[104].mxu0 %vm916_vm0, %v3371_v43  ;;  %3239 = vmatmul.mubr.msk.bf16.gmra.mrb[104].mxu1 %vm916_vm0, %v3372_v44 }
  0xd7   :  { %3114 = vmatprep.mubr.msk.bf16.mxu0 %vm916_vm0, %v3373_v45  ;;  %3242 = vmatprep.mubr.msk.bf16.mxu1 %vm916_vm0, %v3374_v46 }
  0xd9   :  { %v3008_v47 = vpop.f32.mrb[0].mxu0  ;;  %v3136_v48 = vpop.f32.mrb[0].mxu1 }
  0xda   :  { %2360 = vst.msk [vmem:[%s4949_s2 + $0x10] sm:$0xff] %vm916_vm0, %v3008_v47  ;;  %2488 = vst.msk [vmem:[%s4949_s2 + $0x410] sm:$0xff] %vm916_vm0, %v3136_v48  ;;  %v1335_v49 = vpop.f32.mrb[1].mxu0  ;;  %v1847_v50 = vpop.f32.mrb[1].mxu1 }
  0xdb   :  { %2358 = vst.msk [vmem:[%s4949_s2] sm:$0xff] %vm916_vm0, %v1335_v49  ;;  %2486 = vst.msk [vmem:[%s4949_s2 + $0x400] sm:$0xff] %vm916_vm0, %v1847_v50  ;;  %v3009_v53 = vpop.f32.mrb[2].mxu0  ;;  %v3137_v54 = vpop.f32.mrb[2].mxu1 }
  0xdc   :  { %2361 = vst.msk [vmem:[%s4949_s2 + $0x18] sm:$0xff] %vm916_vm0, %v3009_v53  ;;  %2489 = vst.msk [vmem:[%s4949_s2 + $0x418] sm:$0xff] %vm916_vm0, %v3137_v54  ;;  %v1338_v57 = vpop.f32.mrb[3].mxu0  ;;  %v1850_v58 = vpop.f32.mrb[3].mxu1 }
  0xdd   :  { %2359 = vst.msk [vmem:[%s4949_s2 + $0x8] sm:$0xff] %vm916_vm0, %v1338_v57  ;;  %2487 = vst.msk [vmem:[%s4949_s2 + $0x408] sm:$0xff] %vm916_vm0, %v1850_v58 }
  0xde   :  { %3115 = vmatmul.mubr.msk.bf16.gmra.mrb[108].mxu0 %vm916_vm0, %v3375_v51  ;;  %3243 = vmatmul.mubr.msk.bf16.gmra.mrb[108].mxu1 %vm916_vm0, %v3376_v52 }
  0xdf   :  { %3118 = vmatprep.mubr.msk.bf16.mxu0 %vm916_vm0, %v3377_v55  ;;  %3246 = vmatprep.mubr.msk.bf16.mxu1 %vm916_vm0, %v3378_v56 }
  0xe1   :  { %v3012_v59 = vpop.f32.mrb[4].mxu0  ;;  %v3140_v60 = vpop.f32.mrb[4].mxu1 }
  0xe2   :  { %2364 = vst.msk [vmem:[%s4949_s2 + $0x30] sm:$0xff] %vm916_vm0, %v3012_v59  ;;  %2492 = vst.msk [vmem:[%s4949_s2 + $0x430] sm:$0xff] %vm916_vm0, %v3140_v60  ;;  %v1351_v61 = vpop.f32.mrb[5].mxu0  ;;  %v1863_v62 = vpop.f32.mrb[5].mxu1 }
  0xe3   :  { %2362 = vst.msk [vmem:[%s4949_s2 + $0x20] sm:$0xff] %vm916_vm0, %v1351_v61  ;;  %2490 = vst.msk [vmem:[%s4949_s2 + $0x420] sm:$0xff] %vm916_vm0, %v1863_v62  ;;  %v3013_v1 = vpop.f32.mrb[6].mxu0  ;;  %v3141_v2 = vpop.f32.mrb[6].mxu1 }
  0xe4   :  { %2365 = vst.msk [vmem:[%s4949_s2 + $0x38] sm:$0xff] %vm916_vm0, %v3013_v1  ;;  %2493 = vst.msk [vmem:[%s4949_s2 + $0x438] sm:$0xff] %vm916_vm0, %v3141_v2  ;;  %v1354_v5 = vpop.f32.mrb[7].mxu0  ;;  %v1866_v6 = vpop.f32.mrb[7].mxu1 }
  0xe5   :  { %2363 = vst.msk [vmem:[%s4949_s2 + $0x28] sm:$0xff] %vm916_vm0, %v1354_v5  ;;  %2491 = vst.msk [vmem:[%s4949_s2 + $0x428] sm:$0xff] %vm916_vm0, %v1866_v6 }
  0xe6   :  { %3119 = vmatmul.mubr.msk.bf16.gmra.mrb[112].mxu0 %vm916_vm0, %v3379_v63  ;;  %3247 = vmatmul.mubr.msk.bf16.gmra.mrb[112].mxu1 %vm916_vm0, %v3380_v0 }
  0xe7   :  { %3122 = vmatprep.mubr.msk.bf16.mxu0 %vm916_vm0, %v3381_v3  ;;  %3250 = vmatprep.mubr.msk.bf16.mxu1 %vm916_vm0, %v3382_v4 }
  0xe9   :  { %v3016_v7 = vpop.f32.mrb[8].mxu0  ;;  %v3144_v8 = vpop.f32.mrb[8].mxu1 }
  0xea   :  { %2368 = vst.msk [vmem:[%s4949_s2 + $0x50] sm:$0xff] %vm916_vm0, %v3016_v7  ;;  %2496 = vst.msk [vmem:[%s4949_s2 + $0x450] sm:$0xff] %vm916_vm0, %v3144_v8  ;;  %v1367_v9 = vpop.f32.mrb[9].mxu0  ;;  %v1879_v10 = vpop.f32.mrb[9].mxu1 }
  0xeb   :  { %2366 = vst.msk [vmem:[%s4949_s2 + $0x40] sm:$0xff] %vm916_vm0, %v1367_v9  ;;  %2494 = vst.msk [vmem:[%s4949_s2 + $0x440] sm:$0xff] %vm916_vm0, %v1879_v10  ;;  %v3017_v13 = vpop.f32.mrb[10].mxu0  ;;  %v3145_v14 = vpop.f32.mrb[10].mxu1 }
  0xec   :  { %2369 = vst.msk [vmem:[%s4949_s2 + $0x58] sm:$0xff] %vm916_vm0, %v3017_v13  ;;  %2497 = vst.msk [vmem:[%s4949_s2 + $0x458] sm:$0xff] %vm916_vm0, %v3145_v14  ;;  %v1370_v17 = vpop.f32.mrb[11].mxu0  ;;  %v1882_v18 = vpop.f32.mrb[11].mxu1 }
  0xed   :  { %2367 = vst.msk [vmem:[%s4949_s2 + $0x48] sm:$0xff] %vm916_vm0, %v1370_v17  ;;  %2495 = vst.msk [vmem:[%s4949_s2 + $0x448] sm:$0xff] %vm916_vm0, %v1882_v18 }
  0xee   :  { %3123 = vmatmul.mubr.msk.bf16.gmra.mrb[116].mxu0 %vm916_vm0, %v3383_v11  ;;  %3251 = vmatmul.mubr.msk.bf16.gmra.mrb[116].mxu1 %vm916_vm0, %v3384_v12 }
  0xef   :  { %3126 = vmatprep.mubr.msk.bf16.mxu0 %vm916_vm0, %v3385_v15  ;;  %3254 = vmatprep.mubr.msk.bf16.mxu1 %vm916_vm0, %v3386_v16 }
  0xf1   :  { %v3020_v19 = vpop.f32.mrb[12].mxu0  ;;  %v3148_v20 = vpop.f32.mrb[12].mxu1 }
  0xf2   :  { %2372 = vst.msk [vmem:[%s4949_s2 + $0x70] sm:$0xff] %vm916_vm0, %v3020_v19  ;;  %2500 = vst.msk [vmem:[%s4949_s2 + $0x470] sm:$0xff] %vm916_vm0, %v3148_v20  ;;  %v1383_v21 = vpop.f32.mrb[13].mxu0  ;;  %v1895_v22 = vpop.f32.mrb[13].mxu1 }
  0xf3   :  { %2370 = vst.msk [vmem:[%s4949_s2 + $0x60] sm:$0xff] %vm916_vm0, %v1383_v21  ;;  %2498 = vst.msk [vmem:[%s4949_s2 + $0x460] sm:$0xff] %vm916_vm0, %v1895_v22  ;;  %v3021_v25 = vpop.f32.mrb[14].mxu0  ;;  %v3149_v26 = vpop.f32.mrb[14].mxu1 }
  0xf4   :  { %2373 = vst.msk [vmem:[%s4949_s2 + $0x78] sm:$0xff] %vm916_vm0, %v3021_v25  ;;  %2501 = vst.msk [vmem:[%s4949_s2 + $0x478] sm:$0xff] %vm916_vm0, %v3149_v26  ;;  %v1386_v29 = vpop.f32.mrb[15].mxu0  ;;  %v1898_v30 = vpop.f32.mrb[15].mxu1 }
  0xf5   :  { %2371 = vst.msk [vmem:[%s4949_s2 + $0x68] sm:$0xff] %vm916_vm0, %v1386_v29  ;;  %2499 = vst.msk [vmem:[%s4949_s2 + $0x468] sm:$0xff] %vm916_vm0, %v1898_v30 }
  0xf6   :  { %3127 = vmatmul.mubr.msk.bf16.gmra.mrb[120].mxu0 %vm916_vm0, %v3387_v23  ;;  %3255 = vmatmul.mubr.msk.bf16.gmra.mrb[120].mxu1 %vm916_vm0, %v3388_v24 }
  0xf7   :  { %3130 = vmatprep.mubr.msk.bf16.mxu0 %vm916_vm0, %v3389_v27  ;;  %3258 = vmatprep.mubr.msk.bf16.mxu1 %vm916_vm0, %v3390_v28 }
  0xf9   :  { %v3024_v31 = vpop.f32.mrb[16].mxu0  ;;  %v3152_v32 = vpop.f32.mrb[16].mxu1 }
  0xfa   :  { %2376 = vst.msk [vmem:[%s4949_s2 + $0x90] sm:$0xff] %vm916_vm0, %v3024_v31  ;;  %2504 = vst.msk [vmem:[%s4949_s2 + $0x490] sm:$0xff] %vm916_vm0, %v3152_v32  ;;  %v1399_v33 = vpop.f32.mrb[17].mxu0  ;;  %v1911_v34 = vpop.f32.mrb[17].mxu1 }
  0xfb   :  { %2374 = vst.msk [vmem:[%s4949_s2 + $0x80] sm:$0xff] %vm916_vm0, %v1399_v33  ;;  %2502 = vst.msk [vmem:[%s4949_s2 + $0x480] sm:$0xff] %vm916_vm0, %v1911_v34  ;;  %v3025_v37 = vpop.f32.mrb[18].mxu0  ;;  %v3153_v38 = vpop.f32.mrb[18].mxu1 }
  0xfc   :  { %2377 = vst.msk [vmem:[%s4949_s2 + $0x98] sm:$0xff] %vm916_vm0, %v3025_v37  ;;  %2505 = vst.msk [vmem:[%s4949_s2 + $0x498] sm:$0xff] %vm916_vm0, %v3153_v38  ;;  %v1402_v39 = vpop.f32.mrb[19].mxu0  ;;  %v1914_v40 = vpop.f32.mrb[19].mxu1 }
  0xfd   :  { %2375 = vst.msk [vmem:[%s4949_s2 + $0x88] sm:$0xff] %vm916_vm0, %v1402_v39  ;;  %2503 = vst.msk [vmem:[%s4949_s2 + $0x488] sm:$0xff] %vm916_vm0, %v1914_v40 }
  0xfe   :  { %3131 = vmatmul.mubr.msk.bf16.gmra.mrb[124].mxu0 %vm916_vm0, %v3391_v35  ;;  %3259 = vmatmul.mubr.msk.bf16.gmra.mrb[124].mxu1 %vm916_vm0, %v3392_v36 }
 0x101   :  { %v3028_v41 = vpop.f32.mrb[20].mxu0  ;;  %v3156_v42 = vpop.f32.mrb[20].mxu1 }
 0x102   :  { %2380 = vst.msk [vmem:[%s4949_s2 + $0xb0] sm:$0xff] %vm916_vm0, %v3028_v41  ;;  %2508 = vst.msk [vmem:[%s4949_s2 + $0x4b0] sm:$0xff] %vm916_vm0, %v3156_v42  ;;  %v1415_v43 = vpop.f32.mrb[21].mxu0  ;;  %v1927_v44 = vpop.f32.mrb[21].mxu1 }
 0x103   :  { %2378 = vst.msk [vmem:[%s4949_s2 + $0xa0] sm:$0xff] %vm916_vm0, %v1415_v43  ;;  %2506 = vst.msk [vmem:[%s4949_s2 + $0x4a0] sm:$0xff] %vm916_vm0, %v1927_v44  ;;  %v3029_v45 = vpop.f32.mrb[22].mxu0  ;;  %v3157_v46 = vpop.f32.mrb[22].mxu1 }
 0x104   :  { %2381 = vst.msk [vmem:[%s4949_s2 + $0xb8] sm:$0xff] %vm916_vm0, %v3029_v45  ;;  %2509 = vst.msk [vmem:[%s4949_s2 + $0x4b8] sm:$0xff] %vm916_vm0, %v3157_v46  ;;  %v1418_v47 = vpop.f32.mrb[23].mxu0  ;;  %v1930_v48 = vpop.f32.mrb[23].mxu1 }
 0x105   :  { %2379 = vst.msk [vmem:[%s4949_s2 + $0xa8] sm:$0xff] %vm916_vm0, %v1418_v47  ;;  %2507 = vst.msk [vmem:[%s4949_s2 + $0x4a8] sm:$0xff] %vm916_vm0, %v1930_v48 }
 0x109   :  { %v3032_v49 = vpop.f32.mrb[24].mxu0  ;;  %v3160_v50 = vpop.f32.mrb[24].mxu1 }
 0x10a   :  { %2384 = vst.msk [vmem:[%s4949_s2 + $0xd0] sm:$0xff] %vm916_vm0, %v3032_v49  ;;  %2512 = vst.msk [vmem:[%s4949_s2 + $0x4d0] sm:$0xff] %vm916_vm0, %v3160_v50  ;;  %v1431_v51 = vpop.f32.mrb[25].mxu0  ;;  %v1943_v52 = vpop.f32.mrb[25].mxu1 }
 0x10b   :  { %2382 = vst.msk [vmem:[%s4949_s2 + $0xc0] sm:$0xff] %vm916_vm0, %v1431_v51  ;;  %2510 = vst.msk [vmem:[%s4949_s2 + $0x4c0] sm:$0xff] %vm916_vm0, %v1943_v52  ;;  %v3033_v53 = vpop.f32.mrb[26].mxu0  ;;  %v3161_v54 = vpop.f32.mrb[26].mxu1 }
 0x10c   :  { %2385 = vst.msk [vmem:[%s4949_s2 + $0xd8] sm:$0xff] %vm916_vm0, %v3033_v53  ;;  %2513 = vst.msk [vmem:[%s4949_s2 + $0x4d8] sm:$0xff] %vm916_vm0, %v3161_v54  ;;  %v1434_v55 = vpop.f32.mrb[27].mxu0  ;;  %v1946_v56 = vpop.f32.mrb[27].mxu1 }
 0x10d   :  { %2383 = vst.msk [vmem:[%s4949_s2 + $0xc8] sm:$0xff] %vm916_vm0, %v1434_v55  ;;  %2511 = vst.msk [vmem:[%s4949_s2 + $0x4c8] sm:$0xff] %vm916_vm0, %v1946_v56 }
 0x111   :  { %v3036_v57 = vpop.f32.mrb[28].mxu0  ;;  %v3164_v58 = vpop.f32.mrb[28].mxu1 }
 0x112   :  { %2388 = vst.msk [vmem:[%s4949_s2 + $0xf0] sm:$0xff] %vm916_vm0, %v3036_v57  ;;  %2516 = vst.msk [vmem:[%s4949_s2 + $0x4f0] sm:$0xff] %vm916_vm0, %v3164_v58  ;;  %v1447_v59 = vpop.f32.mrb[29].mxu0  ;;  %v1959_v60 = vpop.f32.mrb[29].mxu1 }
 0x113   :  { %2386 = vst.msk [vmem:[%s4949_s2 + $0xe0] sm:$0xff] %vm916_vm0, %v1447_v59  ;;  %2514 = vst.msk [vmem:[%s4949_s2 + $0x4e0] sm:$0xff] %vm916_vm0, %v1959_v60  ;;  %v3037_v61 = vpop.f32.mrb[30].mxu0  ;;  %v3165_v62 = vpop.f32.mrb[30].mxu1 }
 0x114   :  { %2389 = vst.msk [vmem:[%s4949_s2 + $0xf8] sm:$0xff] %vm916_vm0, %v3037_v61  ;;  %2517 = vst.msk [vmem:[%s4949_s2 + $0x4f8] sm:$0xff] %vm916_vm0, %v3165_v62  ;;  %v1450_v63 = vpop.f32.mrb[31].mxu0  ;;  %v1962_v0 = vpop.f32.mrb[31].mxu1 }
 0x115   :  { %2387 = vst.msk [vmem:[%s4949_s2 + $0xe8] sm:$0xff] %vm916_vm0, %v1450_v63  ;;  %2515 = vst.msk [vmem:[%s4949_s2 + $0x4e8] sm:$0xff] %vm916_vm0, %v1962_v0 }
 0x119   :  { %v3040_v1 = vpop.f32.mrb[32].mxu0  ;;  %v3168_v2 = vpop.f32.mrb[32].mxu1 }
 0x11a   :  { %2392 = vst.msk [vmem:[%s4949_s2 + $0x110] sm:$0xff] %vm916_vm0, %v3040_v1  ;;  %2520 = vst.msk [vmem:[%s4949_s2 + $0x510] sm:$0xff] %vm916_vm0, %v3168_v2  ;;  %v1463_v3 = vpop.f32.mrb[33].mxu0  ;;  %v1975_v4 = vpop.f32.mrb[33].mxu1 }
 0x11b   :  { %2390 = vst.msk [vmem:[%s4949_s2 + $0x100] sm:$0xff] %vm916_vm0, %v1463_v3  ;;  %2518 = vst.msk [vmem:[%s4949_s2 + $0x500] sm:$0xff] %vm916_vm0, %v1975_v4  ;;  %v3041_v5 = vpop.f32.mrb[34].mxu0  ;;  %v3169_v6 = vpop.f32.mrb[34].mxu1 }
 0x11c   :  { %2393 = vst.msk [vmem:[%s4949_s2 + $0x118] sm:$0xff] %vm916_vm0, %v3041_v5  ;;  %2521 = vst.msk [vmem:[%s4949_s2 + $0x518] sm:$0xff] %vm916_vm0, %v3169_v6  ;;  %v1466_v7 = vpop.f32.mrb[35].mxu0  ;;  %v1978_v8 = vpop.f32.mrb[35].mxu1 }
 0x11d   :  { %2391 = vst.msk [vmem:[%s4949_s2 + $0x108] sm:$0xff] %vm916_vm0, %v1466_v7  ;;  %2519 = vst.msk [vmem:[%s4949_s2 + $0x508] sm:$0xff] %vm916_vm0, %v1978_v8 }
 0x121   :  { %v3044_v9 = vpop.f32.mrb[36].mxu0  ;;  %v3172_v10 = vpop.f32.mrb[36].mxu1 }
 0x122   :  { %2396 = vst.msk [vmem:[%s4949_s2 + $0x130] sm:$0xff] %vm916_vm0, %v3044_v9  ;;  %2524 = vst.msk [vmem:[%s4949_s2 + $0x530] sm:$0xff] %vm916_vm0, %v3172_v10  ;;  %v1479_v11 = vpop.f32.mrb[37].mxu0  ;;  %v1991_v12 = vpop.f32.mrb[37].mxu1 }
 0x123   :  { %2394 = vst.msk [vmem:[%s4949_s2 + $0x120] sm:$0xff] %vm916_vm0, %v1479_v11  ;;  %2522 = vst.msk [vmem:[%s4949_s2 + $0x520] sm:$0xff] %vm916_vm0, %v1991_v12  ;;  %v3045_v13 = vpop.f32.mrb[38].mxu0  ;;  %v3173_v14 = vpop.f32.mrb[38].mxu1 }
 0x124   :  { %2397 = vst.msk [vmem:[%s4949_s2 + $0x138] sm:$0xff] %vm916_vm0, %v3045_v13  ;;  %2525 = vst.msk [vmem:[%s4949_s2 + $0x538] sm:$0xff] %vm916_vm0, %v3173_v14  ;;  %v1482_v15 = vpop.f32.mrb[39].mxu0  ;;  %v1994_v16 = vpop.f32.mrb[39].mxu1 }
 0x125   :  { %2395 = vst.msk [vmem:[%s4949_s2 + $0x128] sm:$0xff] %vm916_vm0, %v1482_v15  ;;  %2523 = vst.msk [vmem:[%s4949_s2 + $0x528] sm:$0xff] %vm916_vm0, %v1994_v16 }
 0x129   :  { %v3048_v17 = vpop.f32.mrb[40].mxu0  ;;  %v3176_v18 = vpop.f32.mrb[40].mxu1 }
 0x12a   :  { %2400 = vst.msk [vmem:[%s4949_s2 + $0x150] sm:$0xff] %vm916_vm0, %v3048_v17  ;;  %2528 = vst.msk [vmem:[%s4949_s2 + $0x550] sm:$0xff] %vm916_vm0, %v3176_v18  ;;  %v1495_v19 = vpop.f32.mrb[41].mxu0  ;;  %v2007_v20 = vpop.f32.mrb[41].mxu1 }
 0x12b   :  { %2398 = vst.msk [vmem:[%s4949_s2 + $0x140] sm:$0xff] %vm916_vm0, %v1495_v19  ;;  %2526 = vst.msk [vmem:[%s4949_s2 + $0x540] sm:$0xff] %vm916_vm0, %v2007_v20  ;;  %v3049_v21 = vpop.f32.mrb[42].mxu0  ;;  %v3177_v22 = vpop.f32.mrb[42].mxu1 }
 0x12c   :  { %2401 = vst.msk [vmem:[%s4949_s2 + $0x158] sm:$0xff] %vm916_vm0, %v3049_v21  ;;  %2529 = vst.msk [vmem:[%s4949_s2 + $0x558] sm:$0xff] %vm916_vm0, %v3177_v22  ;;  %v1498_v23 = vpop.f32.mrb[43].mxu0  ;;  %v2010_v24 = vpop.f32.mrb[43].mxu1 }
 0x12d   :  { %2399 = vst.msk [vmem:[%s4949_s2 + $0x148] sm:$0xff] %vm916_vm0, %v1498_v23  ;;  %2527 = vst.msk [vmem:[%s4949_s2 + $0x548] sm:$0xff] %vm916_vm0, %v2010_v24 }
 0x131   :  { %v3052_v25 = vpop.f32.mrb[44].mxu0  ;;  %v3180_v26 = vpop.f32.mrb[44].mxu1 }
 0x132   :  { %2404 = vst.msk [vmem:[%s4949_s2 + $0x170] sm:$0xff] %vm916_vm0, %v3052_v25  ;;  %2532 = vst.msk [vmem:[%s4949_s2 + $0x570] sm:$0xff] %vm916_vm0, %v3180_v26  ;;  %v1511_v27 = vpop.f32.mrb[45].mxu0  ;;  %v2023_v28 = vpop.f32.mrb[45].mxu1 }
 0x133   :  { %2402 = vst.msk [vmem:[%s4949_s2 + $0x160] sm:$0xff] %vm916_vm0, %v1511_v27  ;;  %2530 = vst.msk [vmem:[%s4949_s2 + $0x560] sm:$0xff] %vm916_vm0, %v2023_v28  ;;  %v3053_v29 = vpop.f32.mrb[46].mxu0  ;;  %v3181_v30 = vpop.f32.mrb[46].mxu1 }
 0x134   :  { %2405 = vst.msk [vmem:[%s4949_s2 + $0x178] sm:$0xff] %vm916_vm0, %v3053_v29  ;;  %2533 = vst.msk [vmem:[%s4949_s2 + $0x578] sm:$0xff] %vm916_vm0, %v3181_v30  ;;  %v1514_v31 = vpop.f32.mrb[47].mxu0  ;;  %v2026_v32 = vpop.f32.mrb[47].mxu1 }
 0x135   :  { %2403 = vst.msk [vmem:[%s4949_s2 + $0x168] sm:$0xff] %vm916_vm0, %v1514_v31  ;;  %2531 = vst.msk [vmem:[%s4949_s2 + $0x568] sm:$0xff] %vm916_vm0, %v2026_v32 }
 0x139   :  { %v3056_v33 = vpop.f32.mrb[48].mxu0  ;;  %v3184_v34 = vpop.f32.mrb[48].mxu1 }
 0x13a   :  { %2408 = vst.msk [vmem:[%s4949_s2 + $0x190] sm:$0xff] %vm916_vm0, %v3056_v33  ;;  %2536 = vst.msk [vmem:[%s4949_s2 + $0x590] sm:$0xff] %vm916_vm0, %v3184_v34  ;;  %v1527_v35 = vpop.f32.mrb[49].mxu0  ;;  %v2039_v36 = vpop.f32.mrb[49].mxu1 }
 0x13b   :  { %2406 = vst.msk [vmem:[%s4949_s2 + $0x180] sm:$0xff] %vm916_vm0, %v1527_v35  ;;  %2534 = vst.msk [vmem:[%s4949_s2 + $0x580] sm:$0xff] %vm916_vm0, %v2039_v36  ;;  %v3057_v37 = vpop.f32.mrb[50].mxu0  ;;  %v3185_v38 = vpop.f32.mrb[50].mxu1 }
 0x13c   :  { %2409 = vst.msk [vmem:[%s4949_s2 + $0x198] sm:$0xff] %vm916_vm0, %v3057_v37  ;;  %2537 = vst.msk [vmem:[%s4949_s2 + $0x598] sm:$0xff] %vm916_vm0, %v3185_v38  ;;  %v1530_v39 = vpop.f32.mrb[51].mxu0  ;;  %v2042_v40 = vpop.f32.mrb[51].mxu1 }
 0x13d   :  { %2407 = vst.msk [vmem:[%s4949_s2 + $0x188] sm:$0xff] %vm916_vm0, %v1530_v39  ;;  %2535 = vst.msk [vmem:[%s4949_s2 + $0x588] sm:$0xff] %vm916_vm0, %v2042_v40 }
 0x141   :  { %v3060_v41 = vpop.f32.mrb[52].mxu0  ;;  %v3188_v42 = vpop.f32.mrb[52].mxu1 }
 0x142   :  { %2412 = vst.msk [vmem:[%s4949_s2 + $0x1b0] sm:$0xff] %vm916_vm0, %v3060_v41  ;;  %2540 = vst.msk [vmem:[%s4949_s2 + $0x5b0] sm:$0xff] %vm916_vm0, %v3188_v42  ;;  %v1543_v43 = vpop.f32.mrb[53].mxu0  ;;  %v2055_v44 = vpop.f32.mrb[53].mxu1 }
 0x143   :  { %2410 = vst.msk [vmem:[%s4949_s2 + $0x1a0] sm:$0xff] %vm916_vm0, %v1543_v43  ;;  %2538 = vst.msk [vmem:[%s4949_s2 + $0x5a0] sm:$0xff] %vm916_vm0, %v2055_v44  ;;  %v3061_v45 = vpop.f32.mrb[54].mxu0  ;;  %v3189_v46 = vpop.f32.mrb[54].mxu1 }
 0x144   :  { %2413 = vst.msk [vmem:[%s4949_s2 + $0x1b8] sm:$0xff] %vm916_vm0, %v3061_v45  ;;  %2541 = vst.msk [vmem:[%s4949_s2 + $0x5b8] sm:$0xff] %vm916_vm0, %v3189_v46  ;;  %v1546_v47 = vpop.f32.mrb[55].mxu0  ;;  %v2058_v48 = vpop.f32.mrb[55].mxu1 }
 0x145   :  { %2411 = vst.msk [vmem:[%s4949_s2 + $0x1a8] sm:$0xff] %vm916_vm0, %v1546_v47  ;;  %2539 = vst.msk [vmem:[%s4949_s2 + $0x5a8] sm:$0xff] %vm916_vm0, %v2058_v48 }
 0x149   :  { %v3064_v49 = vpop.f32.mrb[56].mxu0  ;;  %v3192_v50 = vpop.f32.mrb[56].mxu1 }
 0x14a   :  { %2416 = vst.msk [vmem:[%s4949_s2 + $0x1d0] sm:$0xff] %vm916_vm0, %v3064_v49  ;;  %2544 = vst.msk [vmem:[%s4949_s2 + $0x5d0] sm:$0xff] %vm916_vm0, %v3192_v50  ;;  %v1559_v51 = vpop.f32.mrb[57].mxu0  ;;  %v2071_v52 = vpop.f32.mrb[57].mxu1 }
 0x14b   :  { %2414 = vst.msk [vmem:[%s4949_s2 + $0x1c0] sm:$0xff] %vm916_vm0, %v1559_v51  ;;  %2542 = vst.msk [vmem:[%s4949_s2 + $0x5c0] sm:$0xff] %vm916_vm0, %v2071_v52  ;;  %v3065_v53 = vpop.f32.mrb[58].mxu0  ;;  %v3193_v54 = vpop.f32.mrb[58].mxu1 }
 0x14c   :  { %2417 = vst.msk [vmem:[%s4949_s2 + $0x1d8] sm:$0xff] %vm916_vm0, %v3065_v53  ;;  %2545 = vst.msk [vmem:[%s4949_s2 + $0x5d8] sm:$0xff] %vm916_vm0, %v3193_v54  ;;  %v1562_v55 = vpop.f32.mrb[59].mxu0  ;;  %v2074_v56 = vpop.f32.mrb[59].mxu1 }
 0x14d   :  { %2415 = vst.msk [vmem:[%s4949_s2 + $0x1c8] sm:$0xff] %vm916_vm0, %v1562_v55  ;;  %2543 = vst.msk [vmem:[%s4949_s2 + $0x5c8] sm:$0xff] %vm916_vm0, %v2074_v56 }
 0x151   :  { %v3068_v57 = vpop.f32.mrb[60].mxu0  ;;  %v3196_v58 = vpop.f32.mrb[60].mxu1 }
 0x152   :  { %2420 = vst.msk [vmem:[%s4949_s2 + $0x1f0] sm:$0xff] %vm916_vm0, %v3068_v57  ;;  %2548 = vst.msk [vmem:[%s4949_s2 + $0x5f0] sm:$0xff] %vm916_vm0, %v3196_v58  ;;  %v1575_v59 = vpop.f32.mrb[61].mxu0  ;;  %v2087_v60 = vpop.f32.mrb[61].mxu1 }
 0x153   :  { %2418 = vst.msk [vmem:[%s4949_s2 + $0x1e0] sm:$0xff] %vm916_vm0, %v1575_v59  ;;  %2546 = vst.msk [vmem:[%s4949_s2 + $0x5e0] sm:$0xff] %vm916_vm0, %v2087_v60  ;;  %v3069_v61 = vpop.f32.mrb[62].mxu0  ;;  %v3197_v62 = vpop.f32.mrb[62].mxu1 }
 0x154   :  { %2421 = vst.msk [vmem:[%s4949_s2 + $0x1f8] sm:$0xff] %vm916_vm0, %v3069_v61  ;;  %2549 = vst.msk [vmem:[%s4949_s2 + $0x5f8] sm:$0xff] %vm916_vm0, %v3197_v62  ;;  %v1578_v63 = vpop.f32.mrb[63].mxu0  ;;  %v2090_v0 = vpop.f32.mrb[63].mxu1 }
 0x155   :  { %2419 = vst.msk [vmem:[%s4949_s2 + $0x1e8] sm:$0xff] %vm916_vm0, %v1578_v63  ;;  %2547 = vst.msk [vmem:[%s4949_s2 + $0x5e8] sm:$0xff] %vm916_vm0, %v2090_v0 }
 0x159   :  { %v3072_v1 = vpop.f32.mrb[64].mxu0  ;;  %v3200_v2 = vpop.f32.mrb[64].mxu1 }
 0x15a   :  { %2424 = vst.msk [vmem:[%s4949_s2 + $0x210] sm:$0xff] %vm916_vm0, %v3072_v1  ;;  %2552 = vst.msk [vmem:[%s4949_s2 + $0x610] sm:$0xff] %vm916_vm0, %v3200_v2  ;;  %v1591_v3 = vpop.f32.mrb[65].mxu0  ;;  %v2103_v4 = vpop.f32.mrb[65].mxu1 }
 0x15b   :  { %2422 = vst.msk [vmem:[%s4949_s2 + $0x200] sm:$0xff] %vm916_vm0, %v1591_v3  ;;  %2550 = vst.msk [vmem:[%s4949_s2 + $0x600] sm:$0xff] %vm916_vm0, %v2103_v4  ;;  %v3073_v5 = vpop.f32.mrb[66].mxu0  ;;  %v3201_v6 = vpop.f32.mrb[66].mxu1 }
 0x15c   :  { %2425 = vst.msk [vmem:[%s4949_s2 + $0x218] sm:$0xff] %vm916_vm0, %v3073_v5  ;;  %2553 = vst.msk [vmem:[%s4949_s2 + $0x618] sm:$0xff] %vm916_vm0, %v3201_v6  ;;  %v1594_v7 = vpop.f32.mrb[67].mxu0  ;;  %v2106_v8 = vpop.f32.mrb[67].mxu1 }
 0x15d   :  { %2423 = vst.msk [vmem:[%s4949_s2 + $0x208] sm:$0xff] %vm916_vm0, %v1594_v7  ;;  %2551 = vst.msk [vmem:[%s4949_s2 + $0x608] sm:$0xff] %vm916_vm0, %v2106_v8 }
 0x161   :  { %v3076_v9 = vpop.f32.mrb[68].mxu0  ;;  %v3204_v10 = vpop.f32.mrb[68].mxu1 }
 0x162   :  { %2428 = vst.msk [vmem:[%s4949_s2 + $0x230] sm:$0xff] %vm916_vm0, %v3076_v9  ;;  %2556 = vst.msk [vmem:[%s4949_s2 + $0x630] sm:$0xff] %vm916_vm0, %v3204_v10  ;;  %v1607_v11 = vpop.f32.mrb[69].mxu0  ;;  %v2119_v12 = vpop.f32.mrb[69].mxu1 }
 0x163   :  { %2426 = vst.msk [vmem:[%s4949_s2 + $0x220] sm:$0xff] %vm916_vm0, %v1607_v11  ;;  %2554 = vst.msk [vmem:[%s4949_s2 + $0x620] sm:$0xff] %vm916_vm0, %v2119_v12  ;;  %v3077_v13 = vpop.f32.mrb[70].mxu0  ;;  %v3205_v14 = vpop.f32.mrb[70].mxu1 }
 0x164   :  { %2429 = vst.msk [vmem:[%s4949_s2 + $0x238] sm:$0xff] %vm916_vm0, %v3077_v13  ;;  %2557 = vst.msk [vmem:[%s4949_s2 + $0x638] sm:$0xff] %vm916_vm0, %v3205_v14  ;;  %v1610_v15 = vpop.f32.mrb[71].mxu0  ;;  %v2122_v16 = vpop.f32.mrb[71].mxu1 }
 0x165   :  { %2427 = vst.msk [vmem:[%s4949_s2 + $0x228] sm:$0xff] %vm916_vm0, %v1610_v15  ;;  %2555 = vst.msk [vmem:[%s4949_s2 + $0x628] sm:$0xff] %vm916_vm0, %v2122_v16 }
 0x169   :  { %v3080_v17 = vpop.f32.mrb[72].mxu0  ;;  %v3208_v18 = vpop.f32.mrb[72].mxu1 }
 0x16a   :  { %2432 = vst.msk [vmem:[%s4949_s2 + $0x250] sm:$0xff] %vm916_vm0, %v3080_v17  ;;  %2560 = vst.msk [vmem:[%s4949_s2 + $0x650] sm:$0xff] %vm916_vm0, %v3208_v18  ;;  %v1623_v19 = vpop.f32.mrb[73].mxu0  ;;  %v2135_v20 = vpop.f32.mrb[73].mxu1 }
 0x16b   :  { %2430 = vst.msk [vmem:[%s4949_s2 + $0x240] sm:$0xff] %vm916_vm0, %v1623_v19  ;;  %2558 = vst.msk [vmem:[%s4949_s2 + $0x640] sm:$0xff] %vm916_vm0, %v2135_v20  ;;  %v3081_v21 = vpop.f32.mrb[74].mxu0  ;;  %v3209_v22 = vpop.f32.mrb[74].mxu1 }
 0x16c   :  { %2433 = vst.msk [vmem:[%s4949_s2 + $0x258] sm:$0xff] %vm916_vm0, %v3081_v21  ;;  %2561 = vst.msk [vmem:[%s4949_s2 + $0x658] sm:$0xff] %vm916_vm0, %v3209_v22  ;;  %v1626_v23 = vpop.f32.mrb[75].mxu0  ;;  %v2138_v24 = vpop.f32.mrb[75].mxu1 }
 0x16d   :  { %2431 = vst.msk [vmem:[%s4949_s2 + $0x248] sm:$0xff] %vm916_vm0, %v1626_v23  ;;  %2559 = vst.msk [vmem:[%s4949_s2 + $0x648] sm:$0xff] %vm916_vm0, %v2138_v24 }
 0x171   :  { %v3084_v25 = vpop.f32.mrb[76].mxu0  ;;  %v3212_v26 = vpop.f32.mrb[76].mxu1 }
 0x172   :  { %2436 = vst.msk [vmem:[%s4949_s2 + $0x270] sm:$0xff] %vm916_vm0, %v3084_v25  ;;  %2564 = vst.msk [vmem:[%s4949_s2 + $0x670] sm:$0xff] %vm916_vm0, %v3212_v26  ;;  %v1639_v27 = vpop.f32.mrb[77].mxu0  ;;  %v2151_v28 = vpop.f32.mrb[77].mxu1 }
 0x173   :  { %2434 = vst.msk [vmem:[%s4949_s2 + $0x260] sm:$0xff] %vm916_vm0, %v1639_v27  ;;  %2562 = vst.msk [vmem:[%s4949_s2 + $0x660] sm:$0xff] %vm916_vm0, %v2151_v28  ;;  %v3085_v29 = vpop.f32.mrb[78].mxu0  ;;  %v3213_v30 = vpop.f32.mrb[78].mxu1 }
 0x174   :  { %2437 = vst.msk [vmem:[%s4949_s2 + $0x278] sm:$0xff] %vm916_vm0, %v3085_v29  ;;  %2565 = vst.msk [vmem:[%s4949_s2 + $0x678] sm:$0xff] %vm916_vm0, %v3213_v30  ;;  %v1642_v31 = vpop.f32.mrb[79].mxu0  ;;  %v2154_v32 = vpop.f32.mrb[79].mxu1 }
 0x175   :  { %2435 = vst.msk [vmem:[%s4949_s2 + $0x268] sm:$0xff] %vm916_vm0, %v1642_v31  ;;  %2563 = vst.msk [vmem:[%s4949_s2 + $0x668] sm:$0xff] %vm916_vm0, %v2154_v32 }
 0x179   :  { %v3088_v33 = vpop.f32.mrb[80].mxu0  ;;  %v3216_v34 = vpop.f32.mrb[80].mxu1 }
 0x17a   :  { %2440 = vst.msk [vmem:[%s4949_s2 + $0x290] sm:$0xff] %vm916_vm0, %v3088_v33  ;;  %2568 = vst.msk [vmem:[%s4949_s2 + $0x690] sm:$0xff] %vm916_vm0, %v3216_v34  ;;  %v1655_v35 = vpop.f32.mrb[81].mxu0  ;;  %v2167_v36 = vpop.f32.mrb[81].mxu1 }
 0x17b   :  { %2438 = vst.msk [vmem:[%s4949_s2 + $0x280] sm:$0xff] %vm916_vm0, %v1655_v35  ;;  %2566 = vst.msk [vmem:[%s4949_s2 + $0x680] sm:$0xff] %vm916_vm0, %v2167_v36  ;;  %v3089_v37 = vpop.f32.mrb[82].mxu0  ;;  %v3217_v38 = vpop.f32.mrb[82].mxu1 }
 0x17c   :  { %2441 = vst.msk [vmem:[%s4949_s2 + $0x298] sm:$0xff] %vm916_vm0, %v3089_v37  ;;  %2569 = vst.msk [vmem:[%s4949_s2 + $0x698] sm:$0xff] %vm916_vm0, %v3217_v38  ;;  %v1658_v39 = vpop.f32.mrb[83].mxu0  ;;  %v2170_v40 = vpop.f32.mrb[83].mxu1 }
 0x17d   :  { %2439 = vst.msk [vmem:[%s4949_s2 + $0x288] sm:$0xff] %vm916_vm0, %v1658_v39  ;;  %2567 = vst.msk [vmem:[%s4949_s2 + $0x688] sm:$0xff] %vm916_vm0, %v2170_v40 }
 0x181   :  { %v3092_v41 = vpop.f32.mrb[84].mxu0  ;;  %v3220_v42 = vpop.f32.mrb[84].mxu1 }
 0x182   :  { %2444 = vst.msk [vmem:[%s4949_s2 + $0x2b0] sm:$0xff] %vm916_vm0, %v3092_v41  ;;  %2572 = vst.msk [vmem:[%s4949_s2 + $0x6b0] sm:$0xff] %vm916_vm0, %v3220_v42  ;;  %v1671_v43 = vpop.f32.mrb[85].mxu0  ;;  %v2183_v44 = vpop.f32.mrb[85].mxu1 }
 0x183   :  { %2442 = vst.msk [vmem:[%s4949_s2 + $0x2a0] sm:$0xff] %vm916_vm0, %v1671_v43  ;;  %2570 = vst.msk [vmem:[%s4949_s2 + $0x6a0] sm:$0xff] %vm916_vm0, %v2183_v44  ;;  %v3093_v45 = vpop.f32.mrb[86].mxu0  ;;  %v3221_v46 = vpop.f32.mrb[86].mxu1 }
 0x184   :  { %2445 = vst.msk [vmem:[%s4949_s2 + $0x2b8] sm:$0xff] %vm916_vm0, %v3093_v45  ;;  %2573 = vst.msk [vmem:[%s4949_s2 + $0x6b8] sm:$0xff] %vm916_vm0, %v3221_v46  ;;  %v1674_v47 = vpop.f32.mrb[87].mxu0  ;;  %v2186_v48 = vpop.f32.mrb[87].mxu1 }
 0x185   :  { %2443 = vst.msk [vmem:[%s4949_s2 + $0x2a8] sm:$0xff] %vm916_vm0, %v1674_v47  ;;  %2571 = vst.msk [vmem:[%s4949_s2 + $0x6a8] sm:$0xff] %vm916_vm0, %v2186_v48 }
 0x189   :  { %v3096_v49 = vpop.f32.mrb[88].mxu0  ;;  %v3224_v50 = vpop.f32.mrb[88].mxu1 }
 0x18a   :  { %2448 = vst.msk [vmem:[%s4949_s2 + $0x2d0] sm:$0xff] %vm916_vm0, %v3096_v49  ;;  %2576 = vst.msk [vmem:[%s4949_s2 + $0x6d0] sm:$0xff] %vm916_vm0, %v3224_v50  ;;  %v1687_v51 = vpop.f32.mrb[89].mxu0  ;;  %v2199_v52 = vpop.f32.mrb[89].mxu1 }
 0x18b   :  { %2446 = vst.msk [vmem:[%s4949_s2 + $0x2c0] sm:$0xff] %vm916_vm0, %v1687_v51  ;;  %2574 = vst.msk [vmem:[%s4949_s2 + $0x6c0] sm:$0xff] %vm916_vm0, %v2199_v52  ;;  %v3097_v53 = vpop.f32.mrb[90].mxu0  ;;  %v3225_v54 = vpop.f32.mrb[90].mxu1 }
 0x18c   :  { %2449 = vst.msk [vmem:[%s4949_s2 + $0x2d8] sm:$0xff] %vm916_vm0, %v3097_v53  ;;  %2577 = vst.msk [vmem:[%s4949_s2 + $0x6d8] sm:$0xff] %vm916_vm0, %v3225_v54  ;;  %v1690_v55 = vpop.f32.mrb[91].mxu0  ;;  %v2202_v56 = vpop.f32.mrb[91].mxu1 }
 0x18d   :  { %2447 = vst.msk [vmem:[%s4949_s2 + $0x2c8] sm:$0xff] %vm916_vm0, %v1690_v55  ;;  %2575 = vst.msk [vmem:[%s4949_s2 + $0x6c8] sm:$0xff] %vm916_vm0, %v2202_v56 }
 0x191   :  { %v3100_v57 = vpop.f32.mrb[92].mxu0  ;;  %v3228_v58 = vpop.f32.mrb[92].mxu1 }
 0x192   :  { %2452 = vst.msk [vmem:[%s4949_s2 + $0x2f0] sm:$0xff] %vm916_vm0, %v3100_v57  ;;  %2580 = vst.msk [vmem:[%s4949_s2 + $0x6f0] sm:$0xff] %vm916_vm0, %v3228_v58  ;;  %v1703_v59 = vpop.f32.mrb[93].mxu0  ;;  %v2215_v60 = vpop.f32.mrb[93].mxu1 }
 0x193   :  { %2450 = vst.msk [vmem:[%s4949_s2 + $0x2e0] sm:$0xff] %vm916_vm0, %v1703_v59  ;;  %2578 = vst.msk [vmem:[%s4949_s2 + $0x6e0] sm:$0xff] %vm916_vm0, %v2215_v60  ;;  %v3101_v61 = vpop.f32.mrb[94].mxu0  ;;  %v3229_v62 = vpop.f32.mrb[94].mxu1 }
 0x194   :  { %2453 = vst.msk [vmem:[%s4949_s2 + $0x2f8] sm:$0xff] %vm916_vm0, %v3101_v61  ;;  %2581 = vst.msk [vmem:[%s4949_s2 + $0x6f8] sm:$0xff] %vm916_vm0, %v3229_v62  ;;  %v1706_v63 = vpop.f32.mrb[95].mxu0  ;;  %v2218_v0 = vpop.f32.mrb[95].mxu1 }
 0x195   :  { %2451 = vst.msk [vmem:[%s4949_s2 + $0x2e8] sm:$0xff] %vm916_vm0, %v1706_v63  ;;  %2579 = vst.msk [vmem:[%s4949_s2 + $0x6e8] sm:$0xff] %vm916_vm0, %v2218_v0 }
 0x199   :  { %v3104_v1 = vpop.f32.mrb[96].mxu0  ;;  %v3232_v2 = vpop.f32.mrb[96].mxu1 }
 0x19a   :  { %2456 = vst.msk [vmem:[%s4949_s2 + $0x310] sm:$0xff] %vm916_vm0, %v3104_v1  ;;  %2584 = vst.msk [vmem:[%s4949_s2 + $0x710] sm:$0xff] %vm916_vm0, %v3232_v2  ;;  %v1719_v3 = vpop.f32.mrb[97].mxu0  ;;  %v2231_v4 = vpop.f32.mrb[97].mxu1 }
 0x19b   :  { %2454 = vst.msk [vmem:[%s4949_s2 + $0x300] sm:$0xff] %vm916_vm0, %v1719_v3  ;;  %2582 = vst.msk [vmem:[%s4949_s2 + $0x700] sm:$0xff] %vm916_vm0, %v2231_v4  ;;  %v3105_v5 = vpop.f32.mrb[98].mxu0  ;;  %v3233_v6 = vpop.f32.mrb[98].mxu1 }
 0x19c   :  { %2457 = vst.msk [vmem:[%s4949_s2 + $0x318] sm:$0xff] %vm916_vm0, %v3105_v5  ;;  %2585 = vst.msk [vmem:[%s4949_s2 + $0x718] sm:$0xff] %vm916_vm0, %v3233_v6  ;;  %v1722_v7 = vpop.f32.mrb[99].mxu0  ;;  %v2234_v8 = vpop.f32.mrb[99].mxu1 }
 0x19d   :  { %2455 = vst.msk [vmem:[%s4949_s2 + $0x308] sm:$0xff] %vm916_vm0, %v1722_v7  ;;  %2583 = vst.msk [vmem:[%s4949_s2 + $0x708] sm:$0xff] %vm916_vm0, %v2234_v8 }
 0x1a1   :  { %v3108_v9 = vpop.f32.mrb[100].mxu0  ;;  %v3236_v10 = vpop.f32.mrb[100].mxu1 }
 0x1a2   :  { %2460 = vst.msk [vmem:[%s4949_s2 + $0x330] sm:$0xff] %vm916_vm0, %v3108_v9  ;;  %2588 = vst.msk [vmem:[%s4949_s2 + $0x730] sm:$0xff] %vm916_vm0, %v3236_v10  ;;  %v1735_v11 = vpop.f32.mrb[101].mxu0  ;;  %v2247_v12 = vpop.f32.mrb[101].mxu1 }
 0x1a3   :  { %2458 = vst.msk [vmem:[%s4949_s2 + $0x320] sm:$0xff] %vm916_vm0, %v1735_v11  ;;  %2586 = vst.msk [vmem:[%s4949_s2 + $0x720] sm:$0xff] %vm916_vm0, %v2247_v12  ;;  %v3109_v13 = vpop.f32.mrb[102].mxu0  ;;  %v3237_v14 = vpop.f32.mrb[102].mxu1 }
 0x1a4   :  { %2461 = vst.msk [vmem:[%s4949_s2 + $0x338] sm:$0xff] %vm916_vm0, %v3109_v13  ;;  %2589 = vst.msk [vmem:[%s4949_s2 + $0x738] sm:$0xff] %vm916_vm0, %v3237_v14  ;;  %v1738_v15 = vpop.f32.mrb[103].mxu0  ;;  %v2250_v16 = vpop.f32.mrb[103].mxu1 }
 0x1a5   :  { %2459 = vst.msk [vmem:[%s4949_s2 + $0x328] sm:$0xff] %vm916_vm0, %v1738_v15  ;;  %2587 = vst.msk [vmem:[%s4949_s2 + $0x728] sm:$0xff] %vm916_vm0, %v2250_v16 }
 0x1a9   :  { %v3112_v17 = vpop.f32.mrb[104].mxu0  ;;  %v3240_v18 = vpop.f32.mrb[104].mxu1 }
 0x1aa   :  { %2464 = vst.msk [vmem:[%s4949_s2 + $0x350] sm:$0xff] %vm916_vm0, %v3112_v17  ;;  %2592 = vst.msk [vmem:[%s4949_s2 + $0x750] sm:$0xff] %vm916_vm0, %v3240_v18  ;;  %v1751_v19 = vpop.f32.mrb[105].mxu0  ;;  %v2263_v20 = vpop.f32.mrb[105].mxu1 }
 0x1ab   :  { %2462 = vst.msk [vmem:[%s4949_s2 + $0x340] sm:$0xff] %vm916_vm0, %v1751_v19  ;;  %2590 = vst.msk [vmem:[%s4949_s2 + $0x740] sm:$0xff] %vm916_vm0, %v2263_v20  ;;  %v3113_v21 = vpop.f32.mrb[106].mxu0  ;;  %v3241_v22 = vpop.f32.mrb[106].mxu1 }
 0x1ac   :  { %2465 = vst.msk [vmem:[%s4949_s2 + $0x358] sm:$0xff] %vm916_vm0, %v3113_v21  ;;  %2593 = vst.msk [vmem:[%s4949_s2 + $0x758] sm:$0xff] %vm916_vm0, %v3241_v22  ;;  %v1754_v23 = vpop.f32.mrb[107].mxu0  ;;  %v2266_v24 = vpop.f32.mrb[107].mxu1 }
 0x1ad   :  { %2463 = vst.msk [vmem:[%s4949_s2 + $0x348] sm:$0xff] %vm916_vm0, %v1754_v23  ;;  %2591 = vst.msk [vmem:[%s4949_s2 + $0x748] sm:$0xff] %vm916_vm0, %v2266_v24 }
 0x1b1   :  { %v3116_v25 = vpop.f32.mrb[108].mxu0  ;;  %v3244_v26 = vpop.f32.mrb[108].mxu1 }
 0x1b2   :  { %2468 = vst.msk [vmem:[%s4949_s2 + $0x370] sm:$0xff] %vm916_vm0, %v3116_v25  ;;  %2596 = vst.msk [vmem:[%s4949_s2 + $0x770] sm:$0xff] %vm916_vm0, %v3244_v26  ;;  %v1767_v27 = vpop.f32.mrb[109].mxu0  ;;  %v2279_v28 = vpop.f32.mrb[109].mxu1 }
 0x1b3   :  { %2466 = vst.msk [vmem:[%s4949_s2 + $0x360] sm:$0xff] %vm916_vm0, %v1767_v27  ;;  %2594 = vst.msk [vmem:[%s4949_s2 + $0x760] sm:$0xff] %vm916_vm0, %v2279_v28  ;;  %v3117_v29 = vpop.f32.mrb[110].mxu0  ;;  %v3245_v30 = vpop.f32.mrb[110].mxu1 }
 0x1b4   :  { %2469 = vst.msk [vmem:[%s4949_s2 + $0x378] sm:$0xff] %vm916_vm0, %v3117_v29  ;;  %2597 = vst.msk [vmem:[%s4949_s2 + $0x778] sm:$0xff] %vm916_vm0, %v3245_v30  ;;  %v1770_v31 = vpop.f32.mrb[111].mxu0  ;;  %v2282_v32 = vpop.f32.mrb[111].mxu1 }
 0x1b5   :  { %2467 = vst.msk [vmem:[%s4949_s2 + $0x368] sm:$0xff] %vm916_vm0, %v1770_v31  ;;  %2595 = vst.msk [vmem:[%s4949_s2 + $0x768] sm:$0xff] %vm916_vm0, %v2282_v32 }
 0x1b9   :  { %v3120_v33 = vpop.f32.mrb[112].mxu0  ;;  %v3248_v34 = vpop.f32.mrb[112].mxu1 }
 0x1ba   :  { %2472 = vst.msk [vmem:[%s4949_s2 + $0x390] sm:$0xff] %vm916_vm0, %v3120_v33  ;;  %2600 = vst.msk [vmem:[%s4949_s2 + $0x790] sm:$0xff] %vm916_vm0, %v3248_v34  ;;  %v1783_v35 = vpop.f32.mrb[113].mxu0  ;;  %v2295_v36 = vpop.f32.mrb[113].mxu1 }
 0x1bb   :  { %2470 = vst.msk [vmem:[%s4949_s2 + $0x380] sm:$0xff] %vm916_vm0, %v1783_v35  ;;  %2598 = vst.msk [vmem:[%s4949_s2 + $0x780] sm:$0xff] %vm916_vm0, %v2295_v36  ;;  %v3121_v37 = vpop.f32.mrb[114].mxu0  ;;  %v3249_v38 = vpop.f32.mrb[114].mxu1 }
 0x1bc   :  { %2473 = vst.msk [vmem:[%s4949_s2 + $0x398] sm:$0xff] %vm916_vm0, %v3121_v37  ;;  %2601 = vst.msk [vmem:[%s4949_s2 + $0x798] sm:$0xff] %vm916_vm0, %v3249_v38  ;;  %v1786_v39 = vpop.f32.mrb[115].mxu0  ;;  %v2298_v40 = vpop.f32.mrb[115].mxu1 }
 0x1bd   :  { %2471 = vst.msk [vmem:[%s4949_s2 + $0x388] sm:$0xff] %vm916_vm0, %v1786_v39  ;;  %2599 = vst.msk [vmem:[%s4949_s2 + $0x788] sm:$0xff] %vm916_vm0, %v2298_v40 }
 0x1c1   :  { %v3124_v41 = vpop.f32.mrb[116].mxu0  ;;  %v3252_v42 = vpop.f32.mrb[116].mxu1 }
 0x1c2   :  { %2476 = vst.msk [vmem:[%s4949_s2 + $0x3b0] sm:$0xff] %vm916_vm0, %v3124_v41  ;;  %2604 = vst.msk [vmem:[%s4949_s2 + $0x7b0] sm:$0xff] %vm916_vm0, %v3252_v42  ;;  %v1799_v43 = vpop.f32.mrb[117].mxu0  ;;  %v2311_v44 = vpop.f32.mrb[117].mxu1 }
 0x1c3   :  { %2474 = vst.msk [vmem:[%s4949_s2 + $0x3a0] sm:$0xff] %vm916_vm0, %v1799_v43  ;;  %2602 = vst.msk [vmem:[%s4949_s2 + $0x7a0] sm:$0xff] %vm916_vm0, %v2311_v44  ;;  %v3125_v45 = vpop.f32.mrb[118].mxu0  ;;  %v3253_v46 = vpop.f32.mrb[118].mxu1 }
 0x1c4   :  { %2477 = vst.msk [vmem:[%s4949_s2 + $0x3b8] sm:$0xff] %vm916_vm0, %v3125_v45  ;;  %2605 = vst.msk [vmem:[%s4949_s2 + $0x7b8] sm:$0xff] %vm916_vm0, %v3253_v46  ;;  %v1802_v47 = vpop.f32.mrb[119].mxu0  ;;  %v2314_v48 = vpop.f32.mrb[119].mxu1 }
 0x1c5   :  { %2475 = vst.msk [vmem:[%s4949_s2 + $0x3a8] sm:$0xff] %vm916_vm0, %v1802_v47  ;;  %2603 = vst.msk [vmem:[%s4949_s2 + $0x7a8] sm:$0xff] %vm916_vm0, %v2314_v48 }
 0x1c9   :  { %v3128_v49 = vpop.f32.mrb[120].mxu0  ;;  %v3256_v50 = vpop.f32.mrb[120].mxu1 }
 0x1ca   :  { %2480 = vst.msk [vmem:[%s4949_s2 + $0x3d0] sm:$0xff] %vm916_vm0, %v3128_v49  ;;  %2608 = vst.msk [vmem:[%s4949_s2 + $0x7d0] sm:$0xff] %vm916_vm0, %v3256_v50  ;;  %v1815_v51 = vpop.f32.mrb[121].mxu0  ;;  %v2327_v52 = vpop.f32.mrb[121].mxu1 }
 0x1cb   :  { %2478 = vst.msk [vmem:[%s4949_s2 + $0x3c0] sm:$0xff] %vm916_vm0, %v1815_v51  ;;  %2606 = vst.msk [vmem:[%s4949_s2 + $0x7c0] sm:$0xff] %vm916_vm0, %v2327_v52  ;;  %v3129_v53 = vpop.f32.mrb[122].mxu0  ;;  %v3257_v54 = vpop.f32.mrb[122].mxu1 }
 0x1cc   :  { %2481 = vst.msk [vmem:[%s4949_s2 + $0x3d8] sm:$0xff] %vm916_vm0, %v3129_v53  ;;  %2609 = vst.msk [vmem:[%s4949_s2 + $0x7d8] sm:$0xff] %vm916_vm0, %v3257_v54  ;;  %v1818_v55 = vpop.f32.mrb[123].mxu0  ;;  %v2330_v56 = vpop.f32.mrb[123].mxu1 }
 0x1cd   :  { %2479 = vst.msk [vmem:[%s4949_s2 + $0x3c8] sm:$0xff] %vm916_vm0, %v1818_v55  ;;  %2607 = vst.msk [vmem:[%s4949_s2 + $0x7c8] sm:$0xff] %vm916_vm0, %v2330_v56 }
 0x1d1   :  { %v3132_v57 = vpop.f32.mrb[124].mxu0  ;;  %v3260_v58 = vpop.f32.mrb[124].mxu1 }
 0x1d2   :  { %2484 = vst.msk [vmem:[%s4949_s2 + $0x3f0] sm:$0xff] %vm916_vm0, %v3132_v57  ;;  %2612 = vst.msk [vmem:[%s4949_s2 + $0x7f0] sm:$0xff] %vm916_vm0, %v3260_v58  ;;  %v1831_v59 = vpop.f32.mrb[125].mxu0  ;;  %v2343_v60 = vpop.f32.mrb[125].mxu1 }
 0x1d3   :  { %2482 = vst.msk [vmem:[%s4949_s2 + $0x3e0] sm:$0xff] %vm916_vm0, %v1831_v59  ;;  %2610 = vst.msk [vmem:[%s4949_s2 + $0x7e0] sm:$0xff] %vm916_vm0, %v2343_v60  ;;  %v3133_v61 = vpop.f32.mrb[126].mxu0  ;;  %v3261_v62 = vpop.f32.mrb[126].mxu1 }
 0x1d4   :  { %2485 = vst.msk [vmem:[%s4949_s2 + $0x3f8] sm:$0xff] %vm916_vm0, %v3133_v61  ;;  %2613 = vst.msk [vmem:[%s4949_s2 + $0x7f8] sm:$0xff] %vm916_vm0, %v3261_v62  ;;  %v1834_v63 = vpop.f32.mrb[127].mxu0  ;;  %v2346_v0 = vpop.f32.mrb[127].mxu1 }
 0x1d5   :  { %2483 = vst.msk [vmem:[%s4949_s2 + $0x3e8] sm:$0xff] %vm916_vm0, %v1834_v63  ;;  %2611 = vst.msk [vmem:[%s4949_s2 + $0x7e8] sm:$0xff] %vm916_vm0, %v2346_v0 }

// kernel: generator_forward.19
= control target key start
LH: loop header
LB: loop body
LE: loop exit
PB: predicated region body
PF: predicated region fallthrough
CT: control target
= control target key end

     0   :  { %s137_s0 = inlined_call_operand.vmem [shape: f32[64,128], index: 0, kind: input, shape index: {}]   ;;  %s138_s1 = inlined_call_operand.vmem [shape: f32[1,128], index: 1, kind: input, shape index: {}]   ;;  %s139_s2 = inlined_call_operand.vmem [shape: f32[64,128], index: 2, kind: output, shape index: {}]  }
   0x1   :  { %v11_v0 = vld [vmem:[%s137_s0] sm:$0xff]  ;;  %v12_v2 = vld [vmem:[%s137_s0 + $0x8] sm:$0xff]  ;;  %v13_v5 = vld [vmem:[%s137_s0 + $0x10] sm:$0xff] }
   0x2   :  { %v54_v1 = vld [vmem:[%s138_s1] ss:$0 sm:$0xff]  ;;  %v14_v6 = vld [vmem:[%s137_s0 + $0x18] sm:$0xff]  ;;  %v16_v10 = vld [vmem:[%s137_s0 + $0x28] sm:$0xff] }
   0x3   :  { %v26_v3 = vadd.f32 %v54_v1, %v11_v0  ;;  %v27_v4 = vadd.f32 %v54_v1, %v12_v2  ;;  %v15_v7 = vld [vmem:[%s137_s0 + $0x20] sm:$0xff]  ;;  %v28_v8 = vadd.f32 %v54_v1, %v13_v5  ;;  %v29_v9 = vadd.f32 %v54_v1, %v14_v6  ;;  %v17_v11 = vld [vmem:[%s137_s0 + $0x30] sm:$0xff]  ;;  %v18_v13 = vld [vmem:[%s137_s0 + $0x38] sm:$0xff] }
   0x4   :  { %v30_v12 = vadd.f32 %v54_v1, %v15_v7  ;;  %v31_v14 = vadd.f32 %v54_v1, %v16_v10  ;;  %v32_v15 = vadd.f32 %v54_v1, %v17_v11  ;;  %v33_v16 = vadd.f32 %v54_v1, %v18_v13 }
   0x5   :  { %55 = vtanh.f32 %v26_v3 }
   0x6   :  { %57 = vtanh.f32 %v27_v4 }
   0x7   :  { %59 = vtanh.f32 %v28_v8 }
   0x8   :  { %61 = vtanh.f32 %v29_v9 }
   0x9   :  { %63 = vtanh.f32 %v30_v12 }
   0xa   :  { %65 = vtanh.f32 %v31_v14 }
   0xb   :  { %67 = vtanh.f32 %v32_v15 }
   0xc   :  { %69 = vtanh.f32 %v33_v16 }
   0xf   :  { %v56_v17 = vpop.eup %55 }
  0x10   :  { %v58_v18 = vpop.eup %57  ;;  %42 = vst [vmem:[%s139_s2] sm:$0xff] %v56_v17 }
  0x11   :  { %v60_v19 = vpop.eup %59  ;;  %43 = vst [vmem:[%s139_s2 + $0x8] sm:$0xff] %v58_v18 }
  0x12   :  { %v62_v20 = vpop.eup %61  ;;  %44 = vst [vmem:[%s139_s2 + $0x10] sm:$0xff] %v60_v19 }
  0x13   :  { %v64_v21 = vpop.eup %63  ;;  %45 = vst [vmem:[%s139_s2 + $0x18] sm:$0xff] %v62_v20 }
  0x14   :  { %v66_v22 = vpop.eup %65  ;;  %46 = vst [vmem:[%s139_s2 + $0x20] sm:$0xff] %v64_v21 }
  0x15   :  { %v68_v23 = vpop.eup %67  ;;  %47 = vst [vmem:[%s139_s2 + $0x28] sm:$0xff] %v66_v22 }
  0x16   :  { %v70_v24 = vpop.eup %69  ;;  %48 = vst [vmem:[%s139_s2 + $0x30] sm:$0xff] %v68_v23 }
  0x17   :  { %49 = vst [vmem:[%s139_s2 + $0x38] sm:$0xff] %v70_v24 }

</bundles_post_ra>
